<compile_context>
chip_gen: v5e
topology: v5e:2x2
jax: 0.10.0
libtpu: 0.0.40
codegen_flags: <defaults>
</compile_context>

<pallas_src>
import jax
import jax.numpy as jnp
from jax.experimental import pallas as pl
from jax.experimental.pallas import tpu as pltpu

HIDDEN = 768          # BERT hidden size (Linear is 1536 -> 768, so H is fixed)
OUT_DIM = 768


def mean_max_linear_kernel(h_ref, m_ref, inv_len_ref, wm_ref, wx_ref, b_ref, o_ref):
    """One batch tile (TB rows) per grid step.

    h_ref       : (TB, S, H)   last hidden states
    m_ref       : (TB, S, 1)   attention mask (0/1, same dtype as h)
    inv_len_ref : (TB, 1)      1 / clamp(sum(mask), 1e-9), f32
    wm_ref      : (H, OUT)     linear weight rows for the mean features
    wx_ref      : (H, OUT)     linear weight rows for the max features
    b_ref       : (1, OUT)     linear bias
    o_ref       : (TB, OUT)    output embeddings
    """
    h = h_ref[...].astype(jnp.float32)       # (TB, S, H)
    m = m_ref[...].astype(jnp.float32)       # (TB, S, 1)

    # masked mean pooling (accumulate in f32)
    sum_emb = jnp.sum(h * m, axis=1)                            # (TB, H)
    mean_emb = sum_emb * inv_len_ref[...]                       # (TB, H)

    # masked max pooling (mask==0 positions -> -1e9, exactly as in torch)
    h_masked = jnp.where(m == 0.0, jnp.float32(-1e9), h)        # (TB, S, H)
    max_emb = jnp.max(h_masked, axis=1)                         # (TB, H)

    # Linear(1536, 768) as two 768x768 matmuls (no lane-axis concat).
    out = jnp.dot(mean_emb, wm_ref[...], preferred_element_type=jnp.float32)
    out = out + jnp.dot(max_emb, wx_ref[...], preferred_element_type=jnp.float32)
    out = out + b_ref[...]
    o_ref[...] = out.astype(o_ref.dtype)


def embedding_model_forward(last_hidden_states, attention_mask, w_t, b, *, tb=8):
    """last_hidden_states: [B, S, H] (f32 or bf16), attention_mask: [B, S] (0/1).

    w_t: [2H, OUT] linear weight stored pre-transposed (feat @ w_t + b).
    """
    B, S, H = last_hidden_states.shape
    assert H == HIDDEN
    assert w_t.shape == (2 * H, OUT_DIM)

    in_dtype = last_hidden_states.dtype

    # 1/seq_len computed once in the wrapper (f32, exact) -> kernel just multiplies.
    mask_f32 = attention_mask.astype(jnp.float32)                         # (B, S)
    inv_len = 1.0 / jnp.maximum(jnp.sum(mask_f32, axis=1, keepdims=True), 1e-9)

    # Pad the batch to a multiple of the batch tile (padded rows: zeros, mask 0;
    # they are sliced off below).
    b_pad = ((B + tb - 1) // tb) * tb
    if b_pad != B:
        pad = b_pad - B
        last_hidden_states = jnp.pad(last_hidden_states, ((0, pad), (0, 0), (0, 0)))
        mask_f32 = jnp.pad(mask_f32, ((0, pad), (0, 0)))
        inv_len = jnp.pad(inv_len, ((0, pad), (0, 0)))

    mask3 = mask_f32.astype(in_dtype).reshape(b_pad, S, 1)
    w_mean = w_t[:H]                      # (H, OUT)
    w_max = w_t[H:]                       # (H, OUT)
    b2 = b.reshape(1, OUT_DIM)

    out = pl.pallas_call(
        mean_max_linear_kernel,
        out_shape=jax.ShapeDtypeStruct((b_pad, OUT_DIM), jnp.float32),
        grid_spec=pltpu.PrefetchScalarGridSpec(
            num_scalar_prefetch=0,
            grid=(b_pad // tb,),
            in_specs=[
                pl.BlockSpec((tb, S, H), lambda i: (i, 0, 0)),       # hidden states
                pl.BlockSpec((tb, S, 1), lambda i: (i, 0, 0)),       # mask
                pl.BlockSpec((tb, 1), lambda i: (i, 0)),             # 1/len
                pl.BlockSpec((H, OUT_DIM), lambda i: (0, 0)),        # W_mean (resident)
                pl.BlockSpec((H, OUT_DIM), lambda i: (0, 0)),        # W_max  (resident)
                pl.BlockSpec((1, OUT_DIM), lambda i: (0, 0)),        # bias   (resident)
            ],
            out_specs=pl.BlockSpec((tb, OUT_DIM), lambda i: (i, 0)),
        ),
        compiler_params=pltpu.CompilerParams(
            dimension_semantics=("parallel",),
            vmem_limit_bytes=48 * 1024 * 1024,
        ),
    )(last_hidden_states, mask3, inv_len, w_mean, w_max, b2)
    return out[:B]


def reference_forward(last_hidden_states, attention_mask, w_t, b):
    """Pure-JAX reference mirroring the PyTorch forward."""
    mask = attention_mask.astype(jnp.float32)[..., None]           # [B, S, 1]
    sum_emb = jnp.sum(last_hidden_states * mask, axis=1)           # [B, H]
    sum_mask = jnp.maximum(jnp.sum(mask, axis=1), 1e-9)            # [B, 1]
    mean_emb = sum_emb / sum_mask
    h_masked = jnp.where(mask == 0.0, -1e9, last_hidden_states)
    max_emb = jnp.max(h_masked, axis=1)                            # [B, H]
    feat = jnp.concatenate([mean_emb, max_emb], axis=1)            # [B, 2H]
    return feat @ w_t + b


if __name__ == "__main__":
    key = jax.random.PRNGKey(0)
    k_h, k_w, k_b = jax.random.split(key, 3)

    B, S, H = 2, 8, HIDDEN

    # Deterministic synthetic "backbone output" and mask.
    last_hidden_states = jax.random.normal(k_h, (B, S, H), dtype=jnp.float32)
    attention_mask = jnp.array(
        [[1, 1, 1, 1, 1, 1, 1, 1],
         [1, 1, 1, 1, 0, 0, 0, 0]], dtype=jnp.int32)

    # Deterministic Linear(1536, 768) params (PyTorch-style uniform init),
    # stored pre-transposed as [in, out].
    bound = 1.0 / jnp.sqrt(2.0 * H)
    w_t = jax.random.uniform(k_w, (2 * H, OUT_DIM), jnp.float32, -bound, bound)
    b = jax.random.uniform(k_b, (OUT_DIM,), jnp.float32, -bound, bound)

    out = embedding_model_forward(last_hidden_states, attention_mask, w_t, b)
    out = jax.block_until_ready(out)

    ref = reference_forward(last_hidden_states, attention_mask, w_t, b)
    assert out.shape == (B, OUT_DIM)
    assert jnp.allclose(out, ref, atol=1e-4, rtol=1e-4), float(
        jnp.max(jnp.abs(out - ref)))

    print("KERNEL_OK")
</pallas_src>

<mosaic_0001>
module attributes {stable_mosaic.version = 11 : i64} {
  func.func @mean_max_linear_kernel(%arg0: i32, %arg1: memref<8x8x768xf32, #tpu.memory_space<vmem>>, %arg2: memref<8x8x1xf32, #tpu.memory_space<vmem>>, %arg3: memref<8x1xf32, #tpu.memory_space<vmem>>, %arg4: memref<768x768xf32, #tpu.memory_space<vmem>>, %arg5: memref<768x768xf32, #tpu.memory_space<vmem>>, %arg6: memref<1x768xf32, #tpu.memory_space<vmem>>, %arg7: memref<8x768xf32, #tpu.memory_space<vmem>>) attributes {dimension_semantics = [#tpu.dimension_semantics<parallel>], iteration_bounds = array<i64: 1>, scalar_prefetch = 0 : i64, scratch_operands = 0 : i64, tpu.core_type = #tpu.core_type<tc>, window_params = [{transform_indices = @transform_0, window_bounds = array<i64: 8, 8, 768>}, {transform_indices = @transform_1, window_bounds = array<i64: 8, 8, 1>}, {transform_indices = @transform_2, window_bounds = array<i64: 8, 1>}, {pipeline_mode = #tpu.pipeline_mode<synchronous>, transform_indices = @transform_3, window_bounds = array<i64: 768, 768>}, {pipeline_mode = #tpu.pipeline_mode<synchronous>, transform_indices = @transform_4, window_bounds = array<i64: 768, 768>}, {pipeline_mode = #tpu.pipeline_mode<synchronous>, transform_indices = @transform_5, window_bounds = array<i64: 1, 768>}, {transform_indices = @transform_6, window_bounds = array<i64: 8, 768>}]} {
    %c0 = arith.constant 0 : index
    %c0_0 = arith.constant 0 : index
    %c0_1 = arith.constant 0 : index
    %0 = vector.load %arg1[%c0, %c0_0, %c0_1] : memref<8x8x768xf32, #tpu.memory_space<vmem>>, vector<8x8x768xf32>
    %c0_2 = arith.constant 0 : index
    %c0_3 = arith.constant 0 : index
    %c0_4 = arith.constant 0 : index
    %1 = vector.load %arg2[%c0_2, %c0_3, %c0_4] : memref<8x8x1xf32, #tpu.memory_space<vmem>>, vector<8x8x1xf32>
    %2 = vector.broadcast %1 : vector<8x8x1xf32> to vector<8x8x768xf32>
    %3 = arith.mulf %0, %2 : vector<8x8x768xf32>
    %cst = arith.constant dense<0.000000e+00> : vector<8x768xf32>
    %4 = vector.multi_reduction <add>, %3, %cst [1] : vector<8x8x768xf32> to vector<8x768xf32>
    %c0_5 = arith.constant 0 : index
    %c0_6 = arith.constant 0 : index
    %5 = vector.load %arg3[%c0_5, %c0_6] : memref<8x1xf32, #tpu.memory_space<vmem>>, vector<8x1xf32>
    %6 = vector.broadcast %5 : vector<8x1xf32> to vector<8x768xf32>
    %7 = arith.mulf %4, %6 : vector<8x768xf32>
    %cst_7 = arith.constant 0.000000e+00 : f32
    %8 = vector.broadcast %cst_7 : f32 to vector<8x8x1xf32>
    %9 = arith.cmpf oeq, %1, %8 : vector<8x8x1xf32>
    %cst_8 = arith.constant -1.000000e+09 : f32
    %10 = vector.shape_cast %9 : vector<8x8x1xi1> to vector<8x8x1xi1>
    %11 = vector.broadcast %10 : vector<8x8x1xi1> to vector<8x8x768xi1>
    %12 = vector.broadcast %cst_8 : f32 to vector<8x8x768xf32>
    %13 = arith.select %11, %12, %0 : vector<8x8x768xi1>, vector<8x8x768xf32>
    %cst_9 = arith.constant dense<0xFF800000> : vector<8x768xf32>
    %14 = vector.multi_reduction <maximumf>, %13, %cst_9 [1] : vector<8x8x768xf32> to vector<8x768xf32>
    %c0_10 = arith.constant 0 : index
    %c0_11 = arith.constant 0 : index
    %15 = vector.load %arg4[%c0_10, %c0_11] : memref<768x768xf32, #tpu.memory_space<vmem>>, vector<768x768xf32>
    %cst_12 = arith.constant dense<0.000000e+00> : vector<8x768xf32>
    %16 = tpu.matmul %7, %15, %cst_12 {dimension_numbers = #tpu.dot_dimension_numbers<[1], [0], [0], [1], [0, 0, 1, 1], [], []>} : vector<8x768xf32>, vector<768x768xf32>, vector<8x768xf32> -> vector<8x768xf32>
    %c0_13 = arith.constant 0 : index
    %c0_14 = arith.constant 0 : index
    %17 = vector.load %arg5[%c0_13, %c0_14] : memref<768x768xf32, #tpu.memory_space<vmem>>, vector<768x768xf32>
    %cst_15 = arith.constant dense<0.000000e+00> : vector<8x768xf32>
    %18 = tpu.matmul %14, %17, %cst_15 {dimension_numbers = #tpu.dot_dimension_numbers<[1], [0], [0], [1], [0, 0, 1, 1], [], []>} : vector<8x768xf32>, vector<768x768xf32>, vector<8x768xf32> -> vector<8x768xf32>
    %19 = arith.addf %16, %18 : vector<8x768xf32>
    %c0_16 = arith.constant 0 : index
    %c0_17 = arith.constant 0 : index
    %20 = vector.load %arg6[%c0_16, %c0_17] : memref<1x768xf32, #tpu.memory_space<vmem>>, vector<1x768xf32>
    %21 = vector.broadcast %20 : vector<1x768xf32> to vector<8x768xf32>
    %22 = arith.addf %19, %21 : vector<8x768xf32>
    %c0_18 = arith.constant 0 : index
    %c0_19 = arith.constant 0 : index
    %23 = vector.load %arg7[%c0_18, %c0_19] : memref<8x768xf32, #tpu.memory_space<vmem>>, vector<8x768xf32>
    tpu.vector_store %arg7[%c0_18, %c0_19], %22 {strides = array<i32>} : memref<8x768xf32, #tpu.memory_space<vmem>>, vector<8x768xf32>,
    return
  }
  func.func @transform_0(%arg0: i32) -> (i32, i32, i32) {
    %c0_i32 = arith.constant 0 : i32
    %c0_i32_0 = arith.constant 0 : i32
    %c0_i32_1 = arith.constant 0 : i32
    return %arg0, %c0_i32, %c0_i32_0 : i32, i32, i32
  }
  func.func @transform_1(%arg0: i32) -> (i32, i32, i32) {
    %c0_i32 = arith.constant 0 : i32
    %c0_i32_0 = arith.constant 0 : i32
    %c0_i32_1 = arith.constant 0 : i32
    return %arg0, %c0_i32, %c0_i32_0 : i32, i32, i32
  }
  func.func @transform_2(%arg0: i32) -> (i32, i32) {
    %c0_i32 = arith.constant 0 : i32
    %c0_i32_0 = arith.constant 0 : i32
    return %arg0, %c0_i32 : i32, i32
  }
  func.func @transform_3(%arg0: i32) -> (i32, i32) {
    %c0_i32 = arith.constant 0 : i32
    %c0_i32_0 = arith.constant 0 : i32
    %c0_i32_1 = arith.constant 0 : i32
    return %c0_i32, %c0_i32_0 : i32, i32
  }
  func.func @transform_4(%arg0: i32) -> (i32, i32) {
    %c0_i32 = arith.constant 0 : i32
    %c0_i32_0 = arith.constant 0 : i32
    %c0_i32_1 = arith.constant 0 : i32
    return %c0_i32, %c0_i32_0 : i32, i32
  }
  func.func @transform_5(%arg0: i32) -> (i32, i32) {
    %c0_i32 = arith.constant 0 : i32
    %c0_i32_0 = arith.constant 0 : i32
    %c0_i32_1 = arith.constant 0 : i32
    return %c0_i32, %c0_i32_0 : i32, i32
  }
  func.func @transform_6(%arg0: i32) -> (i32, i32) {
    %c0_i32 = arith.constant 0 : i32
    %c0_i32_0 = arith.constant 0 : i32
    return %arg0, %c0_i32 : i32, i32
  }
}

</mosaic_0001>

<bundles_post_ra>
// kernel: tpu_custom_call.1
= control target key start
LH: loop header
LB: loop body
LE: loop exit
PB: predicated region body
PF: predicated region fallthrough
CT: control target
= control target key end

     0   :  { %11 = vsyncpa [#allocation3], 0  ;;  %s4975_s0 = inlined_call_operand.hbm [shape: f32[8,8,768], index: 0, kind: input, shape index: {}]   ;;  %s4976_s1 = inlined_call_operand.vmem [shape: f32[8,8,1], index: 1, kind: input, shape index: {}]   ;;  %s4977_s2 = inlined_call_operand.vmem [shape: f32[8,1], index: 2, kind: input, shape index: {}]   ;;  %s4978_s3 = inlined_call_operand.hbm [shape: f32[768,768], index: 3, kind: input, shape index: {}]   ;;  %s4979_s4 = inlined_call_operand.hbm [shape: f32[768,768], index: 4, kind: input, shape index: {}]   ;;  %s4980_s5 = inlined_call_operand.hbm [shape: f32[1,768], index: 5, kind: input, shape index: {}]   ;;  %s4981_s6 = inlined_call_operand.hbm [shape: f32[8,768], index: 6, kind: output, shape index: {}]  }
   0x1   :  { %12 = vsyncpa [#allocation6], 0 }
   0x2   :  { %13 = vsyncpa [#allocation9], 0 }
   0x3   :  { %14 = vsyncpa [#allocation4], 0  ;;  %s36_s23 = sshll.u32 %s4978_s3, 4  ;;  %s4005_s24 = smov [#allocation5]   ;;  %s37_s23 = int_to_ptr.hbm [resolvable:$true] %s36_s23 }
   0x4   :  { %s38_s25 = sshll.u32 %s4005_s24, 4  ;;  %s19_s28 = sshll.u32 %s4975_s0, 4  ;;  %s39_s25 = int_to_ptr.vmem [resolvable:$true] %s38_s25  ;;  %s20_s28 = int_to_ptr.hbm [resolvable:$true] %s19_s28 }
   0x5   :  { %s4006_s29 = smov 768   ;;  %s4007_s30 = smov 48  }
   0x6   :  { %44 = dma.hbm_to_vmem [thread:$0]  %s37_s23, 73728, %s39_s25, [#allocation6], %s4006_s29, %s4006_s29, %s4007_s30  }
   0x7   :  { %s4008_s7 = smov [#allocation2]   ;;  %s49_s11 = sshll.u32 %s4979_s4, 4  ;;  %s50_s11 = int_to_ptr.hbm [resolvable:$true] %s49_s11 }
   0x8   :  { %s21_s8 = sshll.u32 %s4008_s7, 4  ;;  %s63_s13 = sshll.u32 %s4980_s5, 4  ;;  %s22_s8 = int_to_ptr.vmem [resolvable:$true] %s21_s8  ;;  %s64_s13 = int_to_ptr.hbm [resolvable:$true] %s63_s13 }
   0x9   :  { %27 = dma.hbm_to_vmem [thread:$0]  %s20_s28, 6144, %s22_s8, [#allocation3], %s4006_s29, %s4006_s29, %s4007_s30  }
   0xa   :  { %s4009_s14 = smov [#allocation7]   ;;  %s4010_s0 = smov [#allocation8]  }
   0xb   :  { %s51_s15 = sshll.u32 %s4009_s14, 4  ;;  %s65_s16 = sshll.u32 %s4010_s0, 4  ;;  %s52_s15 = int_to_ptr.vmem [resolvable:$true] %s51_s15  ;;  %s66_s16 = int_to_ptr.vmem [resolvable:$true] %s65_s16 }
   0xc   :  { %57 = dma.hbm_to_vmem [thread:$0]  %s50_s11, 73728, %s52_s15, [#allocation6], %s4006_s29, %s4006_s29, %s4007_s30  }
   0xd   :  { %68 = dma.hbm_to_vmem [thread:$0]  %s64_s13, 96, %s66_s16, [#allocation9]  }
   0xe   :  { %3997 = dma.done.wait [#allocation3], 6144  }
   0xf   :  { %3998 = vsyncadd [#allocation3], 4294961152 }
  0x10   :  { %3999 = dma.done.wait [#allocation6], 147456  }
  0x11   :  { %4000 = vsyncadd [#allocation6], 4294819840 }
  0x12   :  { %4001 = dma.done.wait [#allocation9], 96  }
  0x13   :  { %4002 = vsyncadd [#allocation9], 4294967200  ;;  %v4011_v0 = vmov 0   ;;  %v137_v1 = vld [vmem:[%s4976_s1 + $0x20] sm:$0xff]  ;;  %v135_v2 = vld [vmem:[%s4976_s1 + $0x10] sm:$0xff]  ;;  %vm2169_vm15 = vcmask 1041409  }
  0x14   :  { %3857 = vset.pattern.permute.xlu2 %v4011_v0  ;;  %3856 = vset.pattern.permute.xlu1 %v4011_v0  ;;  %v133_v3 = vld [vmem:[%s4976_s1] sm:$0xff]  ;;  %vm589_vm0 = vcmp.eq.f32.partialorder %v137_v1, 0.0  ;;  %vm587_vm1 = vcmp.eq.f32.partialorder %v135_v2, 0.0  ;;  %v138_v7 = vld [vmem:[%s4976_s1 + $0x28] sm:$0xff]  ;;  %v136_v8 = vld [vmem:[%s4976_s1 + $0x18] sm:$0xff]  ;;  %s3835_s11 = sshll.u32 %s4981_s6, 4  ;;  %s3836_s11 = int_to_ptr.hbm [resolvable:$true] %s3835_s11 }
  0x15   :  { %3855 = vset.pattern.permute.xlu0 %v4011_v0  ;;  %vm585_vm2 = vcmp.eq.f32.partialorder %v133_v3, 0.0  ;;  %v597_v4 = vsel %vm589_vm0, 1, %v4011_v0  ;;  %v595_v5 = vsel %vm587_vm1, 1, %v4011_v0  ;;  %v134_v9 = vld [vmem:[%s4976_s1 + $0x8] sm:$0xff]  ;;  %vm590_vm3 = vcmp.eq.f32.partialorder %v138_v7, 0.0  ;;  %v140_v13 = vld [vmem:[%s4976_s1 + $0x38] sm:$0xff] }
  0x16   :  { %v593_v6 = vsel %vm585_vm2, 1, %v4011_v0  ;;  %614 = vperm.xlu2 %3857, %v597_v4   ;;  %608 = vperm.xlu1 %3856, %v595_v5   ;;  %vm588_vm4 = vcmp.eq.f32.partialorder %v136_v8, 0.0  ;;  %vm586_vm5 = vcmp.eq.f32.partialorder %v134_v9, 0.0  ;;  %v598_v10 = vsel %vm590_vm3, 1, %v4011_v0  ;;  %v139_v14 = vld [vmem:[%s4976_s1 + $0x30] sm:$0xff]  ;;  %v1629_v19 = vld [vmem:[#allocation7 + $0x2a0] sm:$0xff] }
  0x17   :  { %602 = vperm.xlu0 %3855, %v593_v6   ;;  %v596_v11 = vsel %vm588_vm4, 1, %v4011_v0  ;;  %v594_v12 = vsel %vm586_vm5, 1, %v4011_v0  ;;  %v1635_v15 = vld [vmem:[#allocation7 + $0x2d0] sm:$0xff]  ;;  %vm592_vm6 = vcmp.eq.f32.partialorder %v140_v13, 0.0  ;;  %v1725_v20 = vld [vmem:[#allocation7 + $0x5a0] sm:$0xff]  ;;  %vm591_vm7 = vcmp.eq.f32.partialorder %v139_v14, 0.0 }
  0x18   :  { %v1731_v16 = vld [vmem:[#allocation7 + $0x5d0] sm:$0xff]  ;;  %2224 = vmatpush.msra.mxu0 %v1635_v15  ;;  %v1821_v21 = vld [vmem:[#allocation7 + $0x8a0] sm:$0xff]  ;;  %v600_v27 = vsel %vm592_vm6, 1, %v4011_v0  ;;  %v599_v28 = vsel %vm591_vm7, 1, %v4011_v0  ;;  %v110_v15 = vld [vmem:[#allocation2 + $0xc8] sm:$0xff]  ;;  %vm2171_vm1 = vcmask 1042434  }
  0x19   :  { %v1827_v17 = vld [vmem:[#allocation7 + $0x8d0] sm:$0xff]  ;;  %2244 = vmatpush.msra.mxu1 %v1731_v16  ;;  %v1917_v22 = vld [vmem:[#allocation7 + $0xba0] sm:$0xff]  ;;  %vm2173_vm2 = vcmask 1043459   ;;  %vm2175_vm3 = vcmask 1044484   ;;  %vm2177_vm4 = vcmask 1045509   ;;  %vm2179_vm5 = vcmask 1046534  }
  0x1a   :  { %v1923_v18 = vld [vmem:[#allocation7 + $0xbd0] sm:$0xff]  ;;  %2264 = vmatpush.msra.mxu2 %v1827_v17  ;;  %2225 = vmatpush.msra.mxu0 %v1629_v19  ;;  %v517_v29 = vld [vmem:[%s4977_s2] sm:$0xff]  ;;  %vm2181_vm6 = vcmask 1047559   ;;  %s4012_s2 = smov [#allocation10]  }
  0x1b   :  { %2284 = vmatpush.msra.mxu3 %v1923_v18  ;;  %v1623_v23 = vld [vmem:[#allocation7 + $0x270] sm:$0xff]  ;;  %2245 = vmatpush.msra.mxu1 %v1725_v20  ;;  %v1617_v30 = vld [vmem:[#allocation7 + $0x240] sm:$0xff]  ;;  %v112_v18 = vld [vmem:[#allocation2 + $0xd8] sm:$0xff]  ;;  %s3833_s8 = sshll.u32 %s4012_s2, 4  ;;  %s3834_s8 = int_to_ptr.vmem [resolvable:$true] %s3833_s8 }
  0x1c   :  { %v1719_v24 = vld [vmem:[#allocation7 + $0x570] sm:$0xff]  ;;  %2265 = vmatpush.msra.mxu2 %v1821_v21  ;;  %2226 = vmatpush.msra.mxu0 %v1623_v23  ;;  %v1713_v31 = vld [vmem:[#allocation7 + $0x540] sm:$0xff]  ;;  %v114_v20 = vld [vmem:[#allocation2 + $0xe8] sm:$0xff] }
  0x1d   :  { %v1815_v25 = vld [vmem:[#allocation7 + $0x870] sm:$0xff]  ;;  %2285 = vmatpush.msra.mxu3 %v1917_v22  ;;  %2246 = vmatpush.msra.mxu1 %v1719_v24  ;;  %v1809_v32 = vld [vmem:[#allocation7 + $0x840] sm:$0xff] }
  0x1e   :  { %617 = vperm.xlu2 %3857, %v598_v10   ;;  %611 = vperm.xlu1 %3856, %v596_v11   ;;  %v1911_v26 = vld [vmem:[#allocation7 + $0xb70] sm:$0xff]  ;;  %v1905_v33 = vld [vmem:[#allocation7 + $0xb40] sm:$0xff] }
  0x1f   :  { %605 = vperm.xlu0 %3855, %v594_v12   ;;  %2266 = vmatpush.msra.mxu2 %v1815_v25  ;;  %v1611_v34 = vld [vmem:[#allocation7 + $0x210] sm:$0xff]  ;;  %v1605_v38 = vld [vmem:[#allocation7 + $0x1e0] sm:$0xff] }
  0x20   :  { %2286 = vmatpush.msra.mxu3 %v1911_v26  ;;  %2227 = vmatpush.msra.mxu0 %v1617_v30  ;;  %v1707_v35 = vld [vmem:[#allocation7 + $0x510] sm:$0xff]  ;;  %v1701_v39 = vld [vmem:[#allocation7 + $0x4e0] sm:$0xff] }
  0x21   :  { %2247 = vmatpush.msra.mxu1 %v1713_v31  ;;  %2267 = vmatpush.msra.mxu2 %v1809_v32  ;;  %v1803_v36 = vld [vmem:[#allocation7 + $0x810] sm:$0xff]  ;;  %v1797_v40 = vld [vmem:[#allocation7 + $0x7e0] sm:$0xff] }
  0x22   :  { %2287 = vmatpush.msra.mxu3 %v1905_v33  ;;  %v1899_v37 = vld [vmem:[#allocation7 + $0xb10] sm:$0xff]  ;;  %2228 = vmatpush.msra.mxu0 %v1611_v34  ;;  %v1893_v41 = vld [vmem:[#allocation7 + $0xae0] sm:$0xff] }
  0x23   :  { %2248 = vmatpush.msra.mxu1 %v1707_v35  ;;  %2268 = vmatpush.msra.mxu2 %v1803_v36  ;;  %v1599_v42 = vld [vmem:[#allocation7 + $0x1b0] sm:$0xff]  ;;  %v1593_v46 = vld [vmem:[#allocation7 + $0x180] sm:$0xff] }
  0x24   :  { %2288 = vmatpush.msra.mxu3 %v1899_v37  ;;  %2229 = vmatpush.msra.mxu0 %v1605_v38  ;;  %v1695_v43 = vld [vmem:[#allocation7 + $0x4b0] sm:$0xff]  ;;  %v1689_v47 = vld [vmem:[#allocation7 + $0x480] sm:$0xff] }
  0x25   :  { %2249 = vmatpush.msra.mxu1 %v1701_v39  ;;  %v1791_v44 = vld [vmem:[#allocation7 + $0x7b0] sm:$0xff]  ;;  %2269 = vmatpush.msra.mxu2 %v1797_v40  ;;  %v1785_v48 = vld [vmem:[#allocation7 + $0x780] sm:$0xff] }
  0x26   :  { %623 = vperm.xlu1 %3856, %v600_v27   ;;  %148 = vperm.xlu2 %3857, %v134_v9   ;;  %v1887_v45 = vld [vmem:[#allocation7 + $0xab0] sm:$0xff]  ;;  %v1881_v49 = vld [vmem:[#allocation7 + $0xa80] sm:$0xff] }
  0x27   :  { %620 = vperm.xlu0 %3855, %v599_v28   ;;  %2289 = vmatpush.msra.mxu3 %v1893_v41  ;;  %v1587_v50 = vld [vmem:[#allocation7 + $0x150] sm:$0xff]  ;;  %v1581_v54 = vld [vmem:[#allocation7 + $0x120] sm:$0xff] }
  0x28   :  { %2230 = vmatpush.msra.mxu0 %v1599_v42  ;;  %2250 = vmatpush.msra.mxu1 %v1695_v43  ;;  %v1683_v51 = vld [vmem:[#allocation7 + $0x450] sm:$0xff]  ;;  %v1677_v55 = vld [vmem:[#allocation7 + $0x420] sm:$0xff] }
  0x29   :  { %2270 = vmatpush.msra.mxu2 %v1791_v44  ;;  %2290 = vmatpush.msra.mxu3 %v1887_v45  ;;  %v1779_v52 = vld [vmem:[#allocation7 + $0x750] sm:$0xff]  ;;  %v1773_v56 = vld [vmem:[#allocation7 + $0x720] sm:$0xff]  ;;  %v116_v44 = vld [vmem:[#allocation2 + $0xf8] sm:$0xff] }
  0x2a   :  { %2231 = vmatpush.msra.mxu0 %v1593_v46  ;;  %2251 = vmatpush.msra.mxu1 %v1689_v47  ;;  %v1875_v53 = vld [vmem:[#allocation7 + $0xa50] sm:$0xff]  ;;  %v1869_v57 = vld [vmem:[#allocation7 + $0xa20] sm:$0xff]  ;;  %v118_v46 = vld [vmem:[#allocation2 + $0x108] sm:$0xff] }
  0x2b   :  { %2271 = vmatpush.msra.mxu2 %v1785_v48  ;;  %2291 = vmatpush.msra.mxu3 %v1881_v49  ;;  %v1575_v58 = vld [vmem:[#allocation7 + $0xf0] sm:$0xff]  ;;  %v1569_v62 = vld [vmem:[#allocation7 + $0xc0] sm:$0xff] }
  0x2c   :  { %2232 = vmatpush.msra.mxu0 %v1587_v50  ;;  %2252 = vmatpush.msra.mxu1 %v1683_v51  ;;  %v1671_v59 = vld [vmem:[#allocation7 + $0x3f0] sm:$0xff]  ;;  %v1665_v63 = vld [vmem:[#allocation7 + $0x3c0] sm:$0xff]  ;;  %v1636_v50 = vld [vmem:[#allocation7 + $0x2d8] sm:$0xff] }
  0x2d   :  { %2272 = vmatpush.msra.mxu2 %v1779_v52  ;;  %2292 = vmatpush.msra.mxu3 %v1875_v53  ;;  %v1767_v60 = vld [vmem:[#allocation7 + $0x6f0] sm:$0xff]  ;;  %v1761_v0 = vld [vmem:[#allocation7 + $0x6c0] sm:$0xff]  ;;  %v1732_v51 = vld [vmem:[#allocation7 + $0x5d8] sm:$0xff] }
  0x2e   :  { %158 = vperm.xlu2 %3857, %v136_v8   ;;  %143 = vperm.xlu1 %3856, %v133_v3   ;;  %v1863_v61 = vld [vmem:[#allocation7 + $0x9f0] sm:$0xff]  ;;  %v1557_v6 = vld [vmem:[#allocation7 + $0x60] sm:$0xff] }
  0x2f   :  { %153 = vperm.xlu0 %3855, %v135_v2   ;;  %2233 = vmatpush.msra.mxu0 %v1581_v54  ;;  %v1563_v2 = vld [vmem:[#allocation7 + $0x90] sm:$0xff]  ;;  %v1749_v8 = vld [vmem:[#allocation7 + $0x660] sm:$0xff] }
  0x30   :  { %2253 = vmatpush.msra.mxu1 %v1677_v55  ;;  %2273 = vmatpush.msra.mxu2 %v1773_v56  ;;  %v1659_v3 = vld [vmem:[#allocation7 + $0x390] sm:$0xff]  ;;  %v1845_v9 = vld [vmem:[#allocation7 + $0x960] sm:$0xff]  ;;  %v1630_v56 = vld [vmem:[#allocation7 + $0x2a8] sm:$0xff] }
  0x31   :  { %2293 = vmatpush.msra.mxu3 %v1869_v57  ;;  %2234 = vmatpush.msra.mxu0 %v1575_v58  ;;  %v1755_v4 = vld [vmem:[#allocation7 + $0x690] sm:$0xff]  ;;  %v113_v19 = vld [vmem:[#allocation2 + $0xe0] sm:$0xff] }
  0x32   :  { %2254 = vmatpush.msra.mxu1 %v1671_v59  ;;  %2274 = vmatpush.msra.mxu2 %v1767_v60  ;;  %v1851_v5 = vld [vmem:[#allocation7 + $0x990] sm:$0xff]  ;;  %v1545_v38 = vld [vmem:[#allocation7] sm:$0xff]  ;;  %v120_v60 = vld [vmem:[#allocation2 + $0x118] sm:$0xff] }
  0x33   :  { %2294 = vmatpush.msra.mxu3 %v1863_v61  ;;  %2235 = vmatpush.msra.mxu0 %v1569_v62  ;;  %v1551_v10 = vld [vmem:[#allocation7 + $0x30] sm:$0xff]  ;;  %v1641_v39 = vld [vmem:[#allocation7 + $0x300] sm:$0xff]  ;;  %v1726_v61 = vld [vmem:[#allocation7 + $0x5a8] sm:$0xff] }
  0x34   :  { %2255 = vmatpush.msra.mxu1 %v1665_v63  ;;  %2275 = vmatpush.msra.mxu2 %v1761_v0  ;;  %v1647_v11 = vld [vmem:[#allocation7 + $0x330] sm:$0xff]  ;;  %v1737_v40 = vld [vmem:[#allocation7 + $0x600] sm:$0xff] }
  0x35   :  { %2236 = vmatpush.msra.mxu0 %v1563_v2  ;;  %v1743_v12 = vld [vmem:[#allocation7 + $0x630] sm:$0xff]  ;;  %v117_v45 = vld [vmem:[#allocation2 + $0x100] sm:$0xff] }
  0x36   :  { %173 = vperm.xlu2 %3857, %v139_v14   ;;  %168 = vperm.xlu1 %3856, %v138_v7   ;;  %v1653_v7 = vld [vmem:[#allocation7 + $0x360] sm:$0xff]  ;;  %v111_v16 = vld [vmem:[#allocation2 + $0xd0] sm:$0xff] }
  0x37   :  { %163 = vperm.xlu0 %3855, %v137_v1   ;;  %v1857_v1 = vld [vmem:[#allocation7 + $0x9c0] sm:$0xff]  ;;  %2256 = vmatpush.msra.mxu1 %v1659_v3  ;;  %v115_v37 = vld [vmem:[#allocation2 + $0xf0] sm:$0xff] }
  0x38   :  { %2295 = vmatpush.msra.mxu3 %v1857_v1  ;;  %2276 = vmatpush.msra.mxu2 %v1755_v4  ;;  %v109_v14 = vld [vmem:[#allocation2 + $0xc0] sm:$0xff]  ;;  %v2019_v48 = vld [vmem:[#allocation7 + $0xed0] sm:$0xff] }
  0x39   :  { %2237 = vmatpush.msra.mxu0 %v1557_v6  ;;  %2257 = vmatpush.msra.mxu1 %v1653_v7  ;;  %v1833_v47 = vld [vmem:[#allocation7 + $0x900] sm:$0xff]  ;;  %v2115_v49 = vld [vmem:[#allocation7 + $0x11d0] sm:$0xff] }
  0x3a   :  { %2296 = vmatpush.msra.mxu3 %v1851_v5  ;;  %2277 = vmatpush.msra.mxu2 %v1749_v8  ;;  %v2013_v54 = vld [vmem:[#allocation7 + $0xea0] sm:$0xff]  ;;  %v119_v59 = vld [vmem:[#allocation2 + $0x110] sm:$0xff]  ;;  %v1624_v8 = vld [vmem:[#allocation7 + $0x278] sm:$0xff] }
  0x3b   :  { %2238 = vmatpush.msra.mxu0 %v1551_v10  ;;  %2258 = vmatpush.msra.mxu1 %v1647_v11  ;;  %v2109_v55 = vld [vmem:[#allocation7 + $0x11a0] sm:$0xff]  ;;  %v2007_v1 = vld [vmem:[#allocation7 + $0xe70] sm:$0xff] }
  0x3c   :  { %2297 = vmatpush.msra.mxu3 %v1845_v9  ;;  %2278 = vmatpush.msra.mxu2 %v1743_v12  ;;  %v2103_v2 = vld [vmem:[#allocation7 + $0x1170] sm:$0xff]  ;;  %v1720_v9 = vld [vmem:[#allocation7 + $0x578] sm:$0xff]  ;;  %v2001_v10 = vld [vmem:[#allocation7 + $0xe40] sm:$0xff] }
  0x3d   :  { %2239 = vmatpush.msra.mxu0 %v1545_v38  ;;  %2259 = vmatpush.msra.mxu1 %v1641_v39 }
  0x3e   :  { %520 = vperm.xlu1 %3856, %v517_v29   ;;  %2279 = vmatpush.msra.mxu2 %v1737_v40 }
  0x3f   :  { %178 = vperm.xlu0 %3855, %v140_v13   ;;  %v1839_v13 = vld [vmem:[#allocation7 + $0x930] sm:$0xff]  ;;  %2304 = vmatpush.msrb.mxu0 %v2019_v48 }
  0x40   :  { %2298 = vmatpush.msra.mxu3 %v1839_v13  ;;  %2324 = vmatpush.msrb.mxu1 %v2115_v49 }
  0x41   :  { %2344 = vmatpush.msrb.mxu2 %v1636_v50  ;;  %2305 = vmatpush.msrb.mxu0 %v2013_v54 }
  0x42   :  { %2299 = vmatpush.msra.mxu3 %v1833_v47  ;;  %2325 = vmatpush.msrb.mxu1 %v2109_v55 }
  0x43   :  { %2345 = vmatpush.msrb.mxu2 %v1630_v56  ;;  %2306 = vmatpush.msrb.mxu0 %v2007_v1 }
  0x44   :  { %2364 = vmatpush.msrb.mxu3 %v1732_v51  ;;  %2326 = vmatpush.msrb.mxu1 %v2103_v2 }
  0x45   :  { %2346 = vmatpush.msrb.mxu2 %v1624_v8  ;;  %2307 = vmatpush.msrb.mxu0 %v2001_v10 }
  0x46   :  { %2365 = vmatpush.msrb.mxu3 %v1726_v61 }
  0x48   :  { %2366 = vmatpush.msrb.mxu3 %v1720_v9 }
  0x70   :  { %v615_v17 = vpop.permute.xlu2 %614 }
  0x71   :  { %vm629_vm8 = vcmp.eq.s32.totalorder %v615_v17, 1 }
  0x72   :  { %v657_v21 = vsel %vm629_vm8, -1e+09, %v109_v14  ;;  %v658_v22 = vsel %vm629_vm8, -1e+09, %v110_v15  ;;  %v659_v23 = vsel %vm629_vm8, -1e+09, %v111_v16 }
  0x73   :  { %v660_v24 = vsel %vm629_vm8, -1e+09, %v112_v18  ;;  %v661_v25 = vsel %vm629_vm8, -1e+09, %v113_v19  ;;  %v662_v26 = vsel %vm629_vm8, -1e+09, %v114_v20 }
  0x74   :  { %v825_v27 = vrot.slane %v657_v21, 4  ;;  %v831_v28 = vrot.slane %v658_v22, 4  ;;  %v837_v29 = vrot.slane %v659_v23, 4  ;;  %v843_v30 = vrot.slane %v660_v24, 4  ;;  %v2097_v15 = vld [vmem:[#allocation7 + $0x1140] sm:$0xff]  ;;  %v1618_v16 = vld [vmem:[#allocation7 + $0x248] sm:$0xff] }
  0x75   :  { %v849_v31 = vrot.slane %v661_v25, 4  ;;  %v855_v32 = vrot.slane %v662_v26, 4  ;;  %2327 = vmatpush.msrb.mxu1 %v2097_v15  ;;  %2347 = vmatpush.msrb.mxu2 %v1618_v16 }
  0x76   :  { %v826_v33 = vmax.f32 %v657_v21, %v825_v27  ;;  %v832_v34 = vmax.f32 %v658_v22, %v831_v28  ;;  %v838_v35 = vmax.f32 %v659_v23, %v837_v29  ;;  %v844_v36 = vmax.f32 %v660_v24, %v843_v30  ;;  %v1714_v21 = vld [vmem:[#allocation7 + $0x548] sm:$0xff] }
  0x77   :  { %v850_v41 = vmax.f32 %v661_v25, %v849_v31  ;;  %v856_v42 = vmax.f32 %v662_v26, %v855_v32  ;;  %2367 = vmatpush.msrb.mxu3 %v1714_v21 }
  0x78   :  { %v618_v43 = vpop.permute.xlu2 %617  ;;  %v827_v52 = vrot.slane %v826_v33, 2  ;;  %v833_v53 = vrot.slane %v832_v34, 2  ;;  %v839_v57 = vrot.slane %v838_v35, 2  ;;  %v845_v58 = vrot.slane %v844_v36, 2 }
  0x79   :  { %vm630_vm9 = vcmp.eq.s32.totalorder %v618_v43, 1  ;;  %v851_v62 = vrot.slane %v850_v41, 2  ;;  %v857_v63 = vrot.slane %v856_v42, 2 }
  0x7a   :  { %v663_v0 = vsel %vm630_vm9, -1e+09, %v115_v37  ;;  %v664_v3 = vsel %vm630_vm9, -1e+09, %v116_v44  ;;  %v665_v4 = vsel %vm630_vm9, -1e+09, %v117_v45  ;;  %v828_v6 = vmax.f32 %v826_v33, %v827_v52 }
  0x7b   :  { %v666_v5 = vsel %vm630_vm9, -1e+09, %v118_v46  ;;  %v834_v7 = vmax.f32 %v832_v34, %v833_v53  ;;  %v840_v11 = vmax.f32 %v838_v35, %v839_v57  ;;  %v846_v12 = vmax.f32 %v844_v36, %v845_v58  ;;  %v97_v52 = vld [vmem:[#allocation2 + $0x60] sm:$0xff]  ;;  %v98_v53 = vld [vmem:[#allocation2 + $0x68] sm:$0xff]  ;;  %v99_v57 = vld [vmem:[#allocation2 + $0x70] sm:$0xff] }
  0x7c   :  { %v667_v13 = vsel %vm630_vm9, -1e+09, %v119_v59  ;;  %v668_v14 = vsel %vm630_vm9, -1e+09, %v120_v60  ;;  %v861_v17 = vrot.slane %v663_v0, 4  ;;  %v867_v18 = vrot.slane %v664_v3, 4 }
  0x7d   :  { %v873_v19 = vrot.slane %v665_v4, 4  ;;  %v879_v20 = vrot.slane %v666_v5, 4  ;;  %v852_v22 = vmax.f32 %v850_v41, %v851_v62  ;;  %v858_v23 = vmax.f32 %v856_v42, %v857_v63  ;;  %v100_v58 = vld [vmem:[#allocation2 + $0x78] sm:$0xff]  ;;  %v101_v59 = vld [vmem:[#allocation2 + $0x80] sm:$0xff] }
  0x7e   :  { %v885_v24 = vrot.slane %v667_v13, 4  ;;  %v891_v25 = vrot.slane %v668_v14, 4  ;;  %v862_v26 = vmax.f32 %v663_v0, %v861_v17  ;;  %v868_v27 = vmax.f32 %v664_v3, %v867_v18  ;;  %v102_v0 = vld [vmem:[#allocation2 + $0x88] sm:$0xff] }
  0x7f   :  { %v874_v28 = vmax.f32 %v665_v4, %v873_v19  ;;  %v880_v29 = vmax.f32 %v666_v5, %v879_v20  ;;  %v829_v30 = vrot.slane %v828_v6, 1  ;;  %v835_v31 = vrot.slane %v834_v7, 1  ;;  %v4110_v19 = vld [vmem:[#allocation2 + $0x90] sm:$0xff] }
  0x80   :  { %v886_v32 = vmax.f32 %v667_v13, %v885_v24  ;;  %v892_v33 = vmax.f32 %v668_v14, %v891_v25  ;;  %v863_v34 = vrot.slane %v862_v26, 2  ;;  %v869_v35 = vrot.slane %v868_v27, 2  ;;  %v4094_v38 = vpop.permute.xlu2 %148 }
  0x81   :  { %v875_v36 = vrot.slane %v874_v28, 2  ;;  %v881_v37 = vrot.slane %v880_v29, 2  ;;  %v841_v39 = vrot.slane %v840_v11, 1  ;;  %v847_v40 = vrot.slane %v846_v12, 1 }
  0x82   :  { %v853_v41 = vrot.slane %v852_v22, 1  ;;  %v859_v42 = vrot.slane %v858_v23, 1  ;;  %v864_v43 = vmax.f32 %v862_v26, %v863_v34  ;;  %v870_v44 = vmax.f32 %v868_v27, %v869_v35 }
  0x83   :  { %v887_v45 = vrot.slane %v886_v32, 2  ;;  %v876_v46 = vmax.f32 %v874_v28, %v875_v36  ;;  %v882_v47 = vmax.f32 %v880_v29, %v881_v37  ;;  %v4096_v48 = vmax.f32 %v828_v6, %v829_v30  ;;  %v4114_v28 = vld [vmem:[#allocation2 + $0x8] sm:$0xff]  ;;  %v4124_v36 = vld [vmem:[#allocation2 + $0x10] sm:$0xff]  ;;  %v4126_v37 = vld [vmem:[#allocation2 + $0x18] sm:$0xff] }
  0x84   :  { %v4098_v49 = vmax.f32 %v834_v7, %v835_v31  ;;  %v893_v50 = vrot.slane %v892_v33, 2  ;;  %v4100_v54 = vmax.f32 %v840_v11, %v841_v39  ;;  %v4102_v55 = vmax.f32 %v846_v12, %v847_v40 }
  0x85   :  { %4984 = vst [vmem:[#allocation15_spill] sm:$0xff] %v4096_v48  ;;  %v4104_v56 = vmax.f32 %v852_v22, %v853_v41  ;;  %v4106_v60 = vmax.f32 %v858_v23, %v859_v42  ;;  %v865_v61 = vrot.slane %v864_v43, 1  ;;  %v871_v62 = vrot.slane %v870_v44, 1  ;;  %v4112_v23 = vld [vmem:[#allocation2] sm:$0xff] }
  0x86   :  { %4985 = vst [vmem:[#allocation16_spill] sm:$0xff] %v4098_v49  ;;  %v888_v63 = vmax.f32 %v886_v32, %v887_v45  ;;  %v877_v1 = vrot.slane %v876_v46, 1  ;;  %v883_v2 = vrot.slane %v882_v47, 1  ;;  %v894_v5 = vmax.f32 %v892_v33, %v893_v50  ;;  %v1971_v49 = vld [vmem:[#allocation7 + $0xd50] sm:$0xff] }
  0x87   :  { %4986 = vst [vmem:[#allocation17_spill] sm:$0xff] %v4100_v54  ;;  %v4116_v29 = vmax.f32 %v864_v43, %v865_v61  ;;  %v4122_v33 = vmax.f32 %v870_v44, %v871_v62  ;;  %v4134_v43 = vld [vmem:[#allocation2 + $0x20] sm:$0xff] }
  0x88   :  { %v609_v51 = vpop.permute.xlu1 %608  ;;  %4987 = vst [vmem:[#allocation18_spill] sm:$0xff] %v4102_v55  ;;  %v889_v14 = vrot.slane %v888_v63, 1  ;;  %v4108_v18 = vpop.permute.xlu2 %158  ;;  %v895_v24 = vrot.slane %v894_v5, 1  ;;  %v4130_v40 = vmax.f32 %v876_v46, %v877_v1  ;;  %v4132_v41 = vmax.f32 %v882_v47, %v883_v2 }
  0x89   :  { %4988 = vst [vmem:[#allocation19_spill] sm:$0xff] %v4104_v56  ;;  %vm627_vm10 = vcmp.eq.s32.totalorder %v609_v51, 1  ;;  %v603_v9 = vpop.permute.xlu0 %602  ;;  %v4120_v32 = vmul.f32 %v4108_v18, %v4110_v19  ;;  %v4232_v56 = vld [vmem:[#allocation2 + $0x140] sm:$0xff] }
  0x8a   :  { %4989 = vst [vmem:[#allocation20_spill] sm:$0xff] %v4106_v60  ;;  %v645_v3 = vsel %vm627_vm10, -1e+09, %v97_v52  ;;  %v646_v4 = vsel %vm627_vm10, -1e+09, %v98_v53  ;;  %vm625_vm11 = vcmp.eq.s32.totalorder %v603_v9, 1  ;;  %v4138_v45 = vmax.f32 %v888_v63, %v889_v14 }
  0x8b   :  { %v647_v6 = vsel %vm627_vm10, -1e+09, %v99_v57  ;;  %v648_v7 = vsel %vm627_vm10, -1e+09, %v100_v58  ;;  %v649_v8 = vsel %vm627_vm10, -1e+09, %v101_v59  ;;  %v4144_v58 = vmax.f32 %v894_v5, %v895_v24 }
  0x8c   :  { %v650_v10 = vsel %vm627_vm10, -1e+09, %v102_v0  ;;  %v753_v11 = vrot.slane %v645_v3, 4  ;;  %v759_v12 = vrot.slane %v646_v4, 4  ;;  %v765_v13 = vrot.slane %v647_v6, 4  ;;  %4990 = vst [vmem:[#allocation21_spill] sm:$0xff] %v4116_v29 }
  0x8d   :  { %v771_v15 = vrot.slane %v648_v7, 4  ;;  %v777_v16 = vrot.slane %v649_v8, 4  ;;  %v783_v17 = vrot.slane %v650_v10, 4  ;;  %4991 = vst [vmem:[#allocation22_spill] sm:$0xff] %v4122_v33  ;;  %v633_v39 = vsel %vm625_vm11, -1e+09, %v4112_v23 }
  0x8e   :  { %v754_v20 = vmax.f32 %v645_v3, %v753_v11  ;;  %v760_v21 = vmax.f32 %v646_v4, %v759_v12  ;;  %v766_v22 = vmax.f32 %v647_v6, %v765_v13  ;;  %4992 = vst [vmem:[#allocation23_spill] sm:$0xff] %v4130_v40  ;;  %v634_v44 = vsel %vm625_vm11, -1e+09, %v4114_v28  ;;  %v4140_v53 = vld [vmem:[#allocation2 + $0x28] sm:$0xff]  ;;  %v4142_v57 = vld [vmem:[#allocation2 + $0x98] sm:$0xff] }
  0x8f   :  { %v772_v25 = vmax.f32 %v648_v7, %v771_v15  ;;  %v778_v26 = vmax.f32 %v649_v8, %v777_v16  ;;  %v784_v27 = vmax.f32 %v650_v10, %v783_v17  ;;  %4993 = vst [vmem:[#allocation24_spill] sm:$0xff] %v4132_v41  ;;  %v635_v46 = vsel %vm625_vm11, -1e+09, %v4124_v36  ;;  %v4158_v9 = vld [vmem:[#allocation2 + $0xa8] sm:$0xff]  ;;  %v4260_v41 = vld [vmem:[#allocation2 + $0x38] sm:$0xff] }
  0x90   :  { %v755_v30 = vrot.slane %v754_v20, 2  ;;  %v761_v31 = vrot.slane %v760_v21, 2  ;;  %v767_v34 = vrot.slane %v766_v22, 2  ;;  %4994 = vst [vmem:[#allocation25_spill] sm:$0xff] %v4138_v45  ;;  %v636_v47 = vsel %vm625_vm11, -1e+09, %v4126_v37 }
  0x91   :  { %v773_v35 = vrot.slane %v772_v25, 2  ;;  %v779_v42 = vrot.slane %v778_v26, 2  ;;  %v785_v52 = vrot.slane %v784_v27, 2  ;;  %4995 = vst [vmem:[#allocation26_spill] sm:$0xff] %v4144_v58  ;;  %v681_v59 = vrot.slane %v633_v39, 4 }
  0x92   :  { %v756_v50 = vmax.f32 %v754_v20, %v755_v30  ;;  %v762_v51 = vmax.f32 %v760_v21, %v761_v31  ;;  %v768_v61 = vmax.f32 %v766_v22, %v767_v34  ;;  %v637_v63 = vsel %vm625_vm11, -1e+09, %v4134_v43  ;;  %v4156_v20 = vld [vmem:[#allocation2 + $0xa0] sm:$0xff] }
  0x93   :  { %v774_v62 = vmax.f32 %v772_v25, %v773_v35  ;;  %v687_v0 = vrot.slane %v634_v44, 4  ;;  %v780_v1 = vmax.f32 %v778_v26, %v779_v42  ;;  %v638_v2 = vsel %vm625_vm11, -1e+09, %v4140_v53 }
  0x94   :  { %v682_v3 = vmax.f32 %v633_v39, %v681_v59  ;;  %v200_v4 = vmul.f32 %v4108_v18, %v4142_v57  ;;  %v757_v5 = vrot.slane %v756_v50, 1  ;;  %v763_v6 = vrot.slane %v762_v51, 1  ;;  %v107_v59 = vld [vmem:[#allocation2 + $0xb0] sm:$0xff] }
  0x95   :  { %v786_v7 = vmax.f32 %v784_v27, %v785_v52  ;;  %v688_v8 = vmax.f32 %v634_v44, %v687_v0  ;;  %v693_v11 = vrot.slane %v635_v46, 4  ;;  %v699_v12 = vrot.slane %v636_v47, 4  ;;  %v108_v0 = vld [vmem:[#allocation2 + $0xb8] sm:$0xff] }
  0x96   :  { %v683_v10 = vrot.slane %v682_v3, 2  ;;  %v705_v13 = vrot.slane %v637_v63, 4  ;;  %v769_v14 = vrot.slane %v768_v61, 1  ;;  %v775_v15 = vrot.slane %v774_v62, 1 }
  0x97   :  { %v689_v16 = vrot.slane %v688_v8, 2  ;;  %v711_v17 = vrot.slane %v638_v2, 4  ;;  %v694_v22 = vmax.f32 %v635_v46, %v693_v11  ;;  %v700_v24 = vmax.f32 %v636_v47, %v699_v12 }
  0x98   :  { %v684_v21 = vmax.f32 %v682_v3, %v683_v10  ;;  %v706_v25 = vmax.f32 %v637_v63, %v705_v13  ;;  %v4160_v26 = vmax.f32 %v756_v50, %v757_v5  ;;  %v781_v27 = vrot.slane %v780_v1, 1 }
  0x99   :  { %v787_v30 = vrot.slane %v786_v7, 1  ;;  %v712_v31 = vmax.f32 %v638_v2, %v711_v17  ;;  %v690_v34 = vmax.f32 %v688_v8, %v689_v16  ;;  %v695_v35 = vrot.slane %v694_v22, 2 }
  0x9a   :  { %v201_v39 = vmul.f32 %v4108_v18, %v4156_v20  ;;  %v202_v42 = vmul.f32 %v4108_v18, %v4158_v9  ;;  %v701_v44 = vrot.slane %v700_v24, 2  ;;  %v707_v52 = vrot.slane %v706_v25, 2 }
  0x9b   :  { %v337_v46 = vrot.slane %v4120_v32, 4  ;;  %v343_v47 = vrot.slane %v200_v4, 4  ;;  %v4167_v50 = vmax.f32 %v762_v51, %v763_v6  ;;  %v4169_v63 = vmax.f32 %v768_v61, %v769_v14  ;;  %v612_v51 = vpop.permute.xlu1 %611 }
  0x9c   :  { %v4171_v2 = vmax.f32 %v774_v62, %v775_v15  ;;  %v685_v3 = vrot.slane %v684_v21, 1  ;;  %v696_v5 = vmax.f32 %v694_v22, %v695_v35  ;;  %v713_v8 = vrot.slane %v712_v31, 2 }
  0x9d   :  { %4996 = vst [vmem:[#allocation27_spill] sm:$0xff] %v4167_v50  ;;  %v338_v10 = vadd.f32 %v337_v46, %v4120_v32  ;;  %v344_v11 = vadd.f32 %v343_v47, %v200_v4  ;;  %v691_v12 = vrot.slane %v690_v34, 1  ;;  %v203_v13 = vmul.f32 %v4108_v18, %v107_v59 }
  0x9e   :  { %4997 = vst [vmem:[#allocation28_spill] sm:$0xff] %v4169_v63  ;;  %v204_v16 = vmul.f32 %v4108_v18, %v108_v0  ;;  %v349_v17 = vrot.slane %v201_v39, 4  ;;  %v702_v58 = vmax.f32 %v700_v24, %v701_v44  ;;  %v708_v60 = vmax.f32 %v706_v25, %v707_v52  ;;  %v1965_v63 = vld [vmem:[#allocation7 + $0xd20] sm:$0xff] }
  0x9f   :  { %4998 = vst [vmem:[#allocation29_spill] sm:$0xff] %v4171_v2  ;;  %v339_v6 = vrot.slane %v338_v10, 2  ;;  %v355_v61 = vrot.slane %v202_v42, 4  ;;  %v4176_v14 = vmax.f32 %v780_v1, %v781_v27  ;;  %v4178_v62 = vmax.f32 %v786_v7, %v787_v30 }
  0xa0   :  { %v4180_v15 = vmax.f32 %v684_v21, %v685_v3  ;;  %v350_v22 = vadd.f32 %v349_v17, %v201_v39  ;;  %v697_v32 = vrot.slane %v696_v5, 1  ;;  %v714_v4 = vmax.f32 %v712_v31, %v713_v8 }
  0xa1   :  { %4999 = vst [vmem:[#allocation30_spill] sm:$0xff] %v4176_v14  ;;  %v345_v35 = vrot.slane %v344_v11, 2  ;;  %v356_v46 = vadd.f32 %v355_v61, %v202_v42  ;;  %v4182_v47 = vmax.f32 %v690_v34, %v691_v12  ;;  %v361_v18 = vrot.slane %v203_v13, 4 }
  0xa2   :  { %5000 = vst [vmem:[#allocation31_spill] sm:$0xff] %v4178_v62  ;;  %v367_v45 = vrot.slane %v204_v16, 4  ;;  %vm628_vm12 = vcmp.eq.s32.totalorder %v612_v51, 1  ;;  %v703_v24 = vrot.slane %v702_v58, 1  ;;  %v709_v25 = vrot.slane %v708_v60, 1  ;;  %v4210_v51 = vld [vmem:[#allocation2 + $0x120] sm:$0xff] }
  0xa3   :  { %v340_v44 = vadd.f32 %v339_v6, %v338_v10  ;;  %v351_v52 = vrot.slane %v350_v22, 2  ;;  %v357_v1 = vrot.slane %v356_v46, 2  ;;  %v362_v27 = vadd.f32 %v361_v18, %v203_v13  ;;  %v1995_v18 = vld [vmem:[#allocation7 + $0xe10] sm:$0xff] }
  0xa4   :  { %v368_v7 = vadd.f32 %v367_v45, %v204_v16  ;;  %v651_v21 = vsel %vm628_vm12, -1e+09, %v4110_v19  ;;  %v4186_v30 = vmax.f32 %v696_v5, %v697_v32  ;;  %v715_v31 = vrot.slane %v714_v4, 1  ;;  %2308 = vmatpush.msrb.mxu0 %v1995_v18 }
  0xa5   :  { %v346_v39 = vadd.f32 %v345_v35, %v344_v11  ;;  %v652_v34 = vsel %vm628_vm12, -1e+09, %v4142_v57  ;;  %v363_v42 = vrot.slane %v362_v27, 2  ;;  %v653_v8 = vsel %vm628_vm12, -1e+09, %v4156_v20 }
  0xa6   :  { %v369_v3 = vrot.slane %v368_v7, 2  ;;  %v654_v10 = vsel %vm628_vm12, -1e+09, %v4158_v9  ;;  %v4194_v12 = vmax.f32 %v702_v58, %v703_v24  ;;  %v341_v45 = vrot.slane %v340_v44, 1  ;;  %v1612_v24 = vld [vmem:[#allocation7 + $0x218] sm:$0xff] }
  0xa7   :  { %v655_v19 = vsel %vm628_vm12, -1e+09, %v107_v59  ;;  %v789_v5 = vrot.slane %v651_v21, 4  ;;  %v4197_v13 = vadd.f32 %v351_v52, %v350_v22  ;;  %v4199_v11 = vadd.f32 %v357_v1, %v356_v46  ;;  %v2091_v59 = vld [vmem:[#allocation7 + $0x1110] sm:$0xff]  ;;  %v4212_v1 = vld [vmem:[#allocation2 + $0x128] sm:$0xff]  ;;  %2348 = vmatpush.msrb.mxu2 %v1612_v24 }
  0xa8   :  { %v656_v57 = vsel %vm628_vm12, -1e+09, %v108_v0  ;;  %v795_v16 = vrot.slane %v652_v34, 4  ;;  %v4202_v17 = vadd.f32 %v363_v42, %v362_v27  ;;  %v801_v20 = vrot.slane %v653_v8, 4  ;;  %2328 = vmatpush.msrb.mxu1 %v2091_v59  ;;  %v1708_v27 = vld [vmem:[#allocation7 + $0x518] sm:$0xff]  ;;  %v1983_v24 = vld [vmem:[#allocation7 + $0xdb0] sm:$0xff] }
  0xa9   :  { %v790_v6 = vmax.f32 %v651_v21, %v789_v5  ;;  %v807_v61 = vrot.slane %v654_v10, 4  ;;  %v347_v32 = vrot.slane %v346_v39, 1  ;;  %v4204_v9 = vadd.f32 %v369_v3, %v368_v7  ;;  %v174_v3 = vpop.permute.xlu2 %173  ;;  %2368 = vmatpush.msrb.mxu3 %v1708_v27  ;;  %v1606_v5 = vld [vmem:[#allocation7 + $0x1e8] sm:$0xff]  ;;  %v2079_v27 = vld [vmem:[#allocation7 + $0x10b0] sm:$0xff] }
  0xaa   :  { %v796_v58 = vmax.f32 %v652_v34, %v795_v16  ;;  %v813_v35 = vrot.slane %v655_v19, 4  ;;  %v4206_v52 = vmax.f32 %v653_v8, %v801_v20  ;;  %v819_v0 = vrot.slane %v656_v57, 4  ;;  %v1989_v8 = vld [vmem:[#allocation7 + $0xde0] sm:$0xff]  ;;  %2349 = vmatpush.msrb.mxu2 %v1606_v5 }
  0xab   :  { %v791_v22 = vrot.slane %v790_v6, 2  ;;  %v4208_v46 = vmax.f32 %v654_v10, %v807_v61  ;;  %v4214_v7 = vmax.f32 %v708_v60, %v709_v25  ;;  %v4216_v21 = vmax.f32 %v714_v4, %v715_v31  ;;  %v2085_v10 = vld [vmem:[#allocation7 + $0x10e0] sm:$0xff]  ;;  %v4223_v60 = vld [vmem:[#allocation2 + $0x130] sm:$0xff]  ;;  %v4225_v4 = vld [vmem:[#allocation2 + $0x138] sm:$0xff]  ;;  %2309 = vmatpush.msrb.mxu0 %v1989_v8 }
  0xac   :  { %v4218_v34 = vadd.f32 %v341_v45, %v340_v44  ;;  %v797_v42 = vrot.slane %v796_v58, 2  ;;  %v353_v16 = vrot.slane %v4197_v13, 1  ;;  %v359_v20 = vrot.slane %v4199_v11, 1  ;;  %2329 = vmatpush.msrb.mxu1 %v2085_v10  ;;  %v1702_v25 = vld [vmem:[#allocation7 + $0x4e8] sm:$0xff] }
  0xad   :  { %v365_v61 = vrot.slane %v4202_v17, 1  ;;  %v814_v18 = vmax.f32 %v655_v19, %v813_v35  ;;  %v4227_v44 = vadd.f32 %v347_v32, %v346_v39  ;;  %v371_v31 = vrot.slane %v4204_v9, 1  ;;  %2369 = vmatpush.msrb.mxu3 %v1702_v25  ;;  %v4234_v8 = vld [vmem:[#allocation2 + $0x148] sm:$0xff]  ;;  %2310 = vmatpush.msrb.mxu0 %v1983_v24 }
  0xae   :  { %5001 = vst [vmem:[#allocation32_spill] sm:$0xff] %v4218_v34  ;;  %v792_v45 = vmax.f32 %v790_v6, %v791_v22  ;;  %v803_v59 = vrot.slane %v4206_v52, 2  ;;  %v1600_v34 = vld [vmem:[#allocation7 + $0x1b8] sm:$0xff]  ;;  %v798_v19 = vmax.f32 %v796_v58, %v797_v42  ;;  %v809_v35 = vrot.slane %v4208_v46, 2  ;;  %2330 = vmatpush.msrb.mxu1 %v2079_v27  ;;  %v1977_v58 = vld [vmem:[#allocation7 + $0xd80] sm:$0xff]  ;;  %v1690_v27 = vld [vmem:[#allocation7 + $0x488] sm:$0xff] }
  0xaf   :  { %5002 = vst [vmem:[#allocation33_spill] sm:$0xff] %v4227_v44  ;;  %v820_v62 = vmax.f32 %v656_v57, %v819_v0  ;;  %v217_v39 = vmul.f32 %v174_v3, %v4210_v51  ;;  %v1696_v6 = vld [vmem:[#allocation7 + $0x4b8] sm:$0xff]  ;;  %v218_v32 = vmul.f32 %v174_v3, %v4212_v1  ;;  %v219_v22 = vmul.f32 %v174_v3, %v4223_v60  ;;  %v2073_v42 = vld [vmem:[#allocation7 + $0x1080] sm:$0xff]  ;;  %v1594_v57 = vld [vmem:[#allocation7 + $0x188] sm:$0xff] }
  0xb0   :  { %v220_v10 = vmul.f32 %v174_v3, %v4225_v4  ;;  %2350 = vmatpush.msrb.mxu2 %v1600_v34  ;;  %2370 = vmatpush.msrb.mxu3 %v1696_v6  ;;  %v4241_v0 = vadd.f32 %v353_v16, %v4197_v13  ;;  %v4244_v5 = vadd.f32 %v359_v20, %v4199_v11  ;;  %v815_v24 = vrot.slane %v814_v18, 2 }
  0xb1   :  { %v4247_v25 = vadd.f32 %v365_v61, %v4202_v17  ;;  %2311 = vmatpush.msrb.mxu0 %v1977_v58  ;;  %2331 = vmatpush.msrb.mxu1 %v2073_v42  ;;  %v4250_v44 = vadd.f32 %v371_v31, %v4204_v9  ;;  %v793_v34 = vrot.slane %v792_v45, 1  ;;  %v221_v6 = vmul.f32 %v174_v3, %v4232_v56 }
  0xb2   :  { %5003 = vst [vmem:[#allocation34_spill] sm:$0xff] %v4241_v0  ;;  %v222_v14 = vmul.f32 %v174_v3, %v4234_v8  ;;  %2351 = vmatpush.msrb.mxu2 %v1594_v57  ;;  %2371 = vmatpush.msrb.mxu3 %v1690_v27  ;;  %v804_v13 = vmax.f32 %v4206_v52, %v803_v59  ;;  %v821_v17 = vrot.slane %v820_v62, 2  ;;  %v445_v16 = vrot.slane %v217_v39, 4  ;;  %v4258_v27 = vld [vmem:[#allocation2 + $0x30] sm:$0xff] }
  0xb3   :  { %5004 = vst [vmem:[#allocation35_spill] sm:$0xff] %v4244_v5  ;;  %v810_v11 = vmax.f32 %v4208_v46, %v809_v35  ;;  %v799_v20 = vrot.slane %v798_v19, 1  ;;  %v451_v61 = vrot.slane %v218_v32, 4  ;;  %v457_v58 = vrot.slane %v219_v22, 4  ;;  %2312 = vmatpush.msrb.mxu0 %v1971_v49 }
  0xb4   :  { %5005 = vst [vmem:[#allocation36_spill] sm:$0xff] %v4247_v25  ;;  %v463_v42 = vrot.slane %v220_v10, 4  ;;  %v816_v25 = vmax.f32 %v814_v18, %v815_v24  ;;  %v446_v9 = vadd.f32 %v445_v16, %v217_v39  ;;  %v469_v31 = vrot.slane %v221_v6, 4  ;;  %v4262_v39 = vld [vmem:[#allocation2 + $0x40] sm:$0xff] }
  0xb5   :  { %5006 = vst [vmem:[#allocation37_spill] sm:$0xff] %v4250_v44  ;;  %v475_v44 = vrot.slane %v222_v14, 4  ;;  %v4256_v5 = vmax.f32 %v792_v45, %v793_v34  ;;  %v452_v0 = vadd.f32 %v451_v61, %v218_v32  ;;  %v458_v3 = vadd.f32 %v457_v58, %v219_v22  ;;  %v4266_v22 = vld [vmem:[#allocation2 + $0x48] sm:$0xff]  ;;  %v4270_v34 = vld [vmem:[#allocation2 + $0x58] sm:$0xff]  ;;  %2313 = vmatpush.msrb.mxu0 %v1965_v63 }
  0xb6   :  { %v464_v57 = vadd.f32 %v463_v42, %v220_v10  ;;  %v805_v52 = vrot.slane %v804_v13, 1  ;;  %v447_v59 = vrot.slane %v446_v9, 2  ;;  %v470_v46 = vadd.f32 %v469_v31, %v221_v6  ;;  %v4268_v10 = vld [vmem:[#allocation2 + $0x50] sm:$0xff] }
  0xb7   :  { %v476_v35 = vadd.f32 %v475_v44, %v222_v14  ;;  %v811_v55 = vrot.slane %v810_v11, 1  ;;  %v822_v40 = vmax.f32 %v820_v62, %v821_v17  ;;  %v453_v54 = vrot.slane %v452_v0, 2 }
  0xb8   :  { %v459_v18 = vrot.slane %v458_v3, 2  ;;  %v4264_v24 = vmax.f32 %v798_v19, %v799_v20  ;;  %v817_v45 = vrot.slane %v816_v25, 1  ;;  %v465_v32 = vrot.slane %v464_v57, 2 }
  0xb9   :  { %v187_v14 = vmul.f32 %v4094_v38, %v4258_v27  ;;  %v448_v44 = vadd.f32 %v447_v59, %v446_v9  ;;  %v471_v6 = vrot.slane %v470_v46, 2  ;;  %v477_v62 = vrot.slane %v476_v35, 2 }
  0xba   :  { %5007 = vst [vmem:[#allocation38_spill] sm:$0xff] %v4264_v24  ;;  %v188_v17 = vmul.f32 %v4094_v38, %v4260_v41  ;;  %v4276_v16 = vmax.f32 %v804_v13, %v805_v52  ;;  %v454_v19 = vadd.f32 %v453_v54, %v452_v0  ;;  %v4278_v20 = vadd.f32 %v459_v18, %v458_v3 }
  0xbb   :  { %v189_v61 = vmul.f32 %v4094_v38, %v4262_v39  ;;  %v4282_v58 = vmax.f32 %v810_v11, %v811_v55  ;;  %v190_v42 = vmul.f32 %v4094_v38, %v4266_v22  ;;  %v191_v9 = vmul.f32 %v4094_v38, %v4268_v10  ;;  %v4296_v55 = vpop.permute.xlu0 %605 }
  0xbc   :  { %5008 = vst [vmem:[#allocation39_spill] sm:$0xff] %v4276_v16  ;;  %v192_v31 = vmul.f32 %v4094_v38, %v4270_v34  ;;  %v4290_v59 = vmax.f32 %v816_v25, %v817_v45  ;;  %v823_v13 = vrot.slane %v822_v40, 1  ;;  %v466_v54 = vadd.f32 %v465_v32, %v464_v57  ;;  %v2067_v38 = vld [vmem:[#allocation7 + $0x1050] sm:$0xff]  ;;  %v1588_v25 = vld [vmem:[#allocation7 + $0x158] sm:$0xff] }
  0xbd   :  { %5009 = vst [vmem:[#allocation40_spill] sm:$0xff] %v4282_v58  ;;  %v265_v0 = vrot.slane %v187_v14, 4  ;;  %v449_v3 = vrot.slane %v448_v44, 1  ;;  %v4292_v52 = vadd.f32 %v471_v6, %v470_v46  ;;  %v4294_v18 = vadd.f32 %v477_v62, %v476_v35  ;;  %2332 = vmatpush.msrb.mxu1 %v2067_v38  ;;  %v1684_v46 = vld [vmem:[#allocation7 + $0x458] sm:$0xff]  ;;  %2352 = vmatpush.msrb.mxu2 %v1588_v25  ;;  %v1959_v25 = vld [vmem:[#allocation7 + $0xcf0] sm:$0xff] }
  0xbe   :  { %5010 = vst [vmem:[#allocation41_spill] sm:$0xff] %v4290_v59  ;;  %v271_v11 = vrot.slane %v188_v17, 4  ;;  %v455_v58 = vrot.slane %v454_v19, 1  ;;  %v461_v33 = vrot.slane %v4278_v20, 1  ;;  %v277_v16 = vrot.slane %v189_v61, 4  ;;  %2372 = vmatpush.msrb.mxu3 %v1684_v46  ;;  %2314 = vmatpush.msrb.mxu0 %v1959_v25 }
  0xbf   :  { %v266_v2 = vadd.f32 %v265_v0, %v187_v14  ;;  %v283_v59 = vrot.slane %v190_v42, 4  ;;  %v289_v57 = vrot.slane %v191_v9, 4  ;;  %v295_v32 = vrot.slane %v192_v31, 4  ;;  %v2061_v14 = vld [vmem:[#allocation7 + $0x1020] sm:$0xff]  ;;  %v1582_v0 = vld [vmem:[#allocation7 + $0x128] sm:$0xff] }
  0xc0   :  { %v272_v45 = vadd.f32 %v271_v11, %v188_v17  ;;  %v467_v35 = vrot.slane %v466_v54, 1  ;;  %v278_v62 = vadd.f32 %v277_v16, %v189_v61  ;;  %vm626_vm13 = vcmp.eq.s32.totalorder %v4296_v55, 1  ;;  %2333 = vmatpush.msrb.mxu1 %v2061_v14  ;;  %v1678_v11 = vld [vmem:[#allocation7 + $0x428] sm:$0xff]  ;;  %2353 = vmatpush.msrb.mxu2 %v1582_v0 }
  0xc1   :  { %v267_v6 = vrot.slane %v266_v2, 2  ;;  %v284_v50 = vadd.f32 %v283_v59, %v190_v42  ;;  %v290_v29 = vadd.f32 %v289_v57, %v191_v9  ;;  %v296_v17 = vadd.f32 %v295_v32, %v192_v31  ;;  %2373 = vmatpush.msrb.mxu3 %v1678_v11  ;;  %v4311_v9 = vpop.permute.xlu1 %623  ;;  %v1672_v31 = vld [vmem:[#allocation7 + $0x3f8] sm:$0xff]  ;;  %v1570_v32 = vld [vmem:[#allocation7 + $0xc8] sm:$0xff] }
  0xc2   :  { %v273_v24 = vrot.slane %v272_v45, 2  ;;  %v4300_v49 = vmax.f32 %v822_v40, %v823_v13  ;;  %v4302_v38 = vadd.f32 %v449_v3, %v448_v44  ;;  %v473_v16 = vrot.slane %v4292_v52, 1  ;;  %v2055_v40 = vld [vmem:[#allocation7 + $0xff0] sm:$0xff]  ;;  %v1576_v44 = vld [vmem:[#allocation7 + $0xf8] sm:$0xff] }
  0xc3   :  { %v479_v61 = vrot.slane %v4294_v18, 1  ;;  %v268_v46 = vadd.f32 %v267_v6, %v266_v2  ;;  %v279_v42 = vrot.slane %v278_v62, 2  ;;  %v639_v63 = vsel %vm626_vm13, -1e+09, %v4258_v27  ;;  %2334 = vmatpush.msrb.mxu1 %v2055_v40  ;;  %2354 = vmatpush.msrb.mxu2 %v1576_v44  ;;  %v1666_v6 = vld [vmem:[#allocation7 + $0x3c8] sm:$0xff] }
  0xc4   :  { %5011 = vst [vmem:[#allocation42_spill] sm:$0xff] %v4300_v49  ;;  %v4306_v48 = vadd.f32 %v273_v24, %v272_v45  ;;  %v4313_v59 = vadd.f32 %v455_v58, %v454_v19  ;;  %v285_v13 = vrot.slane %v284_v50, 2  ;;  %v291_v3 = vrot.slane %v290_v29, 2  ;;  %v1953_v24 = vld [vmem:[#allocation7 + $0xcc0] sm:$0xff]  ;;  %2374 = vmatpush.msrb.mxu3 %v1672_v31 }
  0xc5   :  { %5012 = vst [vmem:[#allocation43_spill] sm:$0xff] %v4302_v38  ;;  %v640_v2 = vsel %vm626_vm13, -1e+09, %v4260_v41  ;;  %v4319_v45 = vadd.f32 %v461_v33, %v4278_v20  ;;  %v4321_v27 = vadd.f32 %v467_v35, %v466_v54  ;;  %v297_v57 = vrot.slane %v296_v17, 2  ;;  %2315 = vmatpush.msrb.mxu0 %v1953_v24  ;;  %v2049_v58 = vld [vmem:[#allocation7 + $0xfc0] sm:$0xff]  ;;  %2355 = vmatpush.msrb.mxu2 %v1570_v32 }
  0xc6   :  { %5013 = vst [vmem:[#allocation44_spill] sm:$0xff] %v4313_v59  ;;  %v641_v19 = vsel %vm626_vm13, -1e+09, %v4262_v39  ;;  %v4327_v41 = vadd.f32 %v473_v16, %v4292_v52  ;;  %v4330_v14 = vadd.f32 %v479_v61, %v4294_v18  ;;  %v642_v33 = vsel %vm626_vm13, -1e+09, %v4266_v22  ;;  %2335 = vmatpush.msrb.mxu1 %v2049_v58  ;;  %2375 = vmatpush.msrb.mxu3 %v1666_v6  ;;  %v1564_v59 = vld [vmem:[#allocation7 + $0x98] sm:$0xff] }
  0xc7   :  { %5014 = vst [vmem:[#allocation45_spill] sm:$0xff] %v4319_v45  ;;  %vm632_vm14 = vcmp.eq.s32.totalorder %v4311_v9, 1  ;;  %v269_v39 = vrot.slane %v268_v46, 1  ;;  %v275_v20 = vrot.slane %v4306_v48, 1  ;;  %v280_v54 = vadd.f32 %v279_v42, %v278_v62  ;;  %2356 = vmatpush.msrb.mxu2 %v1564_v59  ;;  %v1941_v49 = vld [vmem:[#allocation7 + $0xc60] sm:$0xff]  ;;  %v1654_v9 = vld [vmem:[#allocation7 + $0x368] sm:$0xff] }
  0xc8   :  { %5015 = vst [vmem:[#allocation46_spill] sm:$0xff] %v4321_v27  ;;  %v643_v52 = vsel %vm626_vm13, -1e+09, %v4268_v10  ;;  %v644_v18 = vsel %vm626_vm13, -1e+09, %v4270_v34  ;;  %v717_v35 = vrot.slane %v639_v63, 4  ;;  %v286_v11 = vadd.f32 %v285_v13, %v284_v50 }
  0xc9   :  { %5016 = vst [vmem:[#allocation47_spill] sm:$0xff] %v4327_v41  ;;  %v723_v0 = vrot.slane %v640_v2, 4  ;;  %v729_v22 = vrot.slane %v641_v19, 4  ;;  %v292_v16 = vadd.f32 %v291_v3, %v290_v29  ;;  %v298_v61 = vadd.f32 %v297_v57, %v296_v17  ;;  %v4349_v3 = vld [vmem:[#allocation2 + $0x160] sm:$0xff]  ;;  %v2031_v59 = vld [vmem:[#allocation7 + $0xf30] sm:$0xff] }
  0xca   :  { %5017 = vst [vmem:[#allocation48_spill] sm:$0xff] %v4330_v14  ;;  %v735_v25 = vrot.slane %v642_v33, 4  ;;  %v718_v40 = vmax.f32 %v639_v63, %v717_v35  ;;  %v741_v62 = vrot.slane %v643_v52, 4  ;;  %v4343_v42 = vadd.f32 %v269_v39, %v268_v46  ;;  %v4345_v14 = vld [vmem:[#allocation2 + $0x150] sm:$0xff]  ;;  %v4347_v63 = vld [vmem:[#allocation2 + $0x158] sm:$0xff] }
  0xcb   :  { %v724_v44 = vmax.f32 %v640_v2, %v723_v0  ;;  %v730_v31 = vmax.f32 %v641_v19, %v729_v22  ;;  %v281_v24 = vrot.slane %v280_v54, 1  ;;  %v747_v58 = vrot.slane %v644_v18, 4  ;;  %v4351_v0 = vld [vmem:[#allocation2 + $0x168] sm:$0xff] }
  0xcc   :  { %5018 = vst [vmem:[#allocation49_spill] sm:$0xff] %v4343_v42  ;;  %v736_v10 = vmax.f32 %v642_v33, %v735_v25  ;;  %v719_v32 = vrot.slane %v718_v40, 2  ;;  %v742_v6 = vmax.f32 %v643_v52, %v741_v62  ;;  %v287_v50 = vrot.slane %v286_v11, 1  ;;  %v4353_v52 = vld [vmem:[#allocation2 + $0x170] sm:$0xff]  ;;  %v1660_v42 = vld [vmem:[#allocation7 + $0x398] sm:$0xff] }
  0xcd   :  { %v725_v55 = vrot.slane %v724_v44, 2  ;;  %v731_v34 = vrot.slane %v730_v31, 2  ;;  %v293_v29 = vrot.slane %v292_v16, 1  ;;  %v748_v13 = vmax.f32 %v644_v18, %v747_v58  ;;  %2376 = vmatpush.msrb.mxu3 %v1660_v42  ;;  %v1648_v42 = vld [vmem:[#allocation7 + $0x338] sm:$0xff] }
  0xce   :  { %v737_v17 = vrot.slane %v736_v10, 2  ;;  %v720_v46 = vmax.f32 %v718_v40, %v719_v32  ;;  %v743_v19 = vrot.slane %v742_v6, 2  ;;  %v299_v33 = vrot.slane %v298_v61, 1  ;;  %v4364_v32 = vld [vmem:[#allocation2 + $0x178] sm:$0xff] }
  0xcf   :  { %v726_v2 = vmax.f32 %v724_v44, %v725_v55  ;;  %v732_v57 = vmax.f32 %v730_v31, %v731_v34  ;;  %v749_v35 = vrot.slane %v748_v13, 2  ;;  %v675_v22 = vsel %vm632_vm14, -1e+09, %v4345_v14  ;;  %2377 = vmatpush.msrb.mxu3 %v1654_v9 }
  0xd0   :  { %v738_v39 = vmax.f32 %v736_v10, %v737_v17  ;;  %v721_v18 = vrot.slane %v720_v46, 1  ;;  %v744_v25 = vmax.f32 %v742_v6, %v743_v19  ;;  %v676_v40 = vsel %vm632_vm14, -1e+09, %v4347_v63 }
  0xd1   :  { %v677_v44 = vsel %vm632_vm14, -1e+09, %v4349_v3  ;;  %v727_v31 = vrot.slane %v726_v2, 1  ;;  %v733_v62 = vrot.slane %v732_v57, 1  ;;  %v750_v58 = vmax.f32 %v748_v13, %v749_v35  ;;  %v1947_v13 = vld [vmem:[#allocation7 + $0xc90] sm:$0xff]  ;;  %2378 = vmatpush.msrb.mxu3 %v1648_v42 }
  0xd2   :  { %v739_v10 = vrot.slane %v738_v39, 1  ;;  %v4367_v55 = vadd.f32 %v275_v20, %v4306_v48  ;;  %v678_v34 = vsel %vm632_vm14, -1e+09, %v4351_v0  ;;  %v679_v6 = vsel %vm632_vm14, -1e+09, %v4353_v52  ;;  %v2043_v35 = vld [vmem:[#allocation7 + $0xf90] sm:$0xff]  ;;  %2316 = vmatpush.msrb.mxu0 %v1947_v13 }
  0xd3   :  { %v933_v17 = vrot.slane %v675_v22, 4  ;;  %v4375_v19 = vadd.f32 %v281_v24, %v280_v54  ;;  %v722_v41 = vmax.f32 %v720_v46, %v721_v18  ;;  %v745_v27 = vrot.slane %v744_v25, 1  ;;  %2336 = vmatpush.msrb.mxu1 %v2043_v35 }
  0xd4   :  { %5019 = vst [vmem:[#allocation50_spill] sm:$0xff] %v4367_v55  ;;  %v939_v45 = vrot.slane %v676_v40, 4  ;;  %v4377_v38 = vadd.f32 %v287_v50, %v286_v11  ;;  %v4379_v48 = vadd.f32 %v293_v29, %v292_v16  ;;  %v4381_v20 = vadd.f32 %v299_v33, %v298_v61  ;;  %v2037_v11 = vld [vmem:[#allocation7 + $0xf60] sm:$0xff]  ;;  %v1558_v50 = vld [vmem:[#allocation7 + $0x68] sm:$0xff]  ;;  %2317 = vmatpush.msrb.mxu0 %v1941_v49 }
  0xd5   :  { %5020 = vst [vmem:[#allocation51_spill] sm:$0xff] %v4375_v19  ;;  %v680_v55 = vsel %vm632_vm14, -1e+09, %v4364_v32  ;;  %v728_v54 = vmax.f32 %v726_v2, %v727_v31  ;;  %v734_v24 = vmax.f32 %v732_v57, %v733_v62  ;;  %v740_v46 = vmax.f32 %v738_v39, %v739_v10  ;;  %v621_v19 = vpop.permute.xlu0 %620  ;;  %2337 = vmatpush.msrb.mxu1 %v2037_v11  ;;  %v1935_v39 = vld [vmem:[#allocation7 + $0xc30] sm:$0xff]  ;;  %v1552_v31 = vld [vmem:[#allocation7 + $0x38] sm:$0xff] }
  0xd6   :  { %5021 = vst [vmem:[#allocation52_spill] sm:$0xff] %v4377_v38  ;;  %v751_v18 = vrot.slane %v750_v58, 1  ;;  %v934_v16 = vmax.f32 %v675_v22, %v933_v17  ;;  %v945_v29 = vrot.slane %v677_v44, 4  ;;  %v951_v61 = vrot.slane %v678_v34, 4  ;;  %2357 = vmatpush.msrb.mxu2 %v1558_v50  ;;  %2318 = vmatpush.msrb.mxu0 %v1935_v39 }
  0xd7   :  { %5022 = vst [vmem:[#allocation53_spill] sm:$0xff] %v4379_v48  ;;  %v957_v33 = vrot.slane %v679_v6, 4  ;;  %v4388_v2 = vsel %vm2169_vm15, %v722_v41, %v4180_v15  ;;  %v940_v57 = vmax.f32 %v676_v40, %v939_v45  ;;  %v963_v22 = vrot.slane %v680_v55, 4  ;;  %2338 = vmatpush.msrb.mxu1 %v2031_v59  ;;  %v1929_v41 = vld [vmem:[#allocation7 + $0xc00] sm:$0xff] }
  0xd8   :  { %5023 = vst [vmem:[#allocation54_spill] sm:$0xff] %v4381_v20  ;;  %v746_v20 = vmax.f32 %v744_v25, %v745_v27  ;;  %v946_v62 = vmax.f32 %v677_v44, %v945_v29  ;;  %v952_v10 = vmax.f32 %v678_v34, %v951_v61  ;;  %vm631_vm0 = vcmp.eq.s32.totalorder %v621_v19, 1  ;;  %2358 = vmatpush.msrb.mxu2 %v1552_v31  ;;  %v2025_v25 = vld [vmem:[#allocation7 + $0xf00] sm:$0xff] }
  0xd9   :  { %v752_v49 = vmax.f32 %v750_v58, %v751_v18  ;;  %v4392_v27 = vsel %vm2169_vm15, %v728_v54, %v4182_v47  ;;  %v4396_v15 = vsel %vm2169_vm15, %v734_v24, %v4186_v30  ;;  %v669_v45 = vsel %vm631_vm0, -1e+09, %v4210_v51  ;;  %2319 = vmatpush.msrb.mxu0 %v1929_v41  ;;  %v1546_v30 = vld [vmem:[#allocation7 + $0x8] sm:$0xff]  ;;  %2339 = vmatpush.msrb.mxu1 %v2025_v25 }
  0xda   :  { %v4402_v40 = vsel %vm2169_vm15, %v740_v46, %v4194_v12  ;;  %v935_v44 = vrot.slane %v934_v16, 2  ;;  %v958_v58 = vmax.f32 %v679_v6, %v957_v33  ;;  %v670_v47 = vsel %vm631_vm0, -1e+09, %v4212_v1  ;;  %2359 = vmatpush.msrb.mxu2 %v1546_v30  ;;  %v1642_v54 = vld [vmem:[#allocation7 + $0x308] sm:$0xff] }
  0xdb   :  { %v4408_v34 = vsel %vm2169_vm15, %v746_v20, %v4214_v7  ;;  %v941_v51 = vrot.slane %v940_v57, 2  ;;  %v671_v17 = vsel %vm631_vm0, -1e+09, %v4223_v60  ;;  %v897_v13 = vrot.slane %v669_v45, 4  ;;  %2379 = vmatpush.msrb.mxu3 %v1642_v54 }
  0xdc   :  { %v947_v12 = vrot.slane %v946_v62, 2  ;;  %v953_v35 = vrot.slane %v952_v10, 2  ;;  %v964_v6 = vmax.f32 %v680_v55, %v963_v22  ;;  %v672_v1 = vsel %vm631_vm0, -1e+09, %v4225_v4 }
  0xdd   :  { %v673_v24 = vsel %vm631_vm0, -1e+09, %v4232_v56  ;;  %v674_v7 = vsel %vm631_vm0, -1e+09, %v4234_v8  ;;  %v898_v20 = vmax.f32 %v669_v45, %v897_v13  ;;  %v903_v46 = vrot.slane %v670_v47, 4  ;;  %v144_v56 = vpop.permute.xlu1 %143 }
  0xde   :  { %v4420_v60 = vsel %vm2169_vm15, %v752_v49, %v4216_v21  ;;  %v4422_v18 = vmax.f32 %v934_v16, %v935_v44  ;;  %v959_v55 = vrot.slane %v958_v58, 2  ;;  %v909_v11 = vrot.slane %v671_v17, 4 }
  0xdf   :  { %v4424_v50 = vmax.f32 %v940_v57, %v941_v51  ;;  %v899_v4 = vrot.slane %v898_v20, 2  ;;  %v904_v29 = vmax.f32 %v670_v47, %v903_v46  ;;  %v915_v61 = vrot.slane %v672_v1, 4 }
  0xe0   :  { %v965_v33 = vrot.slane %v964_v6, 2  ;;  %v910_v19 = vmax.f32 %v671_v17, %v909_v11  ;;  %v921_v8 = vrot.slane %v673_v24, 4  ;;  %v927_v9 = vrot.slane %v674_v7, 4 }
  0xe1   :  { %v4426_v39 = vmax.f32 %v946_v62, %v947_v12  ;;  %v4428_v59 = vmax.f32 %v952_v10, %v953_v35  ;;  %v905_v21 = vrot.slane %v904_v29, 2  ;;  %v916_v31 = vmax.f32 %v672_v1, %v915_v61 }
  0xe2   :  { %v4431_v22 = vmax.f32 %v958_v58, %v959_v55  ;;  %v900_v57 = vmax.f32 %v898_v20, %v899_v4  ;;  %v181_v42 = vmul.f32 %v144_v56, %v4112_v23  ;;  %v911_v45 = vrot.slane %v910_v19, 2 }
  0xe3   :  { %v182_v41 = vmul.f32 %v144_v56, %v4114_v28  ;;  %v183_v25 = vmul.f32 %v144_v56, %v4124_v36  ;;  %v4437_v62 = vmax.f32 %v964_v6, %v965_v33  ;;  %v906_v10 = vmax.f32 %v904_v29, %v905_v21 }
  0xe4   :  { %v922_v44 = vmax.f32 %v673_v24, %v921_v8  ;;  %v928_v47 = vmax.f32 %v674_v7, %v927_v9  ;;  %v917_v51 = vrot.slane %v916_v31, 2  ;;  %v184_v17 = vmul.f32 %v144_v56, %v4126_v37  ;;  %v3860_v37 = vld [vmem:[#allocation2 + $0x70] sm:$0xff] }
  0xe5   :  { %5024 = vst [vmem:[#allocation55_spill] sm:$0xff] %v4437_v62  ;;  %v901_v13 = vrot.slane %v900_v57, 1  ;;  %v185_v12 = vmul.f32 %v144_v56, %v4134_v43  ;;  %v229_v28 = vrot.slane %v181_v42, 4  ;;  %v912_v35 = vmax.f32 %v910_v19, %v911_v45 }
  0xe6   :  { %v186_v36 = vmul.f32 %v144_v56, %v4140_v53  ;;  %v235_v6 = vrot.slane %v182_v41, 4  ;;  %v241_v1 = vrot.slane %v183_v25, 4  ;;  %v907_v54 = vrot.slane %v906_v10, 1  ;;  %v154_v56 = vpop.permute.xlu0 %153 }
  0xe7   :  { %v923_v24 = vrot.slane %v922_v44, 2  ;;  %v929_v7 = vrot.slane %v928_v47, 2  ;;  %v230_v20 = vadd.f32 %v229_v28, %v181_v42  ;;  %v918_v46 = vmax.f32 %v916_v31, %v917_v51 }
  0xe8   :  { %v236_v55 = vadd.f32 %v235_v6, %v182_v41  ;;  %v242_v11 = vadd.f32 %v241_v1, %v183_v25  ;;  %v247_v4 = vrot.slane %v184_v17, 4  ;;  %v4446_v29 = vmax.f32 %v900_v57, %v901_v13  ;;  %v3858_v6 = vld [vmem:[#allocation2 + $0x60] sm:$0xff]  ;;  %v3859_v13 = vld [vmem:[#allocation2 + $0x68] sm:$0xff] }
  0xe9   :  { %v231_v61 = vrot.slane %v230_v20, 2  ;;  %v253_v43 = vrot.slane %v185_v12, 4  ;;  %v913_v33 = vrot.slane %v912_v35, 1  ;;  %v259_v53 = vrot.slane %v186_v36, 4 }
  0xea   :  { %v237_v19 = vrot.slane %v236_v55, 2  ;;  %v248_v8 = vadd.f32 %v247_v4, %v184_v17  ;;  %v4448_v9 = vmax.f32 %v906_v10, %v907_v54  ;;  %v924_v21 = vmax.f32 %v922_v44, %v923_v24  ;;  %v3861_v10 = vld [vmem:[#allocation2 + $0x78] sm:$0xff]  ;;  %v3862_v24 = vld [vmem:[#allocation2 + $0x80] sm:$0xff] }
  0xeb   :  { %v930_v45 = vmax.f32 %v928_v47, %v929_v7  ;;  %v254_v42 = vadd.f32 %v253_v43, %v185_v12  ;;  %v919_v31 = vrot.slane %v918_v46, 1  ;;  %v232_v41 = vadd.f32 %v231_v61, %v230_v20  ;;  %v3863_v61 = vld [vmem:[#allocation2 + $0x88] sm:$0xff] }
  0xec   :  { %v243_v25 = vrot.slane %v242_v11, 2  ;;  %v260_v51 = vadd.f32 %v259_v53, %v186_v36  ;;  %v238_v28 = vadd.f32 %v237_v19, %v236_v55  ;;  %v193_v57 = vmul.f32 %v3858_v6, %v154_v56 }
  0xed   :  { %v194_v1 = vmul.f32 %v3859_v13, %v154_v56  ;;  %v195_v23 = vmul.f32 %v3860_v37, %v154_v56  ;;  %v4450_v58 = vmax.f32 %v912_v35, %v913_v33  ;;  %v249_v17 = vrot.slane %v248_v8, 2 }
  0xee   :  { %v255_v4 = vrot.slane %v254_v42, 2  ;;  %v196_v54 = vmul.f32 %v3861_v10, %v154_v56  ;;  %v925_v44 = vrot.slane %v924_v21, 1  ;;  %v931_v47 = vrot.slane %v930_v45, 1 }
  0xef   :  { %v261_v12 = vrot.slane %v260_v51, 2  ;;  %v197_v7 = vmul.f32 %v3862_v24, %v154_v56  ;;  %v4452_v20 = vmax.f32 %v918_v46, %v919_v31  ;;  %v233_v36 = vrot.slane %v232_v41, 1 }
  0xf0   :  { %v244_v55 = vadd.f32 %v243_v25, %v242_v11  ;;  %v198_v43 = vmul.f32 %v3863_v61, %v154_v56  ;;  %v239_v19 = vrot.slane %v238_v28, 1  ;;  %v301_v53 = vrot.slane %v193_v57, 4  ;;  %v169_v11 = vpop.permute.xlu1 %168 }
  0xf1   :  { %v307_v37 = vrot.slane %v194_v1, 4  ;;  %v313_v35 = vrot.slane %v195_v23, 4  ;;  %v250_v33 = vadd.f32 %v249_v17, %v248_v8  ;;  %v256_v6 = vadd.f32 %v255_v4, %v254_v42 }
  0xf2   :  { %v319_v13 = vrot.slane %v196_v54, 4  ;;  %v325_v30 = vrot.slane %v197_v7, 4  ;;  %v262_v10 = vadd.f32 %v261_v12, %v260_v51  ;;  %v302_v49 = vadd.f32 %v301_v53, %v193_v57  ;;  %v3865_v12 = vld [vmem:[#allocation2 + $0xf8] sm:$0xff] }
  0xf3   :  { %v308_v16 = vadd.f32 %v307_v37, %v194_v1  ;;  %v314_v48 = vadd.f32 %v313_v35, %v195_v23  ;;  %v4454_v38 = vmax.f32 %v924_v21, %v925_v44  ;;  %v331_v24 = vrot.slane %v198_v43, 4  ;;  %v3864_v21 = vld [vmem:[#allocation2 + $0xf0] sm:$0xff] }
  0xf4   :  { %v320_v46 = vadd.f32 %v319_v13, %v196_v54  ;;  %v326_v31 = vadd.f32 %v325_v30, %v197_v7  ;;  %v4456_v25 = vmax.f32 %v930_v45, %v931_v47  ;;  %v4458_v56 = vadd.f32 %v233_v36, %v232_v41  ;;  %v3866_v41 = vld [vmem:[#allocation2 + $0x100] sm:$0xff]  ;;  %v3867_v36 = vld [vmem:[#allocation2 + $0x108] sm:$0xff] }
  0xf5   :  { %v245_v61 = vrot.slane %v244_v55, 1  ;;  %v303_v62 = vrot.slane %v302_v49, 2  ;;  %v4460_v8 = vadd.f32 %v239_v19, %v238_v28  ;;  %v251_v42 = vrot.slane %v250_v33, 1  ;;  %v3868_v19 = vld [vmem:[#allocation2 + $0x110] sm:$0xff] }
  0xf6   :  { %5025 = vst [vmem:[#allocation56_spill] sm:$0xff] %v4458_v56  ;;  %v309_v17 = vrot.slane %v308_v16, 2  ;;  %v315_v51 = vrot.slane %v314_v48, 2  ;;  %v257_v57 = vrot.slane %v256_v6, 1  ;;  %v263_v1 = vrot.slane %v262_v10, 1 }
  0xf7   :  { %5026 = vst [vmem:[#allocation57_spill] sm:$0xff] %v4460_v8  ;;  %v321_v23 = vrot.slane %v320_v46, 2  ;;  %v211_v4 = vmul.f32 %v3864_v21, %v169_v11  ;;  %v304_v54 = vadd.f32 %v303_v62, %v302_v49  ;;  %v327_v30 = vrot.slane %v326_v31, 2  ;;  %v3869_v8 = vld [vmem:[#allocation2 + $0x118] sm:$0xff] }
  0xf8   :  { %v332_v44 = vadd.f32 %v331_v24, %v198_v43  ;;  %v212_v45 = vmul.f32 %v3865_v12, %v169_v11  ;;  %v4462_v47 = vadd.f32 %v245_v61, %v244_v55  ;;  %v213_v7 = vmul.f32 %v3866_v41, %v169_v11 }
  0xf9   :  { %v214_v28 = vmul.f32 %v3867_v36, %v169_v11  ;;  %v215_v53 = vmul.f32 %v3868_v19, %v169_v11  ;;  %v4464_v37 = vadd.f32 %v251_v42, %v250_v33  ;;  %v310_v35 = vadd.f32 %v309_v17, %v308_v16  ;;  %v164_v33 = vpop.permute.xlu0 %163 }
  0xfa   :  { %5027 = vst [vmem:[#allocation58_spill] sm:$0xff] %v4462_v47  ;;  %v316_v13 = vadd.f32 %v315_v51, %v314_v48  ;;  %v216_v56 = vmul.f32 %v3869_v8, %v169_v11  ;;  %v4466_v21 = vadd.f32 %v257_v57, %v256_v6  ;;  %v4468_v49 = vadd.f32 %v263_v1, %v262_v10  ;;  %v3870_v1 = vld [vmem:[#allocation2 + $0xc0] sm:$0xff] }
  0xfb   :  { %5028 = vst [vmem:[#allocation59_spill] sm:$0xff] %v4464_v37  ;;  %v322_v62 = vadd.f32 %v321_v23, %v320_v46  ;;  %v409_v43 = vrot.slane %v211_v4, 4  ;;  %v305_v55 = vrot.slane %v304_v54, 1  ;;  %v328_v24 = vadd.f32 %v327_v30, %v326_v31 }
  0xfc   :  { %5029 = vst [vmem:[#allocation60_spill] sm:$0xff] %v4466_v21  ;;  %v333_v61 = vrot.slane %v332_v44, 2  ;;  %v415_v12 = vrot.slane %v212_v45, 4  ;;  %v421_v36 = vrot.slane %v213_v7, 4  ;;  %v427_v47 = vrot.slane %v214_v28, 4 }
  0xfd   :  { %5030 = vst [vmem:[#allocation61_spill] sm:$0xff] %v4468_v49  ;;  %v410_v41 = vadd.f32 %v409_v43, %v211_v4  ;;  %v433_v19 = vrot.slane %v215_v53, 4  ;;  %v311_v42 = vrot.slane %v310_v35, 1  ;;  %v317_v16 = vrot.slane %v316_v13, 1 }
  0xfe   :  { %v416_v48 = vadd.f32 %v415_v12, %v212_v45  ;;  %v439_v17 = vrot.slane %v216_v56, 4  ;;  %v422_v6 = vadd.f32 %v421_v36, %v213_v7  ;;  %v428_v8 = vadd.f32 %v427_v47, %v214_v28  ;;  %v3871_v12 = vld [vmem:[#allocation2 + $0xc8] sm:$0xff]  ;;  %v3872_v36 = vld [vmem:[#allocation2 + $0xd0] sm:$0xff] }
  0xff   :  { %v411_v11 = vrot.slane %v410_v41, 2  ;;  %v434_v10 = vadd.f32 %v433_v19, %v215_v53  ;;  %v323_v51 = vrot.slane %v322_v62, 1  ;;  %v205_v31 = vmul.f32 %v3870_v1, %v164_v33 }
 0x100   :  { %v417_v46 = vrot.slane %v416_v48, 2  ;;  %v440_v57 = vadd.f32 %v439_v17, %v216_v56  ;;  %v4470_v23 = vadd.f32 %v305_v55, %v304_v54  ;;  %v329_v4 = vrot.slane %v328_v24, 1  ;;  %v3873_v54 = vld [vmem:[#allocation2 + $0xd8] sm:$0xff] }
 0x101   :  { %v4472_v30 = vadd.f32 %v333_v61, %v332_v44  ;;  %v412_v43 = vadd.f32 %v411_v11, %v410_v41  ;;  %v4474_v49 = vadd.f32 %v311_v42, %v310_v35  ;;  %v4476_v21 = vadd.f32 %v317_v16, %v316_v13  ;;  %v3874_v35 = vld [vmem:[#allocation2 + $0xe0] sm:$0xff]  ;;  %v3875_v41 = vld [vmem:[#allocation2 + $0xe8] sm:$0xff] }
 0x102   :  { %v423_v45 = vrot.slane %v422_v6, 2  ;;  %v206_v7 = vmul.f32 %v3871_v12, %v164_v33  ;;  %v418_v47 = vadd.f32 %v417_v46, %v416_v48  ;;  %v429_v28 = vrot.slane %v428_v8, 2 }
 0x103   :  { %5031 = vst [vmem:[#allocation62_spill] sm:$0xff] %v4474_v49  ;;  %v435_v53 = vrot.slane %v434_v10, 2  ;;  %v207_v56 = vmul.f32 %v3872_v36, %v164_v33  ;;  %v413_v19 = vrot.slane %v412_v43, 1  ;;  %v441_v17 = vrot.slane %v440_v57, 2 }
 0x104   :  { %5032 = vst [vmem:[#allocation63_spill] sm:$0xff] %v4476_v21  ;;  %v208_v55 = vmul.f32 %v3873_v54, %v164_v33  ;;  %v373_v1 = vrot.slane %v205_v31, 4  ;;  %v4478_v44 = vadd.f32 %v323_v51, %v322_v62  ;;  %v4480_v61 = vadd.f32 %v329_v4, %v328_v24 }
 0x105   :  { %v209_v13 = vmul.f32 %v3874_v35, %v164_v33  ;;  %v210_v42 = vmul.f32 %v3875_v41, %v164_v33  ;;  %v335_v16 = vrot.slane %v4472_v30, 1  ;;  %v424_v48 = vadd.f32 %v423_v45, %v422_v6 }
 0x106   :  { %5033 = vst [vmem:[#allocation64_spill] sm:$0xff] %v4478_v44  ;;  %v374_v11 = vadd.f32 %v373_v1, %v205_v31  ;;  %v379_v46 = vrot.slane %v206_v7, 4  ;;  %v419_v12 = vrot.slane %v418_v47, 1  ;;  %v430_v36 = vadd.f32 %v429_v28, %v428_v8  ;;  %v5036_v1 = vld [vmem:[#allocation15_spill] sm:$0xff] }
 0x107   :  { %5034 = vst [vmem:[#allocation65_spill] sm:$0xff] %v4480_v61  ;;  %v436_v37 = vadd.f32 %v435_v53, %v434_v10  ;;  %v385_v21 = vrot.slane %v207_v56, 4  ;;  %v4483_v49 = vadd.f32 %v413_v19, %v412_v43  ;;  %v442_v54 = vadd.f32 %v441_v17, %v440_v57 }
 0x108   :  { %v380_v62 = vadd.f32 %v379_v46, %v206_v7  ;;  %v391_v51 = vrot.slane %v208_v55, 4  ;;  %v375_v24 = vrot.slane %v374_v11, 2  ;;  %v397_v61 = vrot.slane %v209_v13, 4 }
 0x109   :  { %v386_v4 = vadd.f32 %v385_v21, %v207_v56  ;;  %v403_v35 = vrot.slane %v210_v42, 4  ;;  %v425_v44 = vrot.slane %v424_v48, 1  ;;  %v2172_v8 = vsel %vm2171_vm1, %v4160_v26, %v4388_v2 }
 0x10a   :  { %v381_v33 = vrot.slane %v380_v62, 2  ;;  %v392_v41 = vadd.f32 %v391_v51, %v208_v55  ;;  %v398_v31 = vadd.f32 %v397_v61, %v209_v13  ;;  %v431_v10 = vrot.slane %v430_v36, 1 }
 0x10b   :  { %v387_v6 = vrot.slane %v386_v4, 2  ;;  %v404_v45 = vadd.f32 %v403_v35, %v210_v42  ;;  %v437_v43 = vrot.slane %v436_v37, 1  ;;  %v4488_v7 = vadd.f32 %v419_v12, %v418_v47 }
 0x10c   :  { %v393_v57 = vrot.slane %v392_v41, 2  ;;  %v443_v21 = vrot.slane %v442_v54, 1  ;;  %v4490_v28 = vadd.f32 %v375_v24, %v374_v11  ;;  %v2174_v53 = vsel %vm2173_vm2, %v4256_v5, %v2172_v8  ;;  %v5037_v11 = vld [vmem:[#allocation21_spill] sm:$0xff]  ;;  %v5038_v24 = vld [vmem:[#allocation27_spill] sm:$0xff] }
 0x10d   :  { %v4494_v56 = vadd.f32 %v425_v44, %v424_v48  ;;  %v4496_v19 = vadd.f32 %v381_v33, %v380_v62  ;;  %v4498_v17 = vadd.f32 %v387_v6, %v386_v4  ;;  %v399_v26 = vrot.slane %v398_v31, 2  ;;  %v1828_v62 = vld [vmem:[#allocation7 + $0x8d8] sm:$0xff]  ;;  %v1822_v8 = vld [vmem:[#allocation7 + $0x8a8] sm:$0xff] }
 0x10e   :  { %v405_v2 = vrot.slane %v404_v45, 2  ;;  %v5035_v55 = vrot.slane %v4422_v18, 1  ;;  %v2176_v61 = vsel %vm2175_vm3, %v5036_v1, %v2174_v53  ;;  %v4505_v13 = vadd.f32 %v431_v10, %v430_v36  ;;  %v179_v10 = vpop.permute.xlu0 %178  ;;  %v5044_v53 = vld [vmem:[#allocation39_spill] sm:$0xff] }
 0x10f   :  { %v4507_v42 = vadd.f32 %v393_v57, %v392_v41  ;;  %v4509_v5 = vadd.f32 %v437_v43, %v436_v37  ;;  %v4511_v44 = vadd.f32 %v443_v21, %v442_v54  ;;  %v377_v48 = vrot.slane %v4490_v28, 1  ;;  %v5040_v41 = vld [vmem:[#allocation38_spill] sm:$0xff]  ;;  %v5042_v43 = vld [vmem:[#allocation16_spill] sm:$0xff] }
 0x110   :  { %v938_v47 = vmax.f32 %v4422_v18, %v5035_v55  ;;  %v2178_v46 = vsel %vm2177_vm4, %v5037_v11, %v2176_v61  ;;  %v383_v18 = vrot.slane %v4496_v19, 1  ;;  %v389_v12 = vrot.slane %v4498_v17, 1  ;;  %v5046_v55 = vld [vmem:[#allocation22_spill] sm:$0xff] }
 0x111   :  { %v2180_v36 = vsel %vm2179_vm5, %v4446_v29, %v2178_v46  ;;  %v4520_v51 = vadd.f32 %v399_v26, %v398_v31  ;;  %v4522_v37 = vadd.f32 %v405_v2, %v404_v45  ;;  %v2184_v4 = vsel %vm2171_vm1, %v5038_v24, %v4392_v27  ;;  %v5041_v31 = vld [vmem:[#allocation28_spill] sm:$0xff] }
 0x112   :  { %v4525_v54 = vsel %vm2181_vm6, %v938_v47, %v2180_v36  ;;  %v395_v35 = vrot.slane %v4507_v42, 1  ;;  %v5039_v33 = vrot.slane %v4424_v50, 1  ;;  %v2185_v6 = vsel %vm2173_vm2, %v5040_v41, %v2184_v4  ;;  %v5047_v47 = vld [vmem:[#allocation17_spill] sm:$0xff]  ;;  %v5049_v46 = vld [vmem:[#allocation40_spill] sm:$0xff]  ;;  %v5050_v4 = vld [vmem:[#allocation23_spill] sm:$0xff] }
 0x113   :  { %2240 = vmatmul.f32.vlgmr.msra.gmra.mxu0 %v4525_v54  ;;  %v2191_v45 = vsel %vm2171_vm1, %v5041_v31, %v4396_v15  ;;  %v2186_v27 = vsel %vm2175_vm3, %v5042_v43, %v2185_v6  ;;  %v5043_v57 = vrot.slane %v4426_v39, 1  ;;  %v5048_v61 = vrot.slane %v4428_v59, 1  ;;  %v1816_v36 = vld [vmem:[#allocation7 + $0x878] sm:$0xff] }
 0x114   :  { %v944_v29 = vmax.f32 %v4424_v50, %v5039_v33  ;;  %v2192_v26 = vsel %vm2173_vm2, %v5044_v53, %v2191_v45  ;;  %v5045_v50 = vld [vmem:[#allocation29_spill] sm:$0xff]  ;;  %2384 = vmatpush.msra.mxu0 %v1828_v62  ;;  %v2187_v15 = vsel %vm2177_vm4, %v5046_v55, %v2186_v27  ;;  %v5051_v62 = vld [vmem:[#allocation18_spill] sm:$0xff]  ;;  %v1924_v41 = vld [vmem:[#allocation7 + $0xbd8] sm:$0xff]  ;;  %v223_v6 = vmul.f32 %v179_v10, %v4345_v14 }
 0x115   :  { %v950_v21 = vmax.f32 %v4426_v39, %v5043_v57  ;;  %v2198_v2 = vsel %vm2171_vm1, %v5045_v50, %v4402_v40  ;;  %v2193_v1 = vsel %vm2175_vm3, %v5047_v47, %v2192_v26  ;;  %v956_v11 = vmax.f32 %v4428_v59, %v5048_v61  ;;  %v5052_v45 = vld [vmem:[#allocation24_spill] sm:$0xff]  ;;  %v1810_v50 = vld [vmem:[#allocation7 + $0x848] sm:$0xff] }
 0x116   :  { %v2199_v39 = vsel %vm2173_vm2, %v5049_v46, %v2198_v2  ;;  %v2188_v24 = vsel %vm2179_vm5, %v4448_v9, %v2187_v15  ;;  %v2194_v40 = vsel %vm2177_vm4, %v5050_v4, %v2193_v1  ;;  %2385 = vmatpush.msra.mxu0 %v1822_v8  ;;  %v2020_v9 = vld [vmem:[#allocation7 + $0xed8] sm:$0xff]  ;;  %v224_v27 = vmul.f32 %v179_v10, %v4347_v63  ;;  %v2014_v63 = vld [vmem:[#allocation7 + $0xea8] sm:$0xff] }
 0x117   :  { %v2200_v33 = vsel %vm2175_vm3, %v5051_v62, %v2199_v39  ;;  %v4567_v31 = vsel %vm2181_vm6, %v944_v29, %v2188_v24  ;;  %v2195_v59 = vsel %vm2179_vm5, %v4450_v58, %v2194_v40  ;;  %v2116_v8 = vld [vmem:[#allocation7 + $0x11d8] sm:$0xff]  ;;  %v1918_v29 = vld [vmem:[#allocation7 + $0xba8] sm:$0xff]  ;;  %v225_v53 = vmul.f32 %v179_v10, %v4349_v3 }
 0x118   :  { %v2201_v43 = vsel %vm2177_vm4, %v5052_v45, %v2200_v33  ;;  %2260 = vmatmul.f32.vlgmr.msra.gmra.mxu1 %v4567_v31  ;;  %v4576_v57 = vsel %vm2181_vm6, %v950_v21, %v2195_v59  ;;  %2386 = vmatpush.msra.mxu0 %v1816_v36  ;;  %v481_v58 = vrot.slane %v223_v6, 4  ;;  %v226_v21 = vmul.f32 %v179_v10, %v4351_v0  ;;  %v1912_v15 = vld [vmem:[#allocation7 + $0xb78] sm:$0xff]  ;;  %v5054_v36 = vld [vmem:[#allocation30_spill] sm:$0xff] }
 0x119   :  { %v2202_v14 = vsel %vm2179_vm5, %v4452_v20, %v2201_v43  ;;  %2280 = vmatmul.f32.vlgmr.msra.gmra.mxu2 %v4576_v57  ;;  %2404 = vmatpush.msra.mxu1 %v1924_v41  ;;  %v227_v2 = vmul.f32 %v179_v10, %v4353_v52  ;;  %v487_v55 = vrot.slane %v224_v27, 4  ;;  %v2110_v20 = vld [vmem:[#allocation7 + $0x11a8] sm:$0xff]  ;;  %v228_v3 = vmul.f32 %v179_v10, %v4364_v32  ;;  %v2008_v46 = vld [vmem:[#allocation7 + $0xe78] sm:$0xff] }
 0x11a   :  { %v4583_v26 = vsel %vm2181_vm6, %v956_v11, %v2202_v14  ;;  %2424 = vmatpush.msra.mxu2 %v2020_v9  ;;  %v482_v47 = vadd.f32 %v481_v58, %v223_v6  ;;  %v493_v1 = vrot.slane %v225_v53, 4  ;;  %v5053_v61 = vrot.slane %v4431_v22, 1  ;;  %v1804_v4 = vld [vmem:[#allocation7 + $0x818] sm:$0xff]  ;;  %2387 = vmatpush.msra.mxu0 %v1810_v50  ;;  %v1906_v32 = vld [vmem:[#allocation7 + $0xb48] sm:$0xff] }
 0x11b   :  { %2300 = vmatmul.f32.vlgmr.msra.gmra.mxu3 %v4583_v26  ;;  %2405 = vmatpush.msra.mxu1 %v1918_v29  ;;  %v488_v0 = vadd.f32 %v487_v55, %v224_v27  ;;  %v499_v39 = vrot.slane %v226_v21, 4  ;;  %v505_v52 = vrot.slane %v227_v2, 4  ;;  %v2205_v24 = vsel %vm2171_vm1, %v5054_v36, %v4408_v34  ;;  %v2104_v40 = vld [vmem:[#allocation7 + $0x1178] sm:$0xff]  ;;  %v5055_v41 = vld [vmem:[#allocation41_spill] sm:$0xff] }
 0x11c   :  { %v962_v11 = vmax.f32 %v4431_v22, %v5053_v61  ;;  %2444 = vmatpush.msra.mxu3 %v2116_v8  ;;  %2425 = vmatpush.msra.mxu2 %v2014_v63  ;;  %v483_v10 = vrot.slane %v482_v47, 2  ;;  %v494_v62 = vadd.f32 %v493_v1, %v225_v53  ;;  %v511_v33 = vrot.slane %v228_v3, 4  ;;  %v2002_v6 = vld [vmem:[#allocation7 + $0xe48] sm:$0xff]  ;;  %v5056_v9 = vld [vmem:[#allocation19_spill] sm:$0xff] }
 0x11d   :  { %v2206_v22 = vsel %vm2173_vm2, %v5055_v41, %v2205_v24  ;;  %2406 = vmatpush.msra.mxu1 %v1912_v15  ;;  %v489_v59 = vrot.slane %v488_v0, 2  ;;  %v500_v45 = vadd.f32 %v499_v39, %v226_v21  ;;  %v506_v43 = vadd.f32 %v505_v52, %v227_v2  ;;  %v1798_v27 = vld [vmem:[#allocation7 + $0x7e8] sm:$0xff]  ;;  %2388 = vmatpush.msra.mxu0 %v1804_v4  ;;  %v4613_v2 = vpop.permute.xlu1 %520 }
 0x11e   :  { %2445 = vmatpush.msra.mxu3 %v2110_v20  ;;  %v2207_v34 = vsel %vm2175_vm3, %v5056_v9, %v2206_v22  ;;  %v401_v14 = vrot.slane %v4520_v51, 1  ;;  %v407_v8 = vrot.slane %v4522_v37, 1  ;;  %2426 = vmatpush.msra.mxu2 %v2008_v46  ;;  %v2098_v29 = vld [vmem:[#allocation7 + $0x1148] sm:$0xff]  ;;  %v484_v53 = vadd.f32 %v483_v10, %v482_v47  ;;  %v1996_v47 = vld [vmem:[#allocation7 + $0xe18] sm:$0xff] }
 0x11f   :  { %v5057_v58 = vld [vmem:[#allocation25_spill] sm:$0xff]  ;;  %v4606_v50 = vadd.f32 %v377_v48, %v4490_v28  ;;  %v4611_v21 = vadd.f32 %v383_v18, %v4496_v19  ;;  %2407 = vmatpush.msra.mxu1 %v1906_v32  ;;  %v495_v55 = vrot.slane %v494_v62, 2  ;;  %v4620_v15 = vadd.f32 %v389_v12, %v4498_v17  ;;  %v1900_v18 = vld [vmem:[#allocation7 + $0xb18] sm:$0xff]  ;;  %2389 = vmatpush.msra.mxu0 %v1798_v27 }
 0x120   :  { %v2208_v63 = vsel %vm2177_vm4, %v5057_v58, %v2207_v34  ;;  %2446 = vmatpush.msra.mxu3 %v2104_v40  ;;  %2427 = vmatpush.msra.mxu2 %v2002_v6  ;;  %v501_v28 = vrot.slane %v500_v45, 2  ;;  %v4622_v48 = vadd.f32 %v511_v33, %v228_v3  ;;  %v4630_v1 = vadd.f32 %v395_v35, %v4507_v42  ;;  %v2092_v12 = vld [vmem:[#allocation7 + $0x1118] sm:$0xff]  ;;  %v1990_v52 = vld [vmem:[#allocation7 + $0xde8] sm:$0xff] }
 0x121   :  { %v2209_v20 = vsel %vm2179_vm5, %v4454_v38, %v2208_v63  ;;  %v485_v38 = vrot.slane %v484_v53, 1  ;;  %v4632_v61 = vadd.f32 %v489_v59, %v488_v0  ;;  %v507_v17 = vrot.slane %v506_v43, 2  ;;  %v1792_v3 = vld [vmem:[#allocation7 + $0x7b8] sm:$0xff]  ;;  %2360 = vmatmul.f32.vlgmr.msrb.gmra.mxu2 %v4525_v54  ;;  %v1894_v0 = vld [vmem:[#allocation7 + $0xae8] sm:$0xff]  ;;  %2408 = vmatpush.msra.mxu1 %v1900_v18 }
 0x122   :  { %v4625_v19 = vsel %vm2181_vm6, %v962_v11, %v2209_v20  ;;  %2447 = vmatpush.msra.mxu3 %v2098_v29  ;;  %v4636_v11 = vadd.f32 %v401_v14, %v4520_v51  ;;  %v4639_v46 = vadd.f32 %v407_v8, %v4522_v37  ;;  %v4642_v39 = vrot.slane %v4613_v2, 1  ;;  %v5058_v42 = vld [vmem:[#allocation31_spill] sm:$0xff]  ;;  %v5061_v40 = vld [vmem:[#allocation42_spill] sm:$0xff]  ;;  %2428 = vmatpush.msra.mxu2 %v1996_v47  ;;  %v5062_v22 = vld [vmem:[#allocation20_spill] sm:$0xff] }
 0x123   :  { %2320 = vmatmul.f32.vlgmr.msrb.gmra.mxu0 %v4625_v19  ;;  %v2212_v35 = vsel %vm2171_vm1, %v5058_v42, %v4420_v60  ;;  %2380 = vmatmul.f32.vlgmr.msrb.gmra.mxu3 %v4567_v31  ;;  %v4650_v36 = vrot.slane %v4613_v2, 2  ;;  %v4652_v51 = vadd.f32 %v495_v55, %v494_v62  ;;  %v5059_v37 = vld [vmem:[#allocation55_spill] sm:$0xff]  ;;  %v2086_v60 = vld [vmem:[#allocation7 + $0x10e8] sm:$0xff]  ;;  %v4659_v33 = vadd.f32 %v501_v28, %v500_v45 }
 0x124   :  { %v5060_v24 = vrot.slane %v5059_v37, 1  ;;  %v2213_v32 = vsel %vm2173_vm2, %v5061_v40, %v2212_v35  ;;  %v1786_v10 = vld [vmem:[#allocation7 + $0x788] sm:$0xff]  ;;  %v513_v41 = vrot.slane %v4622_v48, 2  ;;  %2448 = vmatpush.msra.mxu3 %v2092_v12  ;;  %2390 = vmatpush.msra.mxu0 %v1792_v3  ;;  %v1888_v62 = vld [vmem:[#allocation7 + $0xab8] sm:$0xff]  ;;  %v4665_v9 = vrot.slane %v4613_v2, 3 }
 0x125   :  { %v2214_v6 = vsel %vm2175_vm3, %v5062_v22, %v2213_v32  ;;  %v1984_v59 = vld [vmem:[#allocation7 + $0xdb8] sm:$0xff]  ;;  %v486_v34 = vadd.f32 %v485_v38, %v484_v53  ;;  %v491_v27 = vrot.slane %v4632_v61, 1  ;;  %v4668_v14 = vadd.f32 %v507_v17, %v506_v43  ;;  %v5063_v8 = vld [vmem:[#allocation26_spill] sm:$0xff]  ;;  %2409 = vmatpush.msra.mxu1 %v1894_v0  ;;  %2429 = vmatpush.msra.mxu2 %v1990_v52  ;;  %v5065_v12 = vld [vmem:[#allocation49_spill] sm:$0xff] }
 0x126   :  { %v968_v4 = vmax.f32 %v5059_v37, %v5060_v24  ;;  %v2215_v45 = vsel %vm2177_vm4, %v5063_v8, %v2214_v6  ;;  %v2080_v29 = vld [vmem:[#allocation7 + $0x10b8] sm:$0xff]  ;;  %2449 = vmatpush.msra.mxu3 %v2086_v60  ;;  %2391 = vmatpush.msra.mxu0 %v1786_v10  ;;  %v1882_v63 = vld [vmem:[#allocation7 + $0xa88] sm:$0xff]  ;;  %v4675_v20 = vrot.slane %v4613_v2, 4  ;;  %v4678_v53 = vrot.slane %v4613_v2, 5 }
 0x127   :  { %v2216_v58 = vsel %vm2179_vm5, %v4456_v25, %v2215_v45  ;;  %v1978_v55 = vld [vmem:[#allocation7 + $0xd88] sm:$0xff]  ;;  %v4681_v43 = vrot.slane %v4613_v2, 6  ;;  %2410 = vmatpush.msra.mxu1 %v1888_v62  ;;  %2430 = vmatpush.msra.mxu2 %v1984_v59  ;;  %v1780_v25 = vld [vmem:[#allocation7 + $0x758] sm:$0xff]  ;;  %v4687_v47 = vrot.slane %v4613_v2, 7  ;;  %v543_v3 = vmul.f32 %v4642_v39, %v5065_v12 }
 0x128   :  { %v4684_v28 = vsel %vm2181_vm6, %v968_v4, %v2216_v58  ;;  %v2074_v18 = vld [vmem:[#allocation7 + $0x1088] sm:$0xff]  ;;  %v5064_v38 = vld [vmem:[#allocation56_spill] sm:$0xff]  ;;  %v497_v42 = vrot.slane %v4652_v51, 1  ;;  %2450 = vmatpush.msra.mxu3 %v2080_v29  ;;  %v549_v52 = vmul.f32 %v4650_v36, %v4470_v23  ;;  %v561_v4 = vmul.f32 %v4675_v20, %v4606_v50  ;;  %v5067_v10 = vld [vmem:[#allocation43_spill] sm:$0xff]  ;;  %2392 = vmatpush.msra.mxu0 %v1780_v25 }
 0x129   :  { %v537_v17 = vmul.f32 %v4613_v2, %v5064_v38  ;;  %2340 = vmatmul.f32.vlgmr.msrb.gmra.mxu1 %v4684_v28  ;;  %v1876_v35 = vld [vmem:[#allocation7 + $0xa58] sm:$0xff]  ;;  %2431 = vmatpush.msra.mxu2 %v1978_v55  ;;  %v1774_v32 = vld [vmem:[#allocation7 + $0x728] sm:$0xff]  ;;  %v567_v60 = vmul.f32 %v4678_v53, %v4483_v49  ;;  %v573_v22 = vmul.f32 %v4681_v43, %v5067_v10  ;;  %v2992_v23 = vrot.slane %v543_v3, 7 }
 0x12a   :  { %v1972_v0 = vld [vmem:[#allocation7 + $0xd58] sm:$0xff]  ;;  %2411 = vmatpush.msra.mxu1 %v1882_v63  ;;  %v4706_v6 = vmul.f32 %v4687_v47, %v486_v34  ;;  %v492_v62 = vadd.f32 %v491_v27, %v4632_v61  ;;  %v4710_v59 = vadd.f32 %v513_v41, %v4622_v48  ;;  %2451 = vmatpush.msra.mxu3 %v2074_v18  ;;  %v1870_v50 = vld [vmem:[#allocation7 + $0xa28] sm:$0xff]  ;;  %v2994_v45 = vrot.slane %v549_v52, 6 }
 0x12b   :  { %v5066_v37 = vld [vmem:[#allocation32_spill] sm:$0xff]  ;;  %v1966_v8 = vld [vmem:[#allocation7 + $0xd28] sm:$0xff]  ;;  %v2998_v29 = vrot.slane %v561_v4, 4  ;;  %2432 = vmatpush.msra.mxu2 %v1972_v0  ;;  %v2993_v63 = vsel %vm2169_vm15, %v2992_v23, %v537_v17  ;;  %v3000_v55 = vrot.slane %v567_v60, 3  ;;  %2393 = vmatpush.msra.mxu0 %v1774_v32  ;;  %v3002_v18 = vrot.slane %v573_v22, 2 }
 0x12c   :  { %v555_v24 = vmul.f32 %v4665_v9, %v5066_v37  ;;  %v2068_v40 = vld [vmem:[#allocation7 + $0x1058] sm:$0xff]  ;;  %2412 = vmatpush.msra.mxu1 %v1876_v35  ;;  %v2062_v49 = vld [vmem:[#allocation7 + $0x1028] sm:$0xff]  ;;  %v2995_v27 = vsel %vm2171_vm1, %v2994_v45, %v2993_v63  ;;  %v3004_v37 = vrot.slane %v4706_v6, 1  ;;  %v568_v22 = vmul.f32 %v4678_v53, %v4488_v7 }
 0x12d   :  { %v1768_v58 = vld [vmem:[#allocation7 + $0x6f8] sm:$0xff]  ;;  %v5068_v38 = vld [vmem:[#allocation57_spill] sm:$0xff]  ;;  %2452 = vmatpush.msra.mxu3 %v2068_v40  ;;  %v5069_v25 = vld [vmem:[#allocation50_spill] sm:$0xff]  ;;  %2433 = vmatpush.msra.mxu2 %v1966_v8  ;;  %v562_v40 = vmul.f32 %v4675_v20, %v4611_v21  ;;  %v580_v21 = vmul.f32 %v4687_v47, %v492_v62 }
 0x12e   :  { %v2996_v34 = vrot.slane %v555_v24, 5  ;;  %v538_v61 = vmul.f32 %v4613_v2, %v5068_v38  ;;  %v1864_v48 = vld [vmem:[#allocation7 + $0x9f8] sm:$0xff]  ;;  %v544_v12 = vmul.f32 %v4642_v39, %v5069_v25  ;;  %v5070_v3 = vld [vmem:[#allocation62_spill] sm:$0xff]  ;;  %2413 = vmatpush.msra.mxu1 %v1870_v50  ;;  %v5071_v24 = vld [vmem:[#allocation33_spill] sm:$0xff]  ;;  %2394 = vmatpush.msra.mxu0 %v1768_v58  ;;  %v3014_v25 = vrot.slane %v568_v22, 3 }
 0x12f   :  { %v1960_v41 = vld [vmem:[#allocation7 + $0xcf8] sm:$0xff]  ;;  %v550_v35 = vmul.f32 %v4650_v36, %v5070_v3  ;;  %v1762_v0 = vld [vmem:[#allocation7 + $0x6c8] sm:$0xff]  ;;  %v556_v4 = vmul.f32 %v4665_v9, %v5071_v24  ;;  %2453 = vmatpush.msra.mxu3 %v2062_v49 }
 0x130   :  { %v2056_v17 = vld [vmem:[#allocation7 + $0xff8] sm:$0xff]  ;;  %v2997_v52 = vsel %vm2173_vm2, %v2996_v34, %v2995_v27  ;;  %v1858_v32 = vld [vmem:[#allocation7 + $0x9c8] sm:$0xff]  ;;  %v3006_v8 = vrot.slane %v544_v12, 7  ;;  %2414 = vmatpush.msra.mxu1 %v1864_v48  ;;  %2434 = vmatpush.msra.mxu2 %v1960_v41  ;;  %v3012_v27 = vrot.slane %v562_v40, 4  ;;  %v498_v48 = vadd.f32 %v497_v42, %v4652_v51 }
 0x131   :  { %v1954_v60 = vld [vmem:[#allocation7 + $0xcc8] sm:$0xff]  ;;  %v2999_v10 = vsel %vm2175_vm3, %v2998_v29, %v2997_v52  ;;  %v5072_v23 = vld [vmem:[#allocation44_spill] sm:$0xff]  ;;  %v3008_v49 = vrot.slane %v550_v35, 6  ;;  %v3010_v58 = vrot.slane %v556_v4, 5  ;;  %2454 = vmatpush.msra.mxu3 %v2056_v17  ;;  %2395 = vmatpush.msra.mxu0 %v1762_v0  ;;  %v3018_v17 = vrot.slane %v580_v21, 1  ;;  %v5074_v42 = vld [vmem:[#allocation51_spill] sm:$0xff] }
 0x132   :  { %v574_v50 = vmul.f32 %v4681_v43, %v5072_v23  ;;  %v2050_v6 = vld [vmem:[#allocation7 + $0xfc8] sm:$0xff]  ;;  %v1756_v45 = vld [vmem:[#allocation7 + $0x698] sm:$0xff]  ;;  %v3001_v63 = vsel %vm2177_vm4, %v3000_v55, %v2999_v10  ;;  %v3007_v38 = vsel %vm2169_vm15, %v3006_v8, %v538_v61  ;;  %v503_v55 = vrot.slane %v4659_v33, 1  ;;  %2415 = vmatpush.msra.mxu1 %v1858_v32  ;;  %2435 = vmatpush.msra.mxu2 %v1954_v60 }
 0x133   :  { %v1852_v29 = vld [vmem:[#allocation7 + $0x998] sm:$0xff]  ;;  %v3003_v7 = vsel %vm2179_vm5, %v3002_v18, %v3001_v63  ;;  %v1750_v41 = vld [vmem:[#allocation7 + $0x668] sm:$0xff]  ;;  %v3009_v3 = vsel %vm2171_vm1, %v3008_v49, %v3007_v38  ;;  %2455 = vmatpush.msra.mxu3 %v2050_v6  ;;  %2396 = vmatpush.msra.mxu0 %v1756_v45  ;;  %v545_v52 = vmul.f32 %v4642_v39, %v5074_v42 }
 0x134   :  { %v1948_v34 = vld [vmem:[#allocation7 + $0xc98] sm:$0xff]  ;;  %v4740_v12 = vsel %vm2181_vm6, %v3004_v37, %v3003_v7  ;;  %v1846_v61 = vld [vmem:[#allocation7 + $0x968] sm:$0xff]  ;;  %v3011_v35 = vsel %vm2173_vm2, %v3010_v58, %v3009_v3  ;;  %2416 = vmatpush.msra.mxu1 %v1852_v29  ;;  %v3016_v40 = vrot.slane %v574_v50, 2  ;;  %v563_v45 = vmul.f32 %v4675_v20, %v4620_v15 }
 0x135   :  { %v2044_v62 = vld [vmem:[#allocation7 + $0xf98] sm:$0xff]  ;;  %v1942_v18 = vld [vmem:[#allocation7 + $0xc68] sm:$0xff]  ;;  %2436 = vmatpush.msra.mxu2 %v1948_v34  ;;  %v3013_v4 = vsel %vm2175_vm3, %v3012_v27, %v3011_v35  ;;  %2397 = vmatpush.msra.mxu0 %v1750_v41  ;;  %v569_v63 = vmul.f32 %v4678_v53, %v4494_v56  ;;  %v3020_v21 = vrot.slane %v545_v52, 7  ;;  %v581_v7 = vmul.f32 %v4687_v47, %v498_v48 }
 0x136   :  { %v5073_v0 = vld [vmem:[#allocation58_spill] sm:$0xff]  ;;  %v1744_v37 = vld [vmem:[#allocation7 + $0x638] sm:$0xff]  ;;  %2456 = vmatpush.msra.mxu3 %v2044_v62  ;;  %v3015_v6 = vsel %vm2177_vm4, %v3014_v25, %v3013_v4  ;;  %2417 = vmatpush.msra.mxu1 %v1846_v61  ;;  %v5077_v29 = vld [vmem:[#allocation45_spill] sm:$0xff]  ;;  %v3026_v41 = vrot.slane %v563_v45, 4  ;;  %v504_v3 = vadd.f32 %v503_v55, %v4659_v33  ;;  %v509_v61 = vrot.slane %v4668_v14, 1 }
 0x137   :  { %v539_v51 = vmul.f32 %v4613_v2, %v5073_v0  ;;  %v2038_v24 = vld [vmem:[#allocation7 + $0xf68] sm:$0xff]  ;;  %v5075_v32 = vld [vmem:[#allocation63_spill] sm:$0xff]  ;;  %2437 = vmatpush.msra.mxu2 %v1942_v18  ;;  %v3017_v58 = vsel %vm2179_vm5, %v3016_v40, %v3015_v6  ;;  %v575_v34 = vmul.f32 %v4681_v43, %v5077_v29  ;;  %2398 = vmatpush.msra.mxu0 %v1744_v37  ;;  %v3028_v35 = vrot.slane %v569_v63, 3  ;;  %v5079_v52 = vld [vmem:[#allocation52_spill] sm:$0xff] }
 0x138   :  { %v551_v60 = vmul.f32 %v4650_v36, %v5075_v32  ;;  %v5076_v10 = vld [vmem:[#allocation34_spill] sm:$0xff]  ;;  %v1840_v23 = vld [vmem:[#allocation7 + $0x938] sm:$0xff]  ;;  %2457 = vmatpush.msra.mxu3 %v2038_v24  ;;  %v4763_v25 = vsel %vm2181_vm6, %v3018_v17, %v3017_v58  ;;  %v3032_v17 = vrot.slane %v581_v7, 1  ;;  %v546_v24 = vmul.f32 %v4642_v39, %v5079_v52  ;;  %v1637_v33 = vld [vmem:[#allocation7 + $0x2e0] sm:$0xff] }
 0x139   :  { %v557_v22 = vmul.f32 %v4665_v9, %v5076_v10  ;;  %v1936_v8 = vld [vmem:[#allocation7 + $0xc38] sm:$0xff]  ;;  %v1738_v49 = vld [vmem:[#allocation7 + $0x608] sm:$0xff]  ;;  %v3021_v56 = vsel %vm2169_vm15, %v3020_v21, %v539_v51  ;;  %2418 = vmatpush.msra.mxu1 %v1840_v23  ;;  %v3030_v37 = vrot.slane %v575_v34, 2  ;;  %v1733_v10 = vld [vmem:[#allocation7 + $0x5e0] sm:$0xff]  ;;  %v570_v6 = vmul.f32 %v4678_v53, %v4505_v13 }
 0x13a   :  { %v2032_v50 = vld [vmem:[#allocation7 + $0xf38] sm:$0xff]  ;;  %v3022_v38 = vrot.slane %v551_v60, 6  ;;  %v1834_v27 = vld [vmem:[#allocation7 + $0x908] sm:$0xff]  ;;  %2438 = vmatpush.msra.mxu2 %v1936_v8  ;;  %2399 = vmatpush.msra.mxu0 %v1738_v49  ;;  %v564_v8 = vmul.f32 %v4675_v20, %v4630_v1  ;;  %v3034_v45 = vrot.slane %v546_v24, 7  ;;  %v1925_v63 = vld [vmem:[#allocation7 + $0xbe0] sm:$0xff]  ;;  %v582_v29 = vmul.f32 %v4687_v47, %v504_v3 }
 0x13b   :  { %v1930_v15 = vld [vmem:[#allocation7 + $0xc08] sm:$0xff]  ;;  %v3024_v62 = vrot.slane %v557_v22, 5  ;;  %2458 = vmatpush.msra.mxu3 %v2032_v50  ;;  %v5078_v42 = vld [vmem:[#allocation59_spill] sm:$0xff]  ;;  %2419 = vmatpush.msra.mxu1 %v1834_v27  ;;  %v5080_v4 = vld [vmem:[#allocation64_spill] sm:$0xff] }
 0x13c   :  { %v2026_v18 = vld [vmem:[#allocation7 + $0xf08] sm:$0xff]  ;;  %v3023_v48 = vsel %vm2171_vm1, %v3022_v38, %v3021_v56  ;;  %v540_v51 = vmul.f32 %v4613_v2, %v5078_v42  ;;  %2439 = vmatpush.msra.mxu2 %v1930_v15  ;;  %v552_v40 = vmul.f32 %v4650_v36, %v5080_v4  ;;  %v5081_v32 = vld [vmem:[#allocation35_spill] sm:$0xff]  ;;  %2400 = vmatmul.f32.vlgmr.msra.gmra.mxu0 %v4576_v57  ;;  %v1829_v22 = vld [vmem:[#allocation7 + $0x8e0] sm:$0xff]  ;;  %v3040_v15 = vrot.slane %v564_v8, 4 }
 0x13d   :  { %v3025_v0 = vsel %vm2173_vm2, %v3024_v62, %v3023_v48  ;;  %v558_v60 = vmul.f32 %v4665_v9, %v5081_v32  ;;  %2459 = vmatpush.msra.mxu3 %v2026_v18  ;;  %2420 = vmatmul.f32.vlgmr.msra.gmra.mxu1 %v4583_v26  ;;  %v1631_v21 = vld [vmem:[#allocation7 + $0x2b0] sm:$0xff]  ;;  %v510_v56 = vadd.f32 %v509_v61, %v4668_v14  ;;  %v515_v62 = vrot.slane %v4710_v59, 1  ;;  %v1625_v3 = vld [vmem:[#allocation7 + $0x280] sm:$0xff] }
 0x13e   :  { %v3027_v55 = vsel %vm2175_vm3, %v3026_v41, %v3025_v0  ;;  %2440 = vmatmul.f32.vlgmr.msra.gmra.mxu2 %v4625_v19  ;;  %v5082_v49 = vld [vmem:[#allocation46_spill] sm:$0xff]  ;;  %v3036_v34 = vrot.slane %v552_v40, 6  ;;  %2460 = vmatmul.f32.vlgmr.msra.gmra.mxu3 %v4684_v28  ;;  %v3035_v38 = vsel %vm2169_vm15, %v3034_v45, %v540_v51  ;;  %v3042_v48 = vrot.slane %v570_v6, 3  ;;  %v1817_v0 = vld [vmem:[#allocation7 + $0x880] sm:$0xff] }
 0x13f   :  { %v3029_v23 = vsel %vm2177_vm4, %v3028_v35, %v3027_v55  ;;  %v576_v58 = vmul.f32 %v4681_v43, %v5082_v49  ;;  %2464 = vmatpush.msrb.mxu0 %v1637_v33  ;;  %v1727_v1 = vld [vmem:[#allocation7 + $0x5b0] sm:$0xff]  ;;  %v3038_v27 = vrot.slane %v558_v60, 5  ;;  %2484 = vmatpush.msrb.mxu1 %v1733_v10  ;;  %v1721_v35 = vld [vmem:[#allocation7 + $0x580] sm:$0xff]  ;;  %v3046_v42 = vrot.slane %v582_v29, 1 }
 0x140   :  { %v3031_v50 = vsel %vm2179_vm5, %v3030_v37, %v3029_v23  ;;  %v1823_v13 = vld [vmem:[#allocation7 + $0x8b0] sm:$0xff]  ;;  %2504 = vmatpush.msrb.mxu2 %v1829_v22  ;;  %v3037_v18 = vsel %vm2171_vm1, %v3036_v34, %v3035_v38  ;;  %2524 = vmatpush.msrb.mxu3 %v1925_v63  ;;  %v5083_v51 = vld [vmem:[#allocation60_spill] sm:$0xff]  ;;  %v5084_v14 = vld [vmem:[#allocation53_spill] sm:$0xff]  ;;  %v565_v8 = vmul.f32 %v4675_v20, %v4636_v11 }
 0x141   :  { %v4793_v7 = vsel %vm2181_vm6, %v3032_v17, %v3031_v50  ;;  %v1919_v41 = vld [vmem:[#allocation7 + $0xbb0] sm:$0xff]  ;;  %2465 = vmatpush.msrb.mxu0 %v1631_v21  ;;  %v3039_v17 = vsel %vm2173_vm2, %v3038_v27, %v3037_v18  ;;  %v541_v52 = vmul.f32 %v4613_v2, %v5083_v51  ;;  %v547_v61 = vmul.f32 %v4642_v39, %v5084_v14  ;;  %v1913_v24 = vld [vmem:[#allocation7 + $0xb80] sm:$0xff] }
 0x142   :  { %2485 = vmatpush.msrb.mxu1 %v1727_v1  ;;  %2505 = vmatpush.msrb.mxu2 %v1823_v13  ;;  %v1619_v33 = vld [vmem:[#allocation7 + $0x250] sm:$0xff]  ;;  %v3041_v55 = vsel %vm2175_vm3, %v3040_v15, %v3039_v17  ;;  %v3044_v37 = vrot.slane %v576_v58, 2  ;;  %v5085_v4 = vld [vmem:[#allocation65_spill] sm:$0xff]  ;;  %v5086_v32 = vld [vmem:[#allocation36_spill] sm:$0xff]  ;;  %v571_v6 = vmul.f32 %v4678_v53, %v4509_v5  ;;  %v583_v29 = vmul.f32 %v4687_v47, %v510_v56 }
 0x143   :  { %v553_v40 = vmul.f32 %v4650_v36, %v5085_v4  ;;  %v559_v60 = vmul.f32 %v4665_v9, %v5086_v32  ;;  %2525 = vmatpush.msrb.mxu3 %v1919_v41  ;;  %2466 = vmatpush.msrb.mxu0 %v1625_v3  ;;  %v1715_v10 = vld [vmem:[#allocation7 + $0x550] sm:$0xff]  ;;  %v3043_v23 = vsel %vm2177_vm4, %v3042_v48, %v3041_v55  ;;  %v3048_v45 = vrot.slane %v547_v61, 7  ;;  %v1613_v21 = vld [vmem:[#allocation7 + $0x220] sm:$0xff] }
 0x144   :  { %v1811_v22 = vld [vmem:[#allocation7 + $0x850] sm:$0xff]  ;;  %2486 = vmatpush.msrb.mxu1 %v1721_v35  ;;  %2506 = vmatpush.msrb.mxu2 %v1817_v0  ;;  %v3045_v50 = vsel %vm2179_vm5, %v3044_v37, %v3043_v23  ;;  %v1709_v1 = vld [vmem:[#allocation7 + $0x520] sm:$0xff]  ;;  %v3054_v27 = vrot.slane %v565_v8, 4  ;;  %v336_v15 = vadd.f32 %v335_v16, %v4472_v30  ;;  %v516_v41 = vadd.f32 %v515_v62, %v4710_v59 }
 0x145   :  { %v1907_v63 = vld [vmem:[#allocation7 + $0xb50] sm:$0xff]  ;;  %v3050_v34 = vrot.slane %v553_v40, 6  ;;  %2526 = vmatpush.msrb.mxu3 %v1913_v24  ;;  %2467 = vmatpush.msrb.mxu0 %v1619_v33  ;;  %v1805_v11 = vld [vmem:[#allocation7 + $0x820] sm:$0xff]  ;;  %v4819_v13 = vsel %vm2181_vm6, %v3046_v42, %v3045_v50  ;;  %v3049_v5 = vsel %vm2169_vm15, %v3048_v45, %v541_v52  ;;  %v3052_v38 = vrot.slane %v559_v60, 5 }
 0x146   :  { %v5087_v49 = vld [vmem:[#allocation47_spill] sm:$0xff]  ;;  %2487 = vmatpush.msrb.mxu1 %v1715_v10  ;;  %2507 = vmatpush.msrb.mxu2 %v1811_v22  ;;  %v1901_v56 = vld [vmem:[#allocation7 + $0xb20] sm:$0xff]  ;;  %v3056_v48 = vrot.slane %v571_v6, 3  ;;  %v3060_v42 = vrot.slane %v583_v29, 1  ;;  %v5089_v30 = vld [vmem:[#allocation54_spill] sm:$0xff]  ;;  %v554_v24 = vmul.f32 %v4650_v36, %v336_v15  ;;  %v572_v40 = vmul.f32 %v4678_v53, %v4511_v44 }
 0x147   :  { %v577_v58 = vmul.f32 %v4681_v43, %v5087_v49  ;;  %v1607_v3 = vld [vmem:[#allocation7 + $0x1f0] sm:$0xff]  ;;  %v3051_v18 = vsel %vm2171_vm1, %v3050_v34, %v3049_v5  ;;  %2527 = vmatpush.msrb.mxu3 %v1907_v63  ;;  %2468 = vmatpush.msrb.mxu0 %v1613_v21  ;;  %v5088_v51 = vld [vmem:[#allocation61_spill] sm:$0xff]  ;;  %v548_v16 = vmul.f32 %v4642_v39, %v5089_v30 }
 0x148   :  { %v1703_v35 = vld [vmem:[#allocation7 + $0x4f0] sm:$0xff]  ;;  %v3053_v17 = vsel %vm2173_vm2, %v3052_v38, %v3051_v18  ;;  %v542_v52 = vmul.f32 %v4613_v2, %v5088_v51  ;;  %2488 = vmatpush.msrb.mxu1 %v1709_v1  ;;  %2508 = vmatpush.msrb.mxu2 %v1805_v11  ;;  %v1601_v62 = vld [vmem:[#allocation7 + $0x1c0] sm:$0xff]  ;;  %v566_v39 = vmul.f32 %v4675_v20, %v4639_v46  ;;  %v3064_v8 = vrot.slane %v554_v24, 6 }
 0x149   :  { %v1799_v0 = vld [vmem:[#allocation7 + $0x7f0] sm:$0xff]  ;;  %v3055_v14 = vsel %vm2175_vm3, %v3054_v27, %v3053_v17  ;;  %v3058_v61 = vrot.slane %v577_v58, 2  ;;  %v5090_v33 = vld [vmem:[#allocation37_spill] sm:$0xff]  ;;  %2528 = vmatpush.msrb.mxu3 %v1901_v56  ;;  %2469 = vmatpush.msrb.mxu0 %v1607_v3  ;;  %v3062_v32 = vrot.slane %v548_v16, 7  ;;  %v584_v23 = vmul.f32 %v4687_v47, %v516_v41 }
 0x14a   :  { %v1895_v59 = vld [vmem:[#allocation7 + $0xaf0] sm:$0xff]  ;;  %v560_v55 = vmul.f32 %v4665_v9, %v5090_v33  ;;  %v1697_v37 = vld [vmem:[#allocation7 + $0x4c0] sm:$0xff]  ;;  %v3057_v2 = vsel %vm2177_vm4, %v3056_v48, %v3055_v14  ;;  %2489 = vmatpush.msrb.mxu1 %v1703_v35  ;;  %2509 = vmatpush.msrb.mxu2 %v1799_v0  ;;  %v3068_v45 = vrot.slane %v566_v39, 4  ;;  %v3070_v50 = vrot.slane %v572_v40, 3 }
 0x14b   :  { %v1793_v4 = vld [vmem:[#allocation7 + $0x7c0] sm:$0xff]  ;;  %v1595_v36 = vld [vmem:[#allocation7 + $0x190] sm:$0xff]  ;;  %v3059_v10 = vsel %vm2179_vm5, %v3058_v61, %v3057_v2  ;;  %2529 = vmatpush.msrb.mxu3 %v1895_v59  ;;  %2470 = vmatpush.msrb.mxu0 %v1601_v62  ;;  %v3063_v44 = vsel %vm2169_vm15, %v3062_v32, %v542_v52  ;;  %v3074_v29 = vrot.slane %v584_v23, 1 }
 0x14c   :  { %v1889_v60 = vld [vmem:[#allocation7 + $0xac0] sm:$0xff]  ;;  %v1691_v6 = vld [vmem:[#allocation7 + $0x490] sm:$0xff]  ;;  %v4846_v20 = vsel %vm2181_vm6, %v3060_v42, %v3059_v10  ;;  %v3066_v53 = vrot.slane %v560_v55, 5  ;;  %2490 = vmatpush.msrb.mxu1 %v1697_v37  ;;  %2510 = vmatpush.msrb.mxu2 %v1793_v4 }
 0x14d   :  { %v5091_v9 = vld [vmem:[#allocation48_spill] sm:$0xff]  ;;  %v1787_v46 = vld [vmem:[#allocation7 + $0x790] sm:$0xff]  ;;  %2530 = vmatpush.msrb.mxu3 %v1889_v60  ;;  %2471 = vmatpush.msrb.mxu0 %v1595_v36 }
 0x14e   :  { %v578_v22 = vmul.f32 %v4681_v43, %v5091_v9  ;;  %v1883_v63 = vld [vmem:[#allocation7 + $0xa90] sm:$0xff]  ;;  %v1589_v21 = vld [vmem:[#allocation7 + $0x160] sm:$0xff]  ;;  %v3065_v43 = vsel %vm2171_vm1, %v3064_v8, %v3063_v44  ;;  %2491 = vmatpush.msrb.mxu1 %v1691_v6  ;;  %2511 = vmatpush.msrb.mxu2 %v1787_v46  ;;  %v1638_v9 = vld [vmem:[#allocation7 + $0x2e8] sm:$0xff] }
 0x14f   :  { %v1685_v47 = vld [vmem:[#allocation7 + $0x460] sm:$0xff]  ;;  %v3067_v58 = vsel %vm2173_vm2, %v3066_v53, %v3065_v43  ;;  %v1583_v1 = vld [vmem:[#allocation7 + $0x130] sm:$0xff]  ;;  %2531 = vmatpush.msrb.mxu3 %v1883_v63  ;;  %2472 = vmatpush.msrb.mxu0 %v1589_v21  ;;  %v1632_v6 = vld [vmem:[#allocation7 + $0x2b8] sm:$0xff] }
 0x150   :  { %v1781_v49 = vld [vmem:[#allocation7 + $0x760] sm:$0xff]  ;;  %v3069_v11 = vsel %vm2175_vm3, %v3068_v45, %v3067_v58  ;;  %v3072_v5 = vrot.slane %v578_v22, 2  ;;  %v1679_v38 = vld [vmem:[#allocation7 + $0x430] sm:$0xff]  ;;  %2492 = vmatpush.msrb.mxu1 %v1685_v47  ;;  %v1734_v22 = vld [vmem:[#allocation7 + $0x5e8] sm:$0xff] }
 0x151   :  { %v1877_v34 = vld [vmem:[#allocation7 + $0xa60] sm:$0xff]  ;;  %v1775_v27 = vld [vmem:[#allocation7 + $0x730] sm:$0xff]  ;;  %v3071_v15 = vsel %vm2177_vm4, %v3070_v50, %v3069_v11  ;;  %2512 = vmatpush.msrb.mxu2 %v1781_v49  ;;  %2473 = vmatpush.msrb.mxu0 %v1583_v1  ;;  %v1728_v46 = vld [vmem:[#allocation7 + $0x5b8] sm:$0xff] }
 0x152   :  { %v1871_v41 = vld [vmem:[#allocation7 + $0xa30] sm:$0xff]  ;;  %v1577_v56 = vld [vmem:[#allocation7 + $0x100] sm:$0xff]  ;;  %v3073_v3 = vsel %vm2179_vm5, %v3072_v5, %v3071_v15  ;;  %2532 = vmatpush.msrb.mxu3 %v1877_v34  ;;  %2493 = vmatpush.msrb.mxu1 %v1679_v38  ;;  %v1626_v45 = vld [vmem:[#allocation7 + $0x288] sm:$0xff] }
 0x153   :  { %v1673_v18 = vld [vmem:[#allocation7 + $0x400] sm:$0xff]  ;;  %v4855_v35 = vsel %vm2181_vm6, %v3074_v29, %v3073_v3  ;;  %2513 = vmatpush.msrb.mxu2 %v1775_v27  ;;  %v1571_v17 = vld [vmem:[#allocation7 + $0xd0] sm:$0xff]  ;;  %2474 = vmatpush.msrb.mxu0 %v1577_v56  ;;  %v1722_v63 = vld [vmem:[#allocation7 + $0x588] sm:$0xff] }
 0x154   :  { %v1769_v48 = vld [vmem:[#allocation7 + $0x700] sm:$0xff]  ;;  %2533 = vmatpush.msrb.mxu3 %v1871_v41  ;;  %v1667_v42 = vld [vmem:[#allocation7 + $0x3d0] sm:$0xff]  ;;  %2494 = vmatpush.msrb.mxu1 %v1673_v18  ;;  %v1620_v50 = vld [vmem:[#allocation7 + $0x258] sm:$0xff] }
 0x155   :  { %v1865_v0 = vld [vmem:[#allocation7 + $0xa00] sm:$0xff]  ;;  %v1763_v51 = vld [vmem:[#allocation7 + $0x6d0] sm:$0xff]  ;;  %2514 = vmatpush.msrb.mxu2 %v1769_v48  ;;  %2475 = vmatpush.msrb.mxu0 %v1571_v17  ;;  %v1716_v47 = vld [vmem:[#allocation7 + $0x558] sm:$0xff] }
 0x156   :  { %v1859_v52 = vld [vmem:[#allocation7 + $0x9d0] sm:$0xff]  ;;  %v1565_v30 = vld [vmem:[#allocation7 + $0xa0] sm:$0xff]  ;;  %2534 = vmatpush.msrb.mxu3 %v1865_v0  ;;  %2495 = vmatpush.msrb.mxu1 %v1667_v42  ;;  %v1614_v29 = vld [vmem:[#allocation7 + $0x228] sm:$0xff] }
 0x157   :  { %v1661_v16 = vld [vmem:[#allocation7 + $0x3a0] sm:$0xff]  ;;  %2515 = vmatpush.msrb.mxu2 %v1763_v51  ;;  %v1559_v14 = vld [vmem:[#allocation7 + $0x70] sm:$0xff]  ;;  %2476 = vmatpush.msrb.mxu0 %v1565_v30  ;;  %v1710_v34 = vld [vmem:[#allocation7 + $0x528] sm:$0xff] }
 0x158   :  { %v1757_v59 = vld [vmem:[#allocation7 + $0x6a0] sm:$0xff]  ;;  %2535 = vmatpush.msrb.mxu3 %v1859_v52  ;;  %v1655_v61 = vld [vmem:[#allocation7 + $0x370] sm:$0xff]  ;;  %2496 = vmatpush.msrb.mxu1 %v1661_v16  ;;  %v1608_v5 = vld [vmem:[#allocation7 + $0x1f8] sm:$0xff] }
 0x159   :  { %v1853_v62 = vld [vmem:[#allocation7 + $0x9a0] sm:$0xff]  ;;  %v1751_v24 = vld [vmem:[#allocation7 + $0x670] sm:$0xff]  ;;  %2516 = vmatpush.msrb.mxu2 %v1757_v59  ;;  %2477 = vmatpush.msrb.mxu0 %v1559_v14  ;;  %v1704_v38 = vld [vmem:[#allocation7 + $0x4f8] sm:$0xff] }
 0x15a   :  { %v1847_v33 = vld [vmem:[#allocation7 + $0x970] sm:$0xff]  ;;  %v1553_v55 = vld [vmem:[#allocation7 + $0x40] sm:$0xff]  ;;  %2536 = vmatpush.msrb.mxu3 %v1853_v62  ;;  %2497 = vmatpush.msrb.mxu1 %v1655_v61  ;;  %v1602_v41 = vld [vmem:[#allocation7 + $0x1c8] sm:$0xff] }
 0x15b   :  { %v1649_v37 = vld [vmem:[#allocation7 + $0x340] sm:$0xff]  ;;  %2517 = vmatpush.msrb.mxu2 %v1751_v24  ;;  %v1547_v39 = vld [vmem:[#allocation7 + $0x10] sm:$0xff]  ;;  %2478 = vmatpush.msrb.mxu0 %v1553_v55  ;;  %v1698_v56 = vld [vmem:[#allocation7 + $0x4c8] sm:$0xff] }
 0x15c   :  { %v1745_v4 = vld [vmem:[#allocation7 + $0x640] sm:$0xff]  ;;  %2537 = vmatpush.msrb.mxu3 %v1847_v33  ;;  %v1643_v40 = vld [vmem:[#allocation7 + $0x310] sm:$0xff]  ;;  %2498 = vmatpush.msrb.mxu1 %v1649_v37  ;;  %v1596_v48 = vld [vmem:[#allocation7 + $0x198] sm:$0xff] }
 0x15d   :  { %v1841_v2 = vld [vmem:[#allocation7 + $0x940] sm:$0xff]  ;;  %v1739_v32 = vld [vmem:[#allocation7 + $0x610] sm:$0xff]  ;;  %2518 = vmatpush.msrb.mxu2 %v1745_v4  ;;  %2479 = vmatpush.msrb.mxu0 %v1547_v39  ;;  %v1692_v0 = vld [vmem:[#allocation7 + $0x498] sm:$0xff] }
 0x15e   :  { %v1835_v60 = vld [vmem:[#allocation7 + $0x910] sm:$0xff]  ;;  %2538 = vmatpush.msrb.mxu3 %v1841_v2  ;;  %2499 = vmatpush.msrb.mxu1 %v1643_v40  ;;  %v2021_v36 = vld [vmem:[#allocation7 + $0xee0] sm:$0xff]  ;;  %v1590_v51 = vld [vmem:[#allocation7 + $0x168] sm:$0xff] }
 0x15f   :  { %2519 = vmatpush.msrb.mxu2 %v1739_v32  ;;  %2480 = vmatmul.f32.vlgmr.msrb.gmra.mxu0 %v4525_v54  ;;  %v2117_v10 = vld [vmem:[#allocation7 + $0x11e0] sm:$0xff]  ;;  %v2015_v23 = vld [vmem:[#allocation7 + $0xeb0] sm:$0xff]  ;;  %v1686_v52 = vld [vmem:[#allocation7 + $0x468] sm:$0xff] }
 0x160   :  { %2539 = vmatpush.msrb.mxu3 %v1835_v60  ;;  %2500 = vmatmul.f32.vlgmr.msrb.gmra.mxu1 %v4567_v31  ;;  %v2111_v8 = vld [vmem:[#allocation7 + $0x11b0] sm:$0xff]  ;;  %v2009_v44 = vld [vmem:[#allocation7 + $0xe80] sm:$0xff]  ;;  %v1584_v59 = vld [vmem:[#allocation7 + $0x138] sm:$0xff] }
 0x161   :  { %2520 = vmatmul.f32.vlgmr.msrb.gmra.mxu2 %v4576_v57  ;;  %2540 = vmatmul.f32.vlgmr.msrb.gmra.mxu3 %v4583_v26  ;;  %v2105_v53 = vld [vmem:[#allocation7 + $0x1180] sm:$0xff]  ;;  %v2003_v21 = vld [vmem:[#allocation7 + $0xe50] sm:$0xff]  ;;  %v1680_v62 = vld [vmem:[#allocation7 + $0x438] sm:$0xff] }
 0x162   :  { %2544 = vmatpush.msra.mxu0 %v2021_v36  ;;  %2564 = vmatpush.msra.mxu1 %v2117_v10  ;;  %v2099_v43 = vld [vmem:[#allocation7 + $0x1150] sm:$0xff]  ;;  %v1997_v49 = vld [vmem:[#allocation7 + $0xe20] sm:$0xff]  ;;  %v1578_v24 = vld [vmem:[#allocation7 + $0x108] sm:$0xff] }
 0x163   :  { %2584 = vmatpush.msra.mxu2 %v1638_v9  ;;  %2604 = vmatpush.msra.mxu3 %v1734_v22  ;;  %v2093_v58 = vld [vmem:[#allocation7 + $0x1120] sm:$0xff]  ;;  %v1991_v1 = vld [vmem:[#allocation7 + $0xdf0] sm:$0xff]  ;;  %v1674_v33 = vld [vmem:[#allocation7 + $0x408] sm:$0xff] }
 0x164   :  { %2545 = vmatpush.msra.mxu0 %v2015_v23  ;;  %2565 = vmatpush.msra.mxu1 %v2111_v8  ;;  %v2087_v11 = vld [vmem:[#allocation7 + $0x10f0] sm:$0xff]  ;;  %v1985_v27 = vld [vmem:[#allocation7 + $0xdc0] sm:$0xff]  ;;  %v1572_v4 = vld [vmem:[#allocation7 + $0xd8] sm:$0xff] }
 0x165   :  { %2585 = vmatpush.msra.mxu2 %v1632_v6  ;;  %2605 = vmatpush.msra.mxu3 %v1728_v46  ;;  %v2081_v15 = vld [vmem:[#allocation7 + $0x10c0] sm:$0xff]  ;;  %v1979_v3 = vld [vmem:[#allocation7 + $0xd90] sm:$0xff]  ;;  %v1668_v2 = vld [vmem:[#allocation7 + $0x3d8] sm:$0xff] }
 0x166   :  { %2546 = vmatpush.msra.mxu0 %v2009_v44  ;;  %2566 = vmatpush.msra.mxu1 %v2105_v53  ;;  %v2075_v18 = vld [vmem:[#allocation7 + $0x1090] sm:$0xff]  ;;  %v1973_v17 = vld [vmem:[#allocation7 + $0xd60] sm:$0xff]  ;;  %v1566_v32 = vld [vmem:[#allocation7 + $0xa8] sm:$0xff] }
 0x167   :  { %2586 = vmatpush.msra.mxu2 %v1626_v45  ;;  %2606 = vmatpush.msra.mxu3 %v1722_v63  ;;  %v2069_v42 = vld [vmem:[#allocation7 + $0x1060] sm:$0xff]  ;;  %v1967_v30 = vld [vmem:[#allocation7 + $0xd30] sm:$0xff]  ;;  %v1662_v60 = vld [vmem:[#allocation7 + $0x3a8] sm:$0xff] }
 0x168   :  { %2547 = vmatpush.msra.mxu0 %v2003_v21  ;;  %2567 = vmatpush.msra.mxu1 %v2099_v43  ;;  %v2063_v16 = vld [vmem:[#allocation7 + $0x1030] sm:$0xff]  ;;  %v1961_v14 = vld [vmem:[#allocation7 + $0xd00] sm:$0xff]  ;;  %v1560_v9 = vld [vmem:[#allocation7 + $0x78] sm:$0xff] }
 0x169   :  { %2587 = vmatpush.msra.mxu2 %v1620_v50  ;;  %2607 = vmatpush.msra.mxu3 %v1716_v47  ;;  %v2057_v61 = vld [vmem:[#allocation7 + $0x1000] sm:$0xff]  ;;  %v1955_v55 = vld [vmem:[#allocation7 + $0xcd0] sm:$0xff]  ;;  %v1656_v22 = vld [vmem:[#allocation7 + $0x378] sm:$0xff] }
 0x16a   :  { %2548 = vmatpush.msra.mxu0 %v1997_v49  ;;  %2568 = vmatpush.msra.mxu1 %v2093_v58  ;;  %v2051_v37 = vld [vmem:[#allocation7 + $0xfd0] sm:$0xff]  ;;  %v1949_v39 = vld [vmem:[#allocation7 + $0xca0] sm:$0xff]  ;;  %v1554_v6 = vld [vmem:[#allocation7 + $0x48] sm:$0xff] }
 0x16b   :  { %2588 = vmatpush.msra.mxu2 %v1614_v29  ;;  %2608 = vmatpush.msra.mxu3 %v1710_v34  ;;  %v2045_v40 = vld [vmem:[#allocation7 + $0xfa0] sm:$0xff]  ;;  %v1943_v36 = vld [vmem:[#allocation7 + $0xc70] sm:$0xff]  ;;  %v1650_v46 = vld [vmem:[#allocation7 + $0x348] sm:$0xff] }
 0x16c   :  { %2549 = vmatpush.msra.mxu0 %v1991_v1  ;;  %2569 = vmatpush.msra.mxu1 %v2087_v11  ;;  %v2039_v10 = vld [vmem:[#allocation7 + $0xf70] sm:$0xff]  ;;  %v1937_v23 = vld [vmem:[#allocation7 + $0xc40] sm:$0xff]  ;;  %v1548_v45 = vld [vmem:[#allocation7 + $0x18] sm:$0xff] }
 0x16d   :  { %2589 = vmatpush.msra.mxu2 %v1608_v5  ;;  %2609 = vmatpush.msra.mxu3 %v1704_v38  ;;  %v2033_v8 = vld [vmem:[#allocation7 + $0xf40] sm:$0xff]  ;;  %v1931_v44 = vld [vmem:[#allocation7 + $0xc10] sm:$0xff]  ;;  %v1644_v63 = vld [vmem:[#allocation7 + $0x318] sm:$0xff] }
 0x16e   :  { %2550 = vmatpush.msra.mxu0 %v1985_v27  ;;  %2570 = vmatpush.msra.mxu1 %v2081_v15  ;;  %v2027_v53 = vld [vmem:[#allocation7 + $0xf10] sm:$0xff]  ;;  %v1830_v21 = vld [vmem:[#allocation7 + $0x8e8] sm:$0xff]  ;;  %v1824_v49 = vld [vmem:[#allocation7 + $0x8b8] sm:$0xff] }
 0x16f   :  { %2590 = vmatpush.msra.mxu2 %v1602_v41  ;;  %2610 = vmatpush.msra.mxu3 %v1698_v56  ;;  %v1926_v43 = vld [vmem:[#allocation7 + $0xbe8] sm:$0xff]  ;;  %v1920_v58 = vld [vmem:[#allocation7 + $0xbb8] sm:$0xff] }
 0x170   :  { %2551 = vmatpush.msra.mxu0 %v1979_v3  ;;  %2571 = vmatpush.msra.mxu1 %v2075_v18  ;;  %v2022_v50 = vld [vmem:[#allocation7 + $0xee8] sm:$0xff]  ;;  %v2016_v29 = vld [vmem:[#allocation7 + $0xeb8] sm:$0xff] }
 0x171   :  { %2591 = vmatpush.msra.mxu2 %v1596_v48  ;;  %2611 = vmatpush.msra.mxu3 %v1692_v0  ;;  %v2118_v47 = vld [vmem:[#allocation7 + $0x11e8] sm:$0xff]  ;;  %v2112_v34 = vld [vmem:[#allocation7 + $0x11b8] sm:$0xff] }
 0x172   :  { %2552 = vmatpush.msra.mxu0 %v1973_v17  ;;  %2572 = vmatpush.msra.mxu1 %v2069_v42  ;;  %v1818_v1 = vld [vmem:[#allocation7 + $0x888] sm:$0xff]  ;;  %v1812_v27 = vld [vmem:[#allocation7 + $0x858] sm:$0xff] }
 0x173   :  { %2592 = vmatpush.msra.mxu2 %v1590_v51  ;;  %2612 = vmatpush.msra.mxu3 %v1686_v52  ;;  %v1914_v11 = vld [vmem:[#allocation7 + $0xb88] sm:$0xff]  ;;  %v1908_v15 = vld [vmem:[#allocation7 + $0xb58] sm:$0xff] }
 0x174   :  { %2553 = vmatpush.msra.mxu0 %v1967_v30  ;;  %2573 = vmatpush.msra.mxu1 %v2063_v16  ;;  %v2010_v5 = vld [vmem:[#allocation7 + $0xe88] sm:$0xff]  ;;  %v2004_v41 = vld [vmem:[#allocation7 + $0xe58] sm:$0xff] }
 0x175   :  { %2593 = vmatpush.msra.mxu2 %v1584_v59  ;;  %2613 = vmatpush.msra.mxu3 %v1680_v62  ;;  %v2106_v38 = vld [vmem:[#allocation7 + $0x1188] sm:$0xff]  ;;  %v2100_v56 = vld [vmem:[#allocation7 + $0x1158] sm:$0xff] }
 0x176   :  { %2554 = vmatpush.msra.mxu0 %v1961_v14  ;;  %2574 = vmatpush.msra.mxu1 %v2057_v61  ;;  %v1806_v3 = vld [vmem:[#allocation7 + $0x828] sm:$0xff]  ;;  %v1800_v17 = vld [vmem:[#allocation7 + $0x7f8] sm:$0xff] }
 0x177   :  { %2594 = vmatpush.msra.mxu2 %v1578_v24  ;;  %2614 = vmatpush.msra.mxu3 %v1674_v33  ;;  %v1902_v18 = vld [vmem:[#allocation7 + $0xb28] sm:$0xff]  ;;  %v1896_v42 = vld [vmem:[#allocation7 + $0xaf8] sm:$0xff] }
 0x178   :  { %2555 = vmatpush.msra.mxu0 %v1955_v55  ;;  %2575 = vmatpush.msra.mxu1 %v2051_v37  ;;  %v1998_v48 = vld [vmem:[#allocation7 + $0xe28] sm:$0xff]  ;;  %v1992_v51 = vld [vmem:[#allocation7 + $0xdf8] sm:$0xff] }
 0x179   :  { %2595 = vmatpush.msra.mxu2 %v1572_v4  ;;  %2615 = vmatpush.msra.mxu3 %v1668_v2  ;;  %v2094_v0 = vld [vmem:[#allocation7 + $0x1128] sm:$0xff]  ;;  %v2088_v52 = vld [vmem:[#allocation7 + $0x10f8] sm:$0xff] }
 0x17a   :  { %2556 = vmatpush.msra.mxu0 %v1949_v39  ;;  %2576 = vmatpush.msra.mxu1 %v2045_v40  ;;  %v1794_v30 = vld [vmem:[#allocation7 + $0x7c8] sm:$0xff]  ;;  %v1788_v14 = vld [vmem:[#allocation7 + $0x798] sm:$0xff] }
 0x17b   :  { %2596 = vmatpush.msra.mxu2 %v1566_v32  ;;  %2616 = vmatpush.msra.mxu3 %v1662_v60  ;;  %v1890_v16 = vld [vmem:[#allocation7 + $0xac8] sm:$0xff]  ;;  %v1884_v61 = vld [vmem:[#allocation7 + $0xa98] sm:$0xff] }
 0x17c   :  { %2557 = vmatpush.msra.mxu0 %v1943_v36  ;;  %2577 = vmatpush.msra.mxu1 %v2039_v10  ;;  %v1986_v59 = vld [vmem:[#allocation7 + $0xdc8] sm:$0xff]  ;;  %v1980_v24 = vld [vmem:[#allocation7 + $0xd98] sm:$0xff] }
 0x17d   :  { %2597 = vmatpush.msra.mxu2 %v1560_v9  ;;  %2617 = vmatpush.msra.mxu3 %v1656_v22  ;;  %v2082_v62 = vld [vmem:[#allocation7 + $0x10c8] sm:$0xff]  ;;  %v2076_v33 = vld [vmem:[#allocation7 + $0x1098] sm:$0xff] }
 0x17e   :  { %2558 = vmatpush.msra.mxu0 %v1937_v23  ;;  %2578 = vmatpush.msra.mxu1 %v2033_v8  ;;  %v1782_v55 = vld [vmem:[#allocation7 + $0x768] sm:$0xff]  ;;  %v1776_v39 = vld [vmem:[#allocation7 + $0x738] sm:$0xff] }
 0x17f   :  { %2598 = vmatpush.msra.mxu2 %v1554_v6  ;;  %2618 = vmatpush.msra.mxu3 %v1650_v46  ;;  %v1878_v37 = vld [vmem:[#allocation7 + $0xa68] sm:$0xff]  ;;  %v1872_v40 = vld [vmem:[#allocation7 + $0xa38] sm:$0xff] }
 0x180   :  { %2559 = vmatpush.msra.mxu0 %v1931_v44  ;;  %2579 = vmatpush.msra.mxu1 %v2027_v53  ;;  %v1974_v4 = vld [vmem:[#allocation7 + $0xd68] sm:$0xff]  ;;  %v1968_v32 = vld [vmem:[#allocation7 + $0xd38] sm:$0xff] }
 0x181   :  { %2599 = vmatpush.msra.mxu2 %v1548_v45  ;;  %2619 = vmatpush.msra.mxu3 %v1644_v63  ;;  %v2070_v2 = vld [vmem:[#allocation7 + $0x1068] sm:$0xff]  ;;  %v2064_v60 = vld [vmem:[#allocation7 + $0x1038] sm:$0xff] }
 0x182   :  { %2560 = vmatmul.f32.vlgmr.msra.gmra.mxu0 %v4625_v19  ;;  %2580 = vmatmul.f32.vlgmr.msra.gmra.mxu1 %v4684_v28  ;;  %v1770_v36 = vld [vmem:[#allocation7 + $0x708] sm:$0xff]  ;;  %v1764_v23 = vld [vmem:[#allocation7 + $0x6d8] sm:$0xff] }
 0x183   :  { %2600 = vmatmul.f32.vlgmr.msra.gmra.mxu2 %v4525_v54  ;;  %2620 = vmatmul.f32.vlgmr.msra.gmra.mxu3 %v4567_v31  ;;  %v1866_v10 = vld [vmem:[#allocation7 + $0xa08] sm:$0xff]  ;;  %v1860_v8 = vld [vmem:[#allocation7 + $0x9d8] sm:$0xff] }
 0x184   :  { %2624 = vmatpush.msrb.mxu0 %v1830_v21  ;;  %2644 = vmatpush.msrb.mxu1 %v1926_v43  ;;  %v1962_v9 = vld [vmem:[#allocation7 + $0xd08] sm:$0xff]  ;;  %v1956_v6 = vld [vmem:[#allocation7 + $0xcd8] sm:$0xff] }
 0x185   :  { %2664 = vmatpush.msrb.mxu2 %v2022_v50  ;;  %2684 = vmatpush.msrb.mxu3 %v2118_v47  ;;  %v2058_v22 = vld [vmem:[#allocation7 + $0x1008] sm:$0xff]  ;;  %v2052_v46 = vld [vmem:[#allocation7 + $0xfd8] sm:$0xff] }
 0x186   :  { %2625 = vmatpush.msrb.mxu0 %v1824_v49  ;;  %2645 = vmatpush.msrb.mxu1 %v1920_v58  ;;  %v1758_v44 = vld [vmem:[#allocation7 + $0x6a8] sm:$0xff]  ;;  %v1752_v21 = vld [vmem:[#allocation7 + $0x678] sm:$0xff] }
 0x187   :  { %2665 = vmatpush.msrb.mxu2 %v2016_v29  ;;  %2685 = vmatpush.msrb.mxu3 %v2112_v34  ;;  %v1854_v53 = vld [vmem:[#allocation7 + $0x9a8] sm:$0xff]  ;;  %v1848_v43 = vld [vmem:[#allocation7 + $0x978] sm:$0xff] }
 0x188   :  { %2626 = vmatpush.msrb.mxu0 %v1818_v1  ;;  %2646 = vmatpush.msrb.mxu1 %v1914_v11  ;;  %v1950_v45 = vld [vmem:[#allocation7 + $0xca8] sm:$0xff]  ;;  %v1944_v50 = vld [vmem:[#allocation7 + $0xc78] sm:$0xff] }
 0x189   :  { %2666 = vmatpush.msrb.mxu2 %v2010_v5  ;;  %2686 = vmatpush.msrb.mxu3 %v2106_v38  ;;  %v2046_v63 = vld [vmem:[#allocation7 + $0xfa8] sm:$0xff]  ;;  %v2040_v47 = vld [vmem:[#allocation7 + $0xf78] sm:$0xff] }
 0x18a   :  { %2627 = vmatpush.msrb.mxu0 %v1812_v27  ;;  %2647 = vmatpush.msrb.mxu1 %v1908_v15  ;;  %v1746_v49 = vld [vmem:[#allocation7 + $0x648] sm:$0xff]  ;;  %v1740_v1 = vld [vmem:[#allocation7 + $0x618] sm:$0xff] }
 0x18b   :  { %2667 = vmatpush.msrb.mxu2 %v2004_v41  ;;  %2687 = vmatpush.msrb.mxu3 %v2100_v56  ;;  %v1842_v58 = vld [vmem:[#allocation7 + $0x948] sm:$0xff]  ;;  %v1836_v11 = vld [vmem:[#allocation7 + $0x918] sm:$0xff]  ;;  %v1639_v41 = vld [vmem:[#allocation7 + $0x2f0] sm:$0xff] }
 0x18c   :  { %2628 = vmatpush.msrb.mxu0 %v1806_v3  ;;  %2648 = vmatpush.msrb.mxu1 %v1902_v18  ;;  %v1938_v29 = vld [vmem:[#allocation7 + $0xc48] sm:$0xff]  ;;  %v1932_v5 = vld [vmem:[#allocation7 + $0xc18] sm:$0xff]  ;;  %v1735_v56 = vld [vmem:[#allocation7 + $0x5f0] sm:$0xff] }
 0x18d   :  { %2668 = vmatpush.msrb.mxu2 %v1998_v48  ;;  %2688 = vmatpush.msrb.mxu3 %v2094_v0  ;;  %v2034_v34 = vld [vmem:[#allocation7 + $0xf48] sm:$0xff]  ;;  %v2028_v27 = vld [vmem:[#allocation7 + $0xf18] sm:$0xff]  ;;  %v1831_v3 = vld [vmem:[#allocation7 + $0x8f0] sm:$0xff] }
 0x18e   :  { %2629 = vmatpush.msrb.mxu0 %v1800_v17  ;;  %2649 = vmatpush.msrb.mxu1 %v1896_v42  ;;  %v1927_v18 = vld [vmem:[#allocation7 + $0xbf0] sm:$0xff]  ;;  %v1633_v48 = vld [vmem:[#allocation7 + $0x2c0] sm:$0xff] }
 0x18f   :  { %2669 = vmatpush.msrb.mxu2 %v1992_v51  ;;  %2689 = vmatpush.msrb.mxu3 %v2088_v52  ;;  %v1729_v0 = vld [vmem:[#allocation7 + $0x5c0] sm:$0xff]  ;;  %v1627_v51 = vld [vmem:[#allocation7 + $0x290] sm:$0xff] }
 0x190   :  { %2630 = vmatpush.msrb.mxu0 %v1794_v30  ;;  %2650 = vmatpush.msrb.mxu1 %v1890_v16  ;;  %v1825_v17 = vld [vmem:[#allocation7 + $0x8c0] sm:$0xff]  ;;  %v1723_v52 = vld [vmem:[#allocation7 + $0x590] sm:$0xff]  ;;  %v4873_v16 = vpop.f32.mrf.mxu0 }
 0x191   :  { %2670 = vmatpush.msrb.mxu2 %v1986_v59  ;;  %2690 = vmatpush.msrb.mxu3 %v2082_v62  ;;  %v1921_v42 = vld [vmem:[#allocation7 + $0xbc0] sm:$0xff]  ;;  %v1819_v30 = vld [vmem:[#allocation7 + $0x890] sm:$0xff] }
 0x192   :  { %2631 = vmatpush.msrb.mxu0 %v1788_v14  ;;  %2651 = vmatpush.msrb.mxu1 %v1884_v61  ;;  %v1915_v59 = vld [vmem:[#allocation7 + $0xb90] sm:$0xff]  ;;  %v1621_v62 = vld [vmem:[#allocation7 + $0x260] sm:$0xff] }
 0x193   :  { %2671 = vmatpush.msrb.mxu2 %v1980_v24  ;;  %2691 = vmatpush.msrb.mxu3 %v2076_v33  ;;  %v1717_v61 = vld [vmem:[#allocation7 + $0x560] sm:$0xff] }
 0x194   :  { %2632 = vmatpush.msrb.mxu0 %v1782_v55  ;;  %2652 = vmatpush.msrb.mxu1 %v1878_v37  ;;  %v1813_v24 = vld [vmem:[#allocation7 + $0x860] sm:$0xff] }
 0x195   :  { %2672 = vmatpush.msrb.mxu2 %v1974_v4  ;;  %2692 = vmatpush.msrb.mxu3 %v2070_v2  ;;  %v4875_v55 = vpop.f32.mrf.mxu1  ;;  %v1909_v37 = vld [vmem:[#allocation7 + $0xb60] sm:$0xff]  ;;  %v1615_v4 = vld [vmem:[#allocation7 + $0x230] sm:$0xff] }
 0x196   :  { %2633 = vmatpush.msrb.mxu0 %v1776_v39  ;;  %2653 = vmatpush.msrb.mxu1 %v1872_v40  ;;  %v1711_v39 = vld [vmem:[#allocation7 + $0x530] sm:$0xff] }
 0x197   :  { %2673 = vmatpush.msrb.mxu2 %v1968_v32  ;;  %2693 = vmatpush.msrb.mxu3 %v2064_v60  ;;  %v1807_v40 = vld [vmem:[#allocation7 + $0x830] sm:$0xff]  ;;  %v1609_v60 = vld [vmem:[#allocation7 + $0x200] sm:$0xff] }
 0x198   :  { %2634 = vmatpush.msrb.mxu0 %v1770_v36  ;;  %2654 = vmatpush.msrb.mxu1 %v1866_v10  ;;  %v1903_v32 = vld [vmem:[#allocation7 + $0xb30] sm:$0xff]  ;;  %v1705_v36 = vld [vmem:[#allocation7 + $0x500] sm:$0xff] }
 0x199   :  { %2674 = vmatpush.msrb.mxu2 %v1962_v9  ;;  %2694 = vmatpush.msrb.mxu3 %v2058_v22  ;;  %v1801_v10 = vld [vmem:[#allocation7 + $0x800] sm:$0xff]  ;;  %v1603_v22 = vld [vmem:[#allocation7 + $0x1d0] sm:$0xff] }
 0x19a   :  { %2635 = vmatpush.msrb.mxu0 %v1764_v23  ;;  %2655 = vmatpush.msrb.mxu1 %v1860_v8  ;;  %v1897_v9 = vld [vmem:[#allocation7 + $0xb00] sm:$0xff]  ;;  %v1699_v23 = vld [vmem:[#allocation7 + $0x4d0] sm:$0xff] }
 0x19b   :  { %2675 = vmatpush.msrb.mxu2 %v1956_v6  ;;  %2695 = vmatpush.msrb.mxu3 %v2052_v46  ;;  %v1795_v8 = vld [vmem:[#allocation7 + $0x7d0] sm:$0xff]  ;;  %v1597_v46 = vld [vmem:[#allocation7 + $0x1a0] sm:$0xff] }
 0x19c   :  { %2636 = vmatpush.msrb.mxu0 %v1758_v44  ;;  %2656 = vmatpush.msrb.mxu1 %v1854_v53  ;;  %v4865_v38 = vpop.f32.mrf.mxu2  ;;  %v1891_v6 = vld [vmem:[#allocation7 + $0xad0] sm:$0xff]  ;;  %v1693_v44 = vld [vmem:[#allocation7 + $0x4a0] sm:$0xff] }
 0x19d   :  { %2676 = vmatpush.msrb.mxu2 %v1950_v45  ;;  %2696 = vmatpush.msrb.mxu3 %v2046_v63  ;;  %v1789_v53 = vld [vmem:[#allocation7 + $0x7a0] sm:$0xff] }
 0x19e   :  { %2637 = vmatpush.msrb.mxu0 %v1752_v21  ;;  %2657 = vmatpush.msrb.mxu1 %v1848_v43  ;;  %v4867_v15 = vpop.f32.mrf.mxu3  ;;  %v1885_v63 = vld [vmem:[#allocation7 + $0xaa0] sm:$0xff]  ;;  %v1591_v21 = vld [vmem:[#allocation7 + $0x170] sm:$0xff] }
 0x19f   :  { %2677 = vmatpush.msrb.mxu2 %v1944_v50  ;;  %2697 = vmatpush.msrb.mxu3 %v2040_v47  ;;  %v1687_v43 = vld [vmem:[#allocation7 + $0x470] sm:$0xff] }
 0x1a0   :  { %2638 = vmatpush.msrb.mxu0 %v1746_v49  ;;  %2658 = vmatpush.msrb.mxu1 %v1842_v58  ;;  %v4879_v45 = vpop.f32.mrf.mxu0  ;;  %v1783_v50 = vld [vmem:[#allocation7 + $0x770] sm:$0xff]  ;;  %v1585_v58 = vld [vmem:[#allocation7 + $0x140] sm:$0xff] }
 0x1a1   :  { %2678 = vmatpush.msrb.mxu2 %v1938_v29  ;;  %2698 = vmatpush.msrb.mxu3 %v2034_v34  ;;  %v1879_v49 = vld [vmem:[#allocation7 + $0xa70] sm:$0xff]  ;;  %v1681_v29 = vld [vmem:[#allocation7 + $0x440] sm:$0xff] }
 0x1a2   :  { %2639 = vmatpush.msrb.mxu0 %v1740_v1  ;;  %2659 = vmatpush.msrb.mxu1 %v1836_v11  ;;  %v1777_v34 = vld [vmem:[#allocation7 + $0x740] sm:$0xff]  ;;  %v1579_v11 = vld [vmem:[#allocation7 + $0x110] sm:$0xff] }
 0x1a3   :  { %2679 = vmatpush.msrb.mxu2 %v1932_v5  ;;  %2699 = vmatpush.msrb.mxu3 %v2028_v27  ;;  %v1873_v1 = vld [vmem:[#allocation7 + $0xa40] sm:$0xff]  ;;  %v1675_v5 = vld [vmem:[#allocation7 + $0x410] sm:$0xff] }
 0x1a4   :  { %2640 = vmatmul.f32.vlgmr.msrb.gmra.mxu0 %v4576_v57  ;;  %2660 = vmatmul.f32.vlgmr.msrb.gmra.mxu1 %v4583_v26  ;;  %v2361_v14 = vpop.f32.mrf.mxu2  ;;  %v1771_v27 = vld [vmem:[#allocation7 + $0x710] sm:$0xff] }
 0x1a5   :  { %2680 = vmatmul.f32.vlgmr.msrb.gmra.mxu2 %v4625_v19  ;;  %2700 = vmatmul.f32.vlgmr.msrb.gmra.mxu3 %v4684_v28 }
 0x1a6   :  { %2704 = vmatpush.msra.mxu0 %v1639_v41  ;;  %2724 = vmatpush.msra.mxu1 %v1735_v56  ;;  %v2381_v33 = vpop.f32.mrf.mxu3  ;;  %v4881_v47 = vpop.f32.mrf.mxu1  ;;  %v1867_v41 = vld [vmem:[#allocation7 + $0xa10] sm:$0xff]  ;;  %v1573_v56 = vld [vmem:[#allocation7 + $0xe0] sm:$0xff] }
 0x1a7   :  { %2744 = vmatpush.msra.mxu2 %v1831_v3  ;;  %2764 = vmatpush.msra.mxu3 %v1927_v18  ;;  %v4877_v2 = vadd.f32 %v2381_v33, %v2361_v14  ;;  %v1669_v3 = vld [vmem:[#allocation7 + $0x3e0] sm:$0xff] }
 0x1a8   :  { %2705 = vmatpush.msra.mxu0 %v1633_v48  ;;  %2725 = vmatpush.msra.mxu1 %v1729_v0  ;;  %v1765_v18 = vld [vmem:[#allocation7 + $0x6e0] sm:$0xff]  ;;  %v1567_v0 = vld [vmem:[#allocation7 + $0xb0] sm:$0xff] }
 0x1a9   :  { %2745 = vmatpush.msra.mxu2 %v1825_v17  ;;  %2765 = vmatpush.msra.mxu3 %v1921_v42  ;;  %v1861_v48 = vld [vmem:[#allocation7 + $0x9e0] sm:$0xff]  ;;  %v1663_v42 = vld [vmem:[#allocation7 + $0x3b0] sm:$0xff] }
 0x1aa   :  { %2706 = vmatpush.msra.mxu0 %v1627_v51  ;;  %2726 = vmatpush.msra.mxu1 %v1723_v52  ;;  %v1759_v51 = vld [vmem:[#allocation7 + $0x6b0] sm:$0xff]  ;;  %v1657_v14 = vld [vmem:[#allocation7 + $0x380] sm:$0xff] }
 0x1ab   :  { %2746 = vmatpush.msra.mxu2 %v1819_v30  ;;  %2766 = vmatpush.msra.mxu3 %v1915_v59  ;;  %v1855_v30 = vld [vmem:[#allocation7 + $0x9b0] sm:$0xff]  ;;  %v1561_v59 = vld [vmem:[#allocation7 + $0x80] sm:$0xff] }
 0x1ac   :  { %2707 = vmatpush.msra.mxu0 %v1621_v62  ;;  %2727 = vmatpush.msra.mxu1 %v1717_v61  ;;  %v1753_v61 = vld [vmem:[#allocation7 + $0x680] sm:$0xff] }
 0x1ad   :  { %2747 = vmatpush.msra.mxu2 %v1813_v24  ;;  %2767 = vmatpush.msra.mxu3 %v1909_v37  ;;  %v1849_v33 = vld [vmem:[#allocation7 + $0x980] sm:$0xff]  ;;  %v1555_v37 = vld [vmem:[#allocation7 + $0x50] sm:$0xff] }
 0x1ae   :  { %2708 = vmatpush.msra.mxu0 %v1615_v4  ;;  %2728 = vmatpush.msra.mxu1 %v1711_v39  ;;  %v1651_v4 = vld [vmem:[#allocation7 + $0x350] sm:$0xff] }
 0x1af   :  { %2748 = vmatpush.msra.mxu2 %v1807_v40  ;;  %2768 = vmatpush.msra.mxu3 %v1903_v32  ;;  %v1747_v39 = vld [vmem:[#allocation7 + $0x650] sm:$0xff]  ;;  %v1549_v40 = vld [vmem:[#allocation7 + $0x20] sm:$0xff] }
 0x1b0   :  { %2709 = vmatpush.msra.mxu0 %v1609_v60  ;;  %2729 = vmatpush.msra.mxu1 %v1705_v36  ;;  %v1645_v32 = vld [vmem:[#allocation7 + $0x320] sm:$0xff] }
 0x1b1   :  { %2749 = vmatpush.msra.mxu2 %v1801_v10  ;;  %2769 = vmatpush.msra.mxu3 %v1897_v9  ;;  %v1741_v60 = vld [vmem:[#allocation7 + $0x620] sm:$0xff] }
 0x1b2   :  { %2710 = vmatpush.msra.mxu0 %v1603_v22  ;;  %2730 = vmatpush.msra.mxu1 %v1699_v23  ;;  %v1837_v10 = vld [vmem:[#allocation7 + $0x920] sm:$0xff]  ;;  %v2023_v23 = vld [vmem:[#allocation7 + $0xef0] sm:$0xff] }
 0x1b3   :  { %2750 = vmatpush.msra.mxu2 %v1795_v8  ;;  %2770 = vmatpush.msra.mxu3 %v1891_v6  ;;  %v2119_v6 = vld [vmem:[#allocation7 + $0x11f0] sm:$0xff] }
 0x1b4   :  { %2711 = vmatpush.msra.mxu0 %v1597_v46  ;;  %2731 = vmatpush.msra.mxu1 %v1693_v44  ;;  %v1640_v46 = vld [vmem:[#allocation7 + $0x2f8] sm:$0xff] }
 0x1b5   :  { %2751 = vmatpush.msra.mxu2 %v1789_v53  ;;  %2771 = vmatpush.msra.mxu3 %v1885_v63  ;;  %v1736_v44 = vld [vmem:[#allocation7 + $0x5f8] sm:$0xff]  ;;  %v2017_v53 = vld [vmem:[#allocation7 + $0xec0] sm:$0xff] }
 0x1b6   :  { %2712 = vmatpush.msra.mxu0 %v1591_v21  ;;  %2732 = vmatpush.msra.mxu1 %v1687_v43  ;;  %v2113_v63 = vld [vmem:[#allocation7 + $0x11c0] sm:$0xff]  ;;  %v1634_v21 = vld [vmem:[#allocation7 + $0x2c8] sm:$0xff] }
 0x1b7   :  { %2752 = vmatpush.msra.mxu2 %v1783_v50  ;;  %2772 = vmatpush.msra.mxu3 %v1879_v49  ;;  %v1730_v43 = vld [vmem:[#allocation7 + $0x5c8] sm:$0xff]  ;;  %v2011_v50 = vld [vmem:[#allocation7 + $0xe90] sm:$0xff] }
 0x1b8   :  { %2713 = vmatpush.msra.mxu0 %v1585_v58  ;;  %2733 = vmatpush.msra.mxu1 %v1681_v29  ;;  %v2107_v49 = vld [vmem:[#allocation7 + $0x1190] sm:$0xff]  ;;  %v1628_v58 = vld [vmem:[#allocation7 + $0x298] sm:$0xff] }
 0x1b9   :  { %2753 = vmatpush.msra.mxu2 %v1777_v34  ;;  %2773 = vmatpush.msra.mxu3 %v1873_v1  ;;  %v2401_v17 = vpop.f32.mrf.mxu0  ;;  %v1724_v29 = vld [vmem:[#allocation7 + $0x598] sm:$0xff]  ;;  %v2005_v34 = vld [vmem:[#allocation7 + $0xe60] sm:$0xff] }
 0x1ba   :  { %2714 = vmatpush.msra.mxu0 %v1579_v11  ;;  %2734 = vmatpush.msra.mxu1 %v1675_v5  ;;  %v2402_v52 = vadd.f32 %v2401_v17, %v4877_v2  ;;  %v2421_v62 = vpop.f32.mrf.mxu1  ;;  %v1843_v2 = vld [vmem:[#allocation7 + $0x950] sm:$0xff]  ;;  %v2101_v1 = vld [vmem:[#allocation7 + $0x1160] sm:$0xff]  ;;  %v1622_v11 = vld [vmem:[#allocation7 + $0x268] sm:$0xff] }
 0x1bb   :  { %2754 = vmatpush.msra.mxu2 %v1771_v27  ;;  %2774 = vmatpush.msra.mxu3 %v1867_v41  ;;  %v1718_v5 = vld [vmem:[#allocation7 + $0x568] sm:$0xff]  ;;  %v1999_v27 = vld [vmem:[#allocation7 + $0xe30] sm:$0xff] }
 0x1bc   :  { %2715 = vmatpush.msra.mxu0 %v1573_v56  ;;  %2735 = vmatpush.msra.mxu1 %v1669_v3  ;;  %v2422_v24 = vadd.f32 %v2421_v62, %v2402_v52  ;;  %v2095_v41 = vld [vmem:[#allocation7 + $0x1130] sm:$0xff]  ;;  %v1616_v56 = vld [vmem:[#allocation7 + $0x238] sm:$0xff]  ;;  %v1706_v17 = vld [vmem:[#allocation7 + $0x508] sm:$0xff] }
 0x1bd   :  { %2755 = vmatpush.msra.mxu2 %v1765_v18  ;;  %2775 = vmatpush.msra.mxu3 %v1861_v48  ;;  %v1712_v3 = vld [vmem:[#allocation7 + $0x538] sm:$0xff]  ;;  %v1993_v18 = vld [vmem:[#allocation7 + $0xe00] sm:$0xff] }
 0x1be   :  { %2716 = vmatpush.msra.mxu0 %v1567_v0  ;;  %2736 = vmatpush.msra.mxu1 %v1663_v42  ;;  %v2089_v48 = vld [vmem:[#allocation7 + $0x1100] sm:$0xff]  ;;  %v1610_v0 = vld [vmem:[#allocation7 + $0x208] sm:$0xff]  ;;  %v1987_v42 = vld [vmem:[#allocation7 + $0xdd0] sm:$0xff] }
 0x1bf   :  { %2756 = vmatpush.msra.mxu2 %v1759_v51  ;;  %2776 = vmatpush.msra.mxu3 %v1855_v30  ;;  %v2083_v51 = vld [vmem:[#allocation7 + $0x10d0] sm:$0xff]  ;;  %v1604_v52 = vld [vmem:[#allocation7 + $0x1d8] sm:$0xff]  ;;  %v2077_v62 = vld [vmem:[#allocation7 + $0x10a0] sm:$0xff] }
 0x1c0   :  { %2717 = vmatpush.msra.mxu0 %v1561_v59  ;;  %2737 = vmatpush.msra.mxu1 %v1657_v14  ;;  %v1700_v30 = vld [vmem:[#allocation7 + $0x4d8] sm:$0xff]  ;;  %v1981_v59 = vld [vmem:[#allocation7 + $0xda0] sm:$0xff]  ;;  %v1598_v14 = vld [vmem:[#allocation7 + $0x1a8] sm:$0xff] }
 0x1c1   :  { %2757 = vmatpush.msra.mxu2 %v1753_v61  ;;  %2777 = vmatpush.msra.mxu3 %v1849_v33  ;;  %v2441_v36 = vpop.f32.mrf.mxu2  ;;  %v2461_v22 = vpop.f32.mrf.mxu3  ;;  %v1694_v61 = vld [vmem:[#allocation7 + $0x4a8] sm:$0xff]  ;;  %v2071_v33 = vld [vmem:[#allocation7 + $0x1070] sm:$0xff] }
 0x1c2   :  { %2718 = vmatpush.msra.mxu0 %v1555_v37  ;;  %2738 = vmatpush.msra.mxu1 %v1651_v4  ;;  %v2442_v9 = vadd.f32 %v2441_v36, %v2422_v24  ;;  %v1975_v24 = vld [vmem:[#allocation7 + $0xd70] sm:$0xff]  ;;  %v1592_v37 = vld [vmem:[#allocation7 + $0x178] sm:$0xff] }
 0x1c3   :  { %2758 = vmatpush.msra.mxu2 %v1747_v39  ;;  %2778 = vmatpush.msra.mxu3 %v1843_v2  ;;  %v1688_v4 = vld [vmem:[#allocation7 + $0x478] sm:$0xff]  ;;  %v1969_v39 = vld [vmem:[#allocation7 + $0xd40] sm:$0xff]  ;;  %v2059_v36 = vld [vmem:[#allocation7 + $0x1010] sm:$0xff] }
 0x1c4   :  { %2719 = vmatpush.msra.mxu0 %v1549_v40  ;;  %2739 = vmatpush.msra.mxu1 %v1645_v32  ;;  %v4884_v8 = vadd.f32 %v2461_v22, %v2442_v9  ;;  %v2065_v2 = vld [vmem:[#allocation7 + $0x1040] sm:$0xff]  ;;  %v1586_v40 = vld [vmem:[#allocation7 + $0x148] sm:$0xff]  ;;  %v1676_v9 = vld [vmem:[#allocation7 + $0x418] sm:$0xff] }
 0x1c5   :  { %2759 = vmatpush.msra.mxu2 %v1741_v60  ;;  %2779 = vmatpush.msra.mxu3 %v1837_v10  ;;  %v1682_v32 = vld [vmem:[#allocation7 + $0x448] sm:$0xff]  ;;  %v1963_v60 = vld [vmem:[#allocation7 + $0xd10] sm:$0xff]  ;;  %v1580_v10 = vld [vmem:[#allocation7 + $0x118] sm:$0xff] }
 0x1c6   :  { %2720 = vmatmul.f32.vlgmr.msra.gmra.mxu0 %v4525_v54  ;;  %2740 = vmatmul.f32.vlgmr.msra.gmra.mxu1 %v4567_v31  ;;  %v1957_v22 = vld [vmem:[#allocation7 + $0xce0] sm:$0xff] }
 0x1c7   :  { %2760 = vmatmul.f32.vlgmr.msra.gmra.mxu2 %v4576_v57  ;;  %2780 = vmatmul.f32.vlgmr.msra.gmra.mxu3 %v4583_v26 }
 0x1c8   :  { %2784 = vmatpush.msrb.mxu0 %v2023_v23  ;;  %2804 = vmatpush.msrb.mxu1 %v2119_v6  ;;  %v2053_v23 = vld [vmem:[#allocation7 + $0xfe0] sm:$0xff]  ;;  %v1574_v6 = vld [vmem:[#allocation7 + $0xe8] sm:$0xff] }
 0x1c9   :  { %2824 = vmatpush.msrb.mxu2 %v1640_v46  ;;  %2844 = vmatpush.msrb.mxu3 %v1736_v44  ;;  %v1670_v46 = vld [vmem:[#allocation7 + $0x3e8] sm:$0xff]  ;;  %v1951_v44 = vld [vmem:[#allocation7 + $0xcb0] sm:$0xff] }
 0x1ca   :  { %2785 = vmatpush.msrb.mxu0 %v2017_v53  ;;  %2805 = vmatpush.msrb.mxu1 %v2113_v63  ;;  %v2047_v63 = vld [vmem:[#allocation7 + $0xfb0] sm:$0xff] }
 0x1cb   :  { %2825 = vmatpush.msrb.mxu2 %v1634_v21  ;;  %2845 = vmatpush.msrb.mxu3 %v1730_v43  ;;  %v1568_v21 = vld [vmem:[#allocation7 + $0xb8] sm:$0xff] }
 0x1cc   :  { %2786 = vmatpush.msrb.mxu0 %v2011_v50  ;;  %2806 = vmatpush.msrb.mxu1 %v2107_v49  ;;  %v1664_v50 = vld [vmem:[#allocation7 + $0x3b8] sm:$0xff]  ;;  %v1945_v49 = vld [vmem:[#allocation7 + $0xc80] sm:$0xff] }
 0x1cd   :  { %2826 = vmatpush.msrb.mxu2 %v1628_v58  ;;  %2846 = vmatpush.msrb.mxu3 %v1724_v29  ;;  %v2041_v29 = vld [vmem:[#allocation7 + $0xf80] sm:$0xff] }
 0x1ce   :  { %2787 = vmatpush.msrb.mxu0 %v2005_v34  ;;  %2807 = vmatpush.msrb.mxu1 %v2101_v1  ;;  %v1562_v34 = vld [vmem:[#allocation7 + $0x88] sm:$0xff] }
 0x1cf   :  { %2827 = vmatpush.msrb.mxu2 %v1622_v11  ;;  %2847 = vmatpush.msrb.mxu3 %v1718_v5  ;;  %v1658_v1 = vld [vmem:[#allocation7 + $0x388] sm:$0xff]  ;;  %v1939_v11 = vld [vmem:[#allocation7 + $0xc50] sm:$0xff] }
 0x1d0   :  { %2788 = vmatpush.msrb.mxu0 %v1999_v27  ;;  %2808 = vmatpush.msrb.mxu1 %v2095_v41  ;;  %v2035_v5 = vld [vmem:[#allocation7 + $0xf50] sm:$0xff]  ;;  %v1556_v27 = vld [vmem:[#allocation7 + $0x58] sm:$0xff] }
 0x1d1   :  { %2828 = vmatpush.msrb.mxu2 %v1616_v56  ;;  %2848 = vmatpush.msrb.mxu3 %v1712_v3  ;;  %v1652_v41 = vld [vmem:[#allocation7 + $0x358] sm:$0xff]  ;;  %v1933_v56 = vld [vmem:[#allocation7 + $0xc20] sm:$0xff] }
 0x1d2   :  { %2789 = vmatpush.msrb.mxu0 %v1993_v18  ;;  %2809 = vmatpush.msrb.mxu1 %v2089_v48  ;;  %v2029_v3 = vld [vmem:[#allocation7 + $0xf20] sm:$0xff]  ;;  %v1550_v18 = vld [vmem:[#allocation7 + $0x28] sm:$0xff] }
 0x1d3   :  { %2829 = vmatpush.msrb.mxu2 %v1610_v0  ;;  %2849 = vmatpush.msrb.mxu3 %v1706_v17  ;;  %v1646_v0 = vld [vmem:[#allocation7 + $0x328] sm:$0xff] }
 0x1d4   :  { %2790 = vmatpush.msrb.mxu0 %v1987_v42  ;;  %2810 = vmatpush.msrb.mxu1 %v2083_v51  ;;  %v1832_v51 = vld [vmem:[#allocation7 + $0x8f8] sm:$0xff] }
 0x1d5   :  { %2830 = vmatpush.msrb.mxu2 %v1604_v52  ;;  %2850 = vmatpush.msrb.mxu3 %v1700_v30  ;;  %v1928_v30 = vld [vmem:[#allocation7 + $0xbf8] sm:$0xff] }
 0x1d6   :  { %2791 = vmatpush.msrb.mxu0 %v1981_v59  ;;  %2811 = vmatpush.msrb.mxu1 %v2077_v62  ;;  %v2024_v59 = vld [vmem:[#allocation7 + $0xef8] sm:$0xff] }
 0x1d7   :  { %2831 = vmatpush.msrb.mxu2 %v1598_v14  ;;  %2851 = vmatpush.msrb.mxu3 %v1694_v61  ;;  %v2120_v62 = vld [vmem:[#allocation7 + $0x11f8] sm:$0xff]  ;;  %v1826_v14 = vld [vmem:[#allocation7 + $0x8c8] sm:$0xff] }
 0x1d8   :  { %2792 = vmatpush.msrb.mxu0 %v1975_v24  ;;  %2812 = vmatpush.msrb.mxu1 %v2071_v33  ;;  %v1922_v61 = vld [vmem:[#allocation7 + $0xbc8] sm:$0xff] }
 0x1d9   :  { %2832 = vmatpush.msrb.mxu2 %v1592_v37  ;;  %2852 = vmatpush.msrb.mxu3 %v1688_v4  ;;  %v2018_v24 = vld [vmem:[#allocation7 + $0xec8] sm:$0xff]  ;;  %v1820_v37 = vld [vmem:[#allocation7 + $0x898] sm:$0xff] }
 0x1da   :  { %2793 = vmatpush.msrb.mxu0 %v1969_v39  ;;  %2813 = vmatpush.msrb.mxu1 %v2065_v2  ;;  %v2114_v33 = vld [vmem:[#allocation7 + $0x11c8] sm:$0xff]  ;;  %v1916_v4 = vld [vmem:[#allocation7 + $0xb98] sm:$0xff] }
 0x1db   :  { %2833 = vmatpush.msrb.mxu2 %v1586_v40  ;;  %2853 = vmatpush.msrb.mxu3 %v1682_v32  ;;  %v2012_v39 = vld [vmem:[#allocation7 + $0xe98] sm:$0xff]  ;;  %v1814_v40 = vld [vmem:[#allocation7 + $0x868] sm:$0xff] }
 0x1dc   :  { %2794 = vmatpush.msrb.mxu0 %v1963_v60  ;;  %2814 = vmatpush.msrb.mxu1 %v2059_v36  ;;  %v2481_v53 = vpop.f32.mrf.mxu0  ;;  %v2108_v2 = vld [vmem:[#allocation7 + $0x1198] sm:$0xff]  ;;  %v2006_v32 = vld [vmem:[#allocation7 + $0xe68] sm:$0xff] }
 0x1dd   :  { %2834 = vmatpush.msrb.mxu2 %v1580_v10  ;;  %2854 = vmatpush.msrb.mxu3 %v1676_v9  ;;  %v2501_v43 = vpop.f32.mrf.mxu1  ;;  %v1808_v60 = vld [vmem:[#allocation7 + $0x838] sm:$0xff] }
 0x1de   :  { %2795 = vmatpush.msrb.mxu0 %v1957_v22  ;;  %2815 = vmatpush.msrb.mxu1 %v2053_v23  ;;  %v2502_v58 = vadd.f32 %v2501_v43, %v2481_v53  ;;  %v1904_v36 = vld [vmem:[#allocation7 + $0xb38] sm:$0xff]  ;;  %v1802_v22 = vld [vmem:[#allocation7 + $0x808] sm:$0xff] }
 0x1df   :  { %2835 = vmatpush.msrb.mxu2 %v1574_v6  ;;  %2855 = vmatpush.msrb.mxu3 %v1670_v46  ;;  %v2000_v10 = vld [vmem:[#allocation7 + $0xe38] sm:$0xff]  ;;  %v1898_v23 = vld [vmem:[#allocation7 + $0xb08] sm:$0xff] }
 0x1e0   :  { %2796 = vmatpush.msrb.mxu0 %v1951_v44  ;;  %2816 = vmatpush.msrb.mxu1 %v2047_v63  ;;  %v2096_v9 = vld [vmem:[#allocation7 + $0x1138] sm:$0xff]  ;;  %v1994_v6 = vld [vmem:[#allocation7 + $0xe08] sm:$0xff] }
 0x1e1   :  { %2836 = vmatpush.msrb.mxu2 %v1568_v21  ;;  %2856 = vmatpush.msrb.mxu3 %v1664_v50  ;;  %v2090_v46 = vld [vmem:[#allocation7 + $0x1108] sm:$0xff]  ;;  %v1796_v44 = vld [vmem:[#allocation7 + $0x7d8] sm:$0xff] }
 0x1e2   :  { %2797 = vmatpush.msrb.mxu0 %v1945_v49  ;;  %2817 = vmatpush.msrb.mxu1 %v2041_v29  ;;  %v1892_v53 = vld [vmem:[#allocation7 + $0xad8] sm:$0xff]  ;;  %v1790_v43 = vld [vmem:[#allocation7 + $0x7a8] sm:$0xff] }
 0x1e3   :  { %2837 = vmatpush.msrb.mxu2 %v1562_v34  ;;  %2857 = vmatpush.msrb.mxu3 %v1658_v1  ;;  %v1988_v63 = vld [vmem:[#allocation7 + $0xdd8] sm:$0xff]  ;;  %v1886_v50 = vld [vmem:[#allocation7 + $0xaa8] sm:$0xff] }
 0x1e4   :  { %2798 = vmatpush.msrb.mxu0 %v1939_v11  ;;  %v2521_v48 = vpop.f32.mrf.mxu2  ;;  %2818 = vmatpush.msrb.mxu1 %v2035_v5  ;;  %v2541_v42 = vpop.f32.mrf.mxu3  ;;  %v2084_v21 = vld [vmem:[#allocation7 + $0x10d8] sm:$0xff]  ;;  %v1982_v49 = vld [vmem:[#allocation7 + $0xda8] sm:$0xff] }
 0x1e5   :  { %2838 = vmatpush.msrb.mxu2 %v1556_v27  ;;  %v2522_v17 = vadd.f32 %v2521_v48, %v2502_v58  ;;  %2858 = vmatpush.msrb.mxu3 %v1652_v41  ;;  %v2078_v58 = vld [vmem:[#allocation7 + $0x10a8] sm:$0xff]  ;;  %v1784_v29 = vld [vmem:[#allocation7 + $0x778] sm:$0xff] }
 0x1e6   :  { %2799 = vmatpush.msrb.mxu0 %v1933_v56  ;;  %2819 = vmatpush.msrb.mxu1 %v2029_v3  ;;  %v1880_v34 = vld [vmem:[#allocation7 + $0xa78] sm:$0xff]  ;;  %v1778_v5 = vld [vmem:[#allocation7 + $0x748] sm:$0xff] }
 0x1e7   :  { %2839 = vmatpush.msrb.mxu2 %v1550_v18  ;;  %v4890_v52 = vadd.f32 %v2541_v42, %v2522_v17  ;;  %2859 = vmatpush.msrb.mxu3 %v1646_v0  ;;  %v1976_v1 = vld [vmem:[#allocation7 + $0xd78] sm:$0xff]  ;;  %v1874_v27 = vld [vmem:[#allocation7 + $0xa48] sm:$0xff] }
 0x1e8   :  { %2800 = vmatmul.f32.vlgmr.msrb.gmra.mxu0 %v4625_v19  ;;  %2820 = vmatmul.f32.vlgmr.msrb.gmra.mxu1 %v4684_v28  ;;  %v2072_v11 = vld [vmem:[#allocation7 + $0x1078] sm:$0xff]  ;;  %v1970_v41 = vld [vmem:[#allocation7 + $0xd48] sm:$0xff] }
 0x1e9   :  { %2840 = vmatmul.f32.vlgmr.msrb.gmra.mxu2 %v4525_v54  ;;  %2860 = vmatmul.f32.vlgmr.msrb.gmra.mxu3 %v4567_v31  ;;  %v1910_v54 = vld [vmem:[#allocation7 + $0xb68] sm:$0xff]  ;;  %v1772_v3 = vld [vmem:[#allocation7 + $0x718] sm:$0xff] }
 0x1ea   :  { %2864 = vmatpush.msra.mxu0 %v1832_v51  ;;  %2884 = vmatpush.msra.mxu1 %v1928_v30  ;;  %v2102_v31 = vld [vmem:[#allocation7 + $0x1168] sm:$0xff]  ;;  %v1868_v18 = vld [vmem:[#allocation7 + $0xa18] sm:$0xff] }
 0x1eb   :  { %2904 = vmatpush.msra.mxu2 %v2024_v59  ;;  %2924 = vmatpush.msra.mxu3 %v2120_v62  ;;  %v2066_v56 = vld [vmem:[#allocation7 + $0x1048] sm:$0xff]  ;;  %v1964_v48 = vld [vmem:[#allocation7 + $0xd18] sm:$0xff] }
 0x1ec   :  { %2865 = vmatpush.msra.mxu0 %v1826_v14  ;;  %2885 = vmatpush.msra.mxu1 %v1922_v61  ;;  %v2060_v0 = vld [vmem:[#allocation7 + $0x1018] sm:$0xff]  ;;  %v1766_v17 = vld [vmem:[#allocation7 + $0x6e8] sm:$0xff] }
 0x1ed   :  { %2905 = vmatpush.msra.mxu2 %v2018_v24  ;;  %2925 = vmatpush.msra.mxu3 %v2114_v33  ;;  %v1862_v42 = vld [vmem:[#allocation7 + $0x9e8] sm:$0xff]  ;;  %v1760_v59 = vld [vmem:[#allocation7 + $0x6b8] sm:$0xff] }
 0x1ee   :  { %2866 = vmatpush.msra.mxu0 %v1820_v37  ;;  %2886 = vmatpush.msra.mxu1 %v1916_v4  ;;  %v1958_v51 = vld [vmem:[#allocation7 + $0xce8] sm:$0xff]  ;;  %v1856_v14 = vld [vmem:[#allocation7 + $0x9b8] sm:$0xff] }
 0x1ef   :  { %2906 = vmatpush.msra.mxu2 %v2012_v39  ;;  %2926 = vmatpush.msra.mxu3 %v2108_v2  ;;  %v2054_v30 = vld [vmem:[#allocation7 + $0xfe8] sm:$0xff]  ;;  %v1952_v61 = vld [vmem:[#allocation7 + $0xcb8] sm:$0xff] }
 0x1f0   :  { %2867 = vmatpush.msra.mxu0 %v1814_v40  ;;  %2887 = vmatpush.msra.mxu1 %v1910_v54  ;;  %v2048_v33 = vld [vmem:[#allocation7 + $0xfb8] sm:$0xff]  ;;  %v1754_v37 = vld [vmem:[#allocation7 + $0x688] sm:$0xff] }
 0x1f1   :  { %2907 = vmatpush.msra.mxu2 %v2006_v32  ;;  %2927 = vmatpush.msra.mxu3 %v2102_v31  ;;  %v1850_v39 = vld [vmem:[#allocation7 + $0x988] sm:$0xff]  ;;  %v1748_v32 = vld [vmem:[#allocation7 + $0x658] sm:$0xff] }
 0x1f2   :  { %2868 = vmatpush.msra.mxu0 %v1808_v60  ;;  %2888 = vmatpush.msra.mxu1 %v1904_v36  ;;  %v1946_v2 = vld [vmem:[#allocation7 + $0xc88] sm:$0xff]  ;;  %v1844_v31 = vld [vmem:[#allocation7 + $0x958] sm:$0xff] }
 0x1f3   :  { %2908 = vmatpush.msra.mxu2 %v2000_v10  ;;  %2928 = vmatpush.msra.mxu3 %v2096_v9  ;;  %v2042_v54 = vld [vmem:[#allocation7 + $0xf88] sm:$0xff]  ;;  %v1940_v60 = vld [vmem:[#allocation7 + $0xc58] sm:$0xff] }
 0x1f4   :  { %2869 = vmatpush.msra.mxu0 %v1802_v22  ;;  %2889 = vmatpush.msra.mxu1 %v1898_v23  ;;  %v1742_v36 = vld [vmem:[#allocation7 + $0x628] sm:$0xff] }
 0x1f5   :  { %2909 = vmatpush.msra.mxu2 %v1994_v6  ;;  %2929 = vmatpush.msra.mxu3 %v2090_v46  ;;  %v1838_v10 = vld [vmem:[#allocation7 + $0x928] sm:$0xff] }
 0x1f6   :  { %2870 = vmatpush.msra.mxu0 %v1796_v44  ;;  %2890 = vmatpush.msra.mxu1 %v1892_v53  ;;  %v1934_v9 = vld [vmem:[#allocation7 + $0xc28] sm:$0xff]  ;;  %v1059_v44 = vld [vmem:[#allocation5 + $0x2d0] sm:$0xff] }
 0x1f7   :  { %2910 = vmatpush.msra.mxu2 %v1988_v63  ;;  %2930 = vmatpush.msra.mxu3 %v2084_v21  ;;  %v2030_v23 = vld [vmem:[#allocation7 + $0xf28] sm:$0xff]  ;;  %v1155_v53 = vld [vmem:[#allocation5 + $0x5d0] sm:$0xff] }
 0x1f8   :  { %2871 = vmatpush.msra.mxu0 %v1790_v43  ;;  %2891 = vmatpush.msra.mxu1 %v1886_v50  ;;  %v1251_v63 = vld [vmem:[#allocation5 + $0x8d0] sm:$0xff]  ;;  %v1053_v43 = vld [vmem:[#allocation5 + $0x2a0] sm:$0xff] }
 0x1f9   :  { %2911 = vmatpush.msra.mxu2 %v1982_v49  ;;  %2931 = vmatpush.msra.mxu3 %v2078_v58  ;;  %v1347_v21 = vld [vmem:[#allocation5 + $0xbd0] sm:$0xff]  ;;  %v1149_v50 = vld [vmem:[#allocation5 + $0x5a0] sm:$0xff] }
 0x1fa   :  { %2872 = vmatpush.msra.mxu0 %v1784_v29  ;;  %2892 = vmatpush.msra.mxu1 %v1880_v34  ;;  %v1245_v49 = vld [vmem:[#allocation5 + $0x8a0] sm:$0xff]  ;;  %v1047_v29 = vld [vmem:[#allocation5 + $0x270] sm:$0xff] }
 0x1fb   :  { %2912 = vmatpush.msra.mxu2 %v1976_v1  ;;  %2932 = vmatpush.msra.mxu3 %v2072_v11  ;;  %v1341_v58 = vld [vmem:[#allocation5 + $0xba0] sm:$0xff]  ;;  %v1239_v34 = vld [vmem:[#allocation5 + $0x870] sm:$0xff] }
 0x1fc   :  { %2873 = vmatpush.msra.mxu0 %v1778_v5  ;;  %2893 = vmatpush.msra.mxu1 %v1874_v27  ;;  %v1041_v1 = vld [vmem:[#allocation5 + $0x240] sm:$0xff]  ;;  %v1035_v5 = vld [vmem:[#allocation5 + $0x210] sm:$0xff] }
 0x1fd   :  { %2913 = vmatpush.msra.mxu2 %v1970_v41  ;;  %2933 = vmatpush.msra.mxu3 %v2066_v56  ;;  %v1233_v11 = vld [vmem:[#allocation5 + $0x840] sm:$0xff]  ;;  %v1131_v27 = vld [vmem:[#allocation5 + $0x510] sm:$0xff] }
 0x1fe   :  { %2874 = vmatpush.msra.mxu0 %v1772_v3  ;;  %2894 = vmatpush.msra.mxu1 %v1868_v18  ;;  %v1227_v41 = vld [vmem:[#allocation5 + $0x810] sm:$0xff]  ;;  %v1029_v3 = vld [vmem:[#allocation5 + $0x1e0] sm:$0xff] }
 0x1ff   :  { %2914 = vmatpush.msra.mxu2 %v1964_v48  ;;  %v2561_v62 = vpop.f32.mrf.mxu0  ;;  %2934 = vmatpush.msra.mxu3 %v2060_v0  ;;  %v2581_v4 = vpop.f32.mrf.mxu1  ;;  %v1323_v56 = vld [vmem:[#allocation5 + $0xb10] sm:$0xff]  ;;  %v1125_v18 = vld [vmem:[#allocation5 + $0x4e0] sm:$0xff] }
 0x200   :  { %2875 = vmatpush.msra.mxu0 %v1766_v17  ;;  %v2562_v24 = vadd.f32 %v2561_v62, %v4890_v52  ;;  %2895 = vmatpush.msra.mxu1 %v1862_v42  ;;  %v2036_v52 = vld [vmem:[#allocation7 + $0xf58] sm:$0xff]  ;;  %v1221_v48 = vld [vmem:[#allocation5 + $0x7e0] sm:$0xff]  ;;  %v1023_v17 = vld [vmem:[#allocation5 + $0x1b0] sm:$0xff] }
 0x201   :  { %2915 = vmatpush.msra.mxu2 %v1958_v51  ;;  %2935 = vmatpush.msra.mxu3 %v2054_v30  ;;  %v1317_v0 = vld [vmem:[#allocation5 + $0xae0] sm:$0xff]  ;;  %v1119_v42 = vld [vmem:[#allocation5 + $0x4b0] sm:$0xff] }
 0x202   :  { %2876 = vmatpush.msra.mxu0 %v1760_v59  ;;  %v4897_v40 = vadd.f32 %v2581_v4, %v2562_v24  ;;  %2896 = vmatpush.msra.mxu1 %v1856_v14  ;;  %v1215_v51 = vld [vmem:[#allocation5 + $0x7b0] sm:$0xff]  ;;  %v1017_v59 = vld [vmem:[#allocation5 + $0x180] sm:$0xff] }
 0x203   :  { %2916 = vmatpush.msra.mxu2 %v1952_v61  ;;  %2936 = vmatpush.msra.mxu3 %v2048_v33  ;;  %v1311_v30 = vld [vmem:[#allocation5 + $0xab0] sm:$0xff]  ;;  %v1113_v62 = vld [vmem:[#allocation5 + $0x480] sm:$0xff] }
 0x204   :  { %2877 = vmatpush.msra.mxu0 %v1754_v37  ;;  %2897 = vmatpush.msra.mxu1 %v1850_v39  ;;  %v1209_v14 = vld [vmem:[#allocation5 + $0x780] sm:$0xff]  ;;  %v1011_v24 = vld [vmem:[#allocation5 + $0x150] sm:$0xff] }
 0x205   :  { %2917 = vmatpush.msra.mxu2 %v1946_v2  ;;  %2937 = vmatpush.msra.mxu3 %v2042_v54  ;;  %v1305_v61 = vld [vmem:[#allocation5 + $0xa80] sm:$0xff]  ;;  %v1107_v33 = vld [vmem:[#allocation5 + $0x450] sm:$0xff] }
 0x206   :  { %2878 = vmatpush.msra.mxu0 %v1748_v32  ;;  %v2601_v22 = vpop.f32.mrf.mxu2  ;;  %2898 = vmatpush.msra.mxu1 %v1844_v31  ;;  %v2621_v6 = vpop.f32.mrf.mxu3  ;;  %v1203_v37 = vld [vmem:[#allocation5 + $0x750] sm:$0xff]  ;;  %v1005_v39 = vld [vmem:[#allocation5 + $0x120] sm:$0xff] }
 0x207   :  { %2918 = vmatpush.msra.mxu2 %v1940_v60  ;;  %2938 = vmatpush.msra.mxu3 %v2036_v52  ;;  %v4899_v46 = vadd.f32 %v2621_v6, %v2601_v22  ;;  %v1299_v4 = vld [vmem:[#allocation5 + $0xa50] sm:$0xff]  ;;  %v1101_v2 = vld [vmem:[#allocation5 + $0x420] sm:$0xff] }
 0x208   :  { %2879 = vmatpush.msra.mxu0 %v1742_v36  ;;  %2899 = vmatpush.msra.mxu1 %v1838_v10  ;;  %v1197_v54 = vld [vmem:[#allocation5 + $0x720] sm:$0xff]  ;;  %v999_v31 = vld [vmem:[#allocation5 + $0xf0] sm:$0xff] }
 0x209   :  { %2919 = vmatpush.msra.mxu2 %v1934_v9  ;;  %2939 = vmatpush.msra.mxu3 %v2030_v23  ;;  %v1293_v32 = vld [vmem:[#allocation5 + $0xa20] sm:$0xff]  ;;  %v1095_v60 = vld [vmem:[#allocation5 + $0x3f0] sm:$0xff] }
 0x20a   :  { %2880 = vmatmul.f32.vlgmr.msra.gmra.mxu0 %v4576_v57  ;;  %2900 = vmatmul.f32.vlgmr.msra.gmra.mxu1 %v4583_v26  ;;  %v1143_v57 = vld [vmem:[#allocation5 + $0x570] sm:$0xff]  ;;  %v993_v10 = vld [vmem:[#allocation5 + $0xc0] sm:$0xff] }
 0x20b   :  { %2920 = vmatmul.f32.vlgmr.msra.gmra.mxu2 %v4625_v19  ;;  %2940 = vmatmul.f32.vlgmr.msra.gmra.mxu3 %v4684_v28  ;;  %v1335_v26 = vld [vmem:[#allocation5 + $0xb70] sm:$0xff]  ;;  %v1137_v19 = vld [vmem:[#allocation5 + $0x540] sm:$0xff] }
 0x20c   :  { %3082 = vmatpush.msrb.mxu0 %v1059_v44  ;;  %3102 = vmatpush.msrb.mxu1 %v1155_v53  ;;  %v1329_v28 = vld [vmem:[#allocation5 + $0xb40] sm:$0xff]  ;;  %v1191_v52 = vld [vmem:[#allocation5 + $0x6f0] sm:$0xff] }
 0x20d   :  { %3122 = vmatpush.msrb.mxu2 %v1251_v63  ;;  %3142 = vmatpush.msrb.mxu3 %v1347_v21  ;;  %v1287_v36 = vld [vmem:[#allocation5 + $0x9f0] sm:$0xff]  ;;  %v1089_v9 = vld [vmem:[#allocation5 + $0x3c0] sm:$0xff] }
 0x20e   :  { %3083 = vmatpush.msrb.mxu0 %v1053_v43  ;;  %3103 = vmatpush.msrb.mxu1 %v1149_v50  ;;  %v1185_v22 = vld [vmem:[#allocation5 + $0x6c0] sm:$0xff]  ;;  %v987_v6 = vld [vmem:[#allocation5 + $0x90] sm:$0xff] }
 0x20f   :  { %3123 = vmatpush.msrb.mxu2 %v1245_v49  ;;  %3143 = vmatpush.msrb.mxu3 %v1341_v58  ;;  %v1281_v23 = vld [vmem:[#allocation5 + $0x9c0] sm:$0xff]  ;;  %v1083_v53 = vld [vmem:[#allocation5 + $0x390] sm:$0xff] }
 0x210   :  { %3084 = vmatpush.msrb.mxu0 %v1047_v29  ;;  %3104 = vmatpush.msrb.mxu1 %v1143_v57  ;;  %v1179_v63 = vld [vmem:[#allocation5 + $0x690] sm:$0xff]  ;;  %v981_v50 = vld [vmem:[#allocation5 + $0x60] sm:$0xff] }
 0x211   :  { %3124 = vmatpush.msrb.mxu2 %v1239_v34  ;;  %3144 = vmatpush.msrb.mxu3 %v1335_v26  ;;  %v1275_v43 = vld [vmem:[#allocation5 + $0x990] sm:$0xff]  ;;  %v1077_v58 = vld [vmem:[#allocation5 + $0x360] sm:$0xff] }
 0x212   :  { %3085 = vmatpush.msrb.mxu0 %v1041_v1  ;;  %3105 = vmatpush.msrb.mxu1 %v1137_v19  ;;  %v1173_v29 = vld [vmem:[#allocation5 + $0x660] sm:$0xff]  ;;  %v975_v26 = vld [vmem:[#allocation5 + $0x30] sm:$0xff] }
 0x213   :  { %3125 = vmatpush.msrb.mxu2 %v1233_v11  ;;  %3145 = vmatpush.msrb.mxu3 %v1329_v28  ;;  %v1269_v34 = vld [vmem:[#allocation5 + $0x960] sm:$0xff]  ;;  %v1071_v1 = vld [vmem:[#allocation5 + $0x330] sm:$0xff] }
 0x214   :  { %3086 = vmatpush.msrb.mxu0 %v1035_v5  ;;  %3106 = vmatpush.msrb.mxu1 %v1131_v27  ;;  %v1167_v19 = vld [vmem:[#allocation5 + $0x630] sm:$0xff]  ;;  %v969_v11 = vld [vmem:[#allocation5] sm:$0xff] }
 0x215   :  { %3126 = vmatpush.msrb.mxu2 %v1227_v41  ;;  %3146 = vmatpush.msrb.mxu3 %v1323_v56  ;;  %v1065_v28 = vld [vmem:[#allocation5 + $0x300] sm:$0xff] }
 0x216   :  { %3087 = vmatpush.msrb.mxu0 %v1029_v3  ;;  %3107 = vmatpush.msrb.mxu1 %v1125_v18  ;;  %v1161_v5 = vld [vmem:[#allocation5 + $0x600] sm:$0xff]  ;;  %v1443_v18 = vld [vmem:[#allocation5 + $0xed0] sm:$0xff] }
 0x217   :  { %3127 = vmatpush.msrb.mxu2 %v1221_v48  ;;  %3147 = vmatpush.msrb.mxu3 %v1317_v0  ;;  %v1257_v41 = vld [vmem:[#allocation5 + $0x900] sm:$0xff]  ;;  %v1539_v0 = vld [vmem:[#allocation5 + $0x11d0] sm:$0xff] }
 0x218   :  { %3088 = vmatpush.msrb.mxu0 %v1023_v17  ;;  %3108 = vmatpush.msrb.mxu1 %v1119_v42  ;;  %v1060_v17 = vld [vmem:[#allocation5 + $0x2d8] sm:$0xff] }
 0x219   :  { %3128 = vmatpush.msrb.mxu2 %v1215_v51  ;;  %3148 = vmatpush.msrb.mxu3 %v1311_v30  ;;  %v1156_v42 = vld [vmem:[#allocation5 + $0x5d8] sm:$0xff]  ;;  %v1437_v51 = vld [vmem:[#allocation5 + $0xea0] sm:$0xff] }
 0x21a   :  { %3089 = vmatpush.msrb.mxu0 %v1017_v59  ;;  %3109 = vmatpush.msrb.mxu1 %v1113_v62  ;;  %v1533_v30 = vld [vmem:[#allocation5 + $0x11a0] sm:$0xff]  ;;  %v1054_v59 = vld [vmem:[#allocation5 + $0x2a8] sm:$0xff] }
 0x21b   :  { %3129 = vmatpush.msrb.mxu2 %v1209_v14  ;;  %3149 = vmatpush.msrb.mxu3 %v1305_v61  ;;  %v1150_v62 = vld [vmem:[#allocation5 + $0x5a8] sm:$0xff]  ;;  %v1431_v14 = vld [vmem:[#allocation5 + $0xe70] sm:$0xff] }
 0x21c   :  { %3090 = vmatpush.msrb.mxu0 %v1011_v24  ;;  %3110 = vmatpush.msrb.mxu1 %v1107_v33  ;;  %v1527_v61 = vld [vmem:[#allocation5 + $0x1170] sm:$0xff]  ;;  %v1048_v24 = vld [vmem:[#allocation5 + $0x278] sm:$0xff] }
 0x21d   :  { %3130 = vmatpush.msrb.mxu2 %v1203_v37  ;;  %3150 = vmatpush.msrb.mxu3 %v1299_v4  ;;  %v1144_v33 = vld [vmem:[#allocation5 + $0x578] sm:$0xff]  ;;  %v1425_v37 = vld [vmem:[#allocation5 + $0xe40] sm:$0xff] }
 0x21e   :  { %3091 = vmatpush.msrb.mxu0 %v1005_v39  ;;  %3111 = vmatpush.msrb.mxu1 %v1101_v2  ;;  %v1521_v4 = vld [vmem:[#allocation5 + $0x1140] sm:$0xff]  ;;  %v1042_v39 = vld [vmem:[#allocation5 + $0x248] sm:$0xff] }
 0x21f   :  { %3131 = vmatpush.msrb.mxu2 %v1197_v54  ;;  %3151 = vmatpush.msrb.mxu3 %v1293_v32  ;;  %v1138_v2 = vld [vmem:[#allocation5 + $0x548] sm:$0xff]  ;;  %v1419_v54 = vld [vmem:[#allocation5 + $0xe10] sm:$0xff] }
 0x220   :  { %3092 = vmatpush.msrb.mxu0 %v999_v31  ;;  %3112 = vmatpush.msrb.mxu1 %v1095_v60  ;;  %v1515_v32 = vld [vmem:[#allocation5 + $0x1110] sm:$0xff]  ;;  %v1036_v31 = vld [vmem:[#allocation5 + $0x218] sm:$0xff] }
 0x221   :  { %3132 = vmatpush.msrb.mxu2 %v1191_v52  ;;  %v2641_v44 = vpop.f32.mrf.mxu0  ;;  %3152 = vmatpush.msrb.mxu3 %v1287_v36  ;;  %v2661_v49 = vpop.f32.mrf.mxu1  ;;  %v1132_v60 = vld [vmem:[#allocation5 + $0x518] sm:$0xff]  ;;  %v1413_v52 = vld [vmem:[#allocation5 + $0xde0] sm:$0xff] }
 0x222   :  { %3093 = vmatpush.msrb.mxu0 %v993_v10  ;;  %v2642_v21 = vadd.f32 %v2641_v44, %v4899_v46  ;;  %3113 = vmatpush.msrb.mxu1 %v1089_v9  ;;  %v1263_v46 = vld [vmem:[#allocation5 + $0x930] sm:$0xff]  ;;  %v1509_v36 = vld [vmem:[#allocation5 + $0x10e0] sm:$0xff]  ;;  %v1030_v10 = vld [vmem:[#allocation5 + $0x1e8] sm:$0xff] }
 0x223   :  { %3133 = vmatpush.msrb.mxu2 %v1185_v22  ;;  %3153 = vmatpush.msrb.mxu3 %v1281_v23  ;;  %v1126_v9 = vld [vmem:[#allocation5 + $0x4e8] sm:$0xff]  ;;  %v1407_v22 = vld [vmem:[#allocation5 + $0xdb0] sm:$0xff]  ;;  %v1120_v44 = vld [vmem:[#allocation5 + $0x4b8] sm:$0xff] }
 0x224   :  { %3094 = vmatpush.msrb.mxu0 %v987_v6  ;;  %v2662_v57 = vadd.f32 %v2661_v49, %v2642_v21  ;;  %3114 = vmatpush.msrb.mxu1 %v1083_v53  ;;  %v1503_v23 = vld [vmem:[#allocation5 + $0x10b0] sm:$0xff]  ;;  %v1024_v6 = vld [vmem:[#allocation5 + $0x1b8] sm:$0xff]  ;;  %v1401_v53 = vld [vmem:[#allocation5 + $0xd80] sm:$0xff] }
 0x225   :  { %3134 = vmatpush.msrb.mxu2 %v1179_v63  ;;  %3154 = vmatpush.msrb.mxu3 %v1275_v43  ;;  %v1497_v63 = vld [vmem:[#allocation5 + $0x1080] sm:$0xff]  ;;  %v1018_v21 = vld [vmem:[#allocation5 + $0x188] sm:$0xff]  ;;  %v1491_v49 = vld [vmem:[#allocation5 + $0x1050] sm:$0xff] }
 0x226   :  { %3095 = vmatpush.msrb.mxu0 %v981_v50  ;;  %3115 = vmatpush.msrb.mxu1 %v1077_v58  ;;  %v1114_v43 = vld [vmem:[#allocation5 + $0x488] sm:$0xff]  ;;  %v1395_v50 = vld [vmem:[#allocation5 + $0xd50] sm:$0xff]  ;;  %v1012_v58 = vld [vmem:[#allocation5 + $0x158] sm:$0xff] }
 0x227   :  { %3135 = vmatpush.msrb.mxu2 %v1173_v29  ;;  %3155 = vmatpush.msrb.mxu3 %v1269_v34  ;;  %v1108_v29 = vld [vmem:[#allocation5 + $0x458] sm:$0xff]  ;;  %v1485_v34 = vld [vmem:[#allocation5 + $0x1020] sm:$0xff] }
 0x228   :  { %3096 = vmatpush.msrb.mxu0 %v975_v26  ;;  %v2681_v27 = vpop.f32.mrf.mxu2  ;;  %3116 = vmatpush.msrb.mxu1 %v1071_v1  ;;  %v2701_v3 = vpop.f32.mrf.mxu3  ;;  %v1006_v26 = vld [vmem:[#allocation5 + $0x128] sm:$0xff] }
 0x229   :  { %3136 = vmatpush.msrb.mxu2 %v1167_v19  ;;  %v2682_v56 = vadd.f32 %v2681_v27, %v2662_v57  ;;  %3156 = vmatpush.msrb.mxu3 %v1263_v46  ;;  %v1389_v57 = vld [vmem:[#allocation5 + $0xd20] sm:$0xff]  ;;  %v1102_v1 = vld [vmem:[#allocation5 + $0x428] sm:$0xff]  ;;  %v1383_v19 = vld [vmem:[#allocation5 + $0xcf0] sm:$0xff] }
 0x22a   :  { %3097 = vmatpush.msrb.mxu0 %v969_v11  ;;  %3117 = vmatpush.msrb.mxu1 %v1065_v28  ;;  %v1479_v46 = vld [vmem:[#allocation5 + $0xff0] sm:$0xff]  ;;  %v1000_v11 = vld [vmem:[#allocation5 + $0xf8] sm:$0xff]  ;;  %v1473_v27 = vld [vmem:[#allocation5 + $0xfc0] sm:$0xff] }
 0x22b   :  { %3137 = vmatpush.msrb.mxu2 %v1161_v5  ;;  %v4906_v48 = vadd.f32 %v2701_v3, %v2682_v56  ;;  %3157 = vmatpush.msrb.mxu3 %v1257_v41  ;;  %v1096_v28 = vld [vmem:[#allocation5 + $0x3f8] sm:$0xff]  ;;  %v1377_v5 = vld [vmem:[#allocation5 + $0xcc0] sm:$0xff]  ;;  %v994_v41 = vld [vmem:[#allocation5 + $0xc8] sm:$0xff] }
 0x22c   :  { %3098 = vmatmul.f32.vlgmr.msrb.gmra.mxu0 %v4740_v12  ;;  %3118 = vmatmul.f32.vlgmr.msrb.gmra.mxu1 %v4763_v25  ;;  %v1090_v56 = vld [vmem:[#allocation5 + $0x3c8] sm:$0xff]  ;;  %v1371_v3 = vld [vmem:[#allocation5 + $0xc90] sm:$0xff] }
 0x22d   :  { %3138 = vmatmul.f32.vlgmr.msrb.gmra.mxu2 %v4793_v7  ;;  %3158 = vmatmul.f32.vlgmr.msrb.gmra.mxu3 %v4819_v13 }
 0x22e   :  { %3162 = vmatpush.msra.mxu0 %v1443_v18  ;;  %3182 = vmatpush.msra.mxu1 %v1539_v0  ;;  %v1467_v0 = vld [vmem:[#allocation5 + $0xf90] sm:$0xff] }
 0x22f   :  { %3202 = vmatpush.msra.mxu2 %v1060_v17  ;;  %3222 = vmatpush.msra.mxu3 %v1156_v42  ;;  %v988_v17 = vld [vmem:[#allocation5 + $0x98] sm:$0xff] }
 0x230   :  { %3163 = vmatpush.msra.mxu0 %v1437_v51  ;;  %3183 = vmatpush.msra.mxu1 %v1533_v30  ;;  %v1084_v51 = vld [vmem:[#allocation5 + $0x398] sm:$0xff]  ;;  %v1365_v30 = vld [vmem:[#allocation5 + $0xc60] sm:$0xff] }
 0x231   :  { %3203 = vmatpush.msra.mxu2 %v1054_v59  ;;  %3223 = vmatpush.msra.mxu3 %v1150_v62  ;;  %v1461_v62 = vld [vmem:[#allocation5 + $0xf60] sm:$0xff] }
 0x232   :  { %3164 = vmatpush.msra.mxu0 %v1431_v14  ;;  %3184 = vmatpush.msra.mxu1 %v1527_v61  ;;  %v982_v14 = vld [vmem:[#allocation5 + $0x68] sm:$0xff] }
 0x233   :  { %3204 = vmatpush.msra.mxu2 %v1048_v24  ;;  %3224 = vmatpush.msra.mxu3 %v1144_v33  ;;  %v1078_v61 = vld [vmem:[#allocation5 + $0x368] sm:$0xff]  ;;  %v1359_v24 = vld [vmem:[#allocation5 + $0xc30] sm:$0xff] }
 0x234   :  { %3165 = vmatpush.msra.mxu0 %v1425_v37  ;;  %3185 = vmatpush.msra.mxu1 %v1521_v4  ;;  %v1455_v33 = vld [vmem:[#allocation5 + $0xf30] sm:$0xff]  ;;  %v976_v37 = vld [vmem:[#allocation5 + $0x38] sm:$0xff] }
 0x235   :  { %3205 = vmatpush.msra.mxu2 %v1042_v39  ;;  %3225 = vmatpush.msra.mxu3 %v1138_v2  ;;  %v1072_v4 = vld [vmem:[#allocation5 + $0x338] sm:$0xff]  ;;  %v1353_v39 = vld [vmem:[#allocation5 + $0xc00] sm:$0xff] }
 0x236   :  { %3166 = vmatpush.msra.mxu0 %v1419_v54  ;;  %3186 = vmatpush.msra.mxu1 %v1515_v32  ;;  %v1449_v2 = vld [vmem:[#allocation5 + $0xf00] sm:$0xff]  ;;  %v970_v54 = vld [vmem:[#allocation5 + $0x8] sm:$0xff] }
 0x237   :  { %3206 = vmatpush.msra.mxu2 %v1036_v31  ;;  %3226 = vmatpush.msra.mxu3 %v1132_v60  ;;  %v1066_v31 = vld [vmem:[#allocation5 + $0x308] sm:$0xff] }
 0x238   :  { %3167 = vmatpush.msra.mxu0 %v1413_v52  ;;  %3187 = vmatpush.msra.mxu1 %v1509_v36  ;;  %v1252_v36 = vld [vmem:[#allocation5 + $0x8d8] sm:$0xff] }
 0x239   :  { %3207 = vmatpush.msra.mxu2 %v1030_v10  ;;  %3227 = vmatpush.msra.mxu3 %v1126_v9  ;;  %v1348_v9 = vld [vmem:[#allocation5 + $0xbd8] sm:$0xff] }
 0x23a   :  { %3168 = vmatpush.msra.mxu0 %v1407_v22  ;;  %3188 = vmatpush.msra.mxu1 %v1503_v23  ;;  %v1444_v22 = vld [vmem:[#allocation5 + $0xed8] sm:$0xff] }
 0x23b   :  { %3208 = vmatpush.msra.mxu2 %v1024_v6  ;;  %3228 = vmatpush.msra.mxu3 %v1120_v44  ;;  %v1540_v23 = vld [vmem:[#allocation5 + $0x11d8] sm:$0xff]  ;;  %v1246_v6 = vld [vmem:[#allocation5 + $0x8a8] sm:$0xff] }
 0x23c   :  { %3169 = vmatpush.msra.mxu0 %v1401_v53  ;;  %3189 = vmatpush.msra.mxu1 %v1497_v63  ;;  %v1342_v44 = vld [vmem:[#allocation5 + $0xba8] sm:$0xff] }
 0x23d   :  { %3209 = vmatpush.msra.mxu2 %v1018_v21  ;;  %3229 = vmatpush.msra.mxu3 %v1114_v43  ;;  %v1438_v53 = vld [vmem:[#allocation5 + $0xea8] sm:$0xff]  ;;  %v1240_v21 = vld [vmem:[#allocation5 + $0x878] sm:$0xff] }
 0x23e   :  { %3170 = vmatpush.msra.mxu0 %v1395_v50  ;;  %3190 = vmatpush.msra.mxu1 %v1491_v49  ;;  %v1534_v63 = vld [vmem:[#allocation5 + $0x11a8] sm:$0xff]  ;;  %v1336_v43 = vld [vmem:[#allocation5 + $0xb78] sm:$0xff] }
 0x23f   :  { %3210 = vmatpush.msra.mxu2 %v1012_v58  ;;  %3230 = vmatpush.msra.mxu3 %v1108_v29  ;;  %v1432_v50 = vld [vmem:[#allocation5 + $0xe78] sm:$0xff]  ;;  %v1234_v58 = vld [vmem:[#allocation5 + $0x848] sm:$0xff] }
 0x240   :  { %3171 = vmatpush.msra.mxu0 %v1389_v57  ;;  %3191 = vmatpush.msra.mxu1 %v1485_v34  ;;  %v1528_v49 = vld [vmem:[#allocation5 + $0x1178] sm:$0xff]  ;;  %v1330_v29 = vld [vmem:[#allocation5 + $0xb48] sm:$0xff] }
 0x241   :  { %3211 = vmatpush.msra.mxu2 %v1006_v26  ;;  %3231 = vmatpush.msra.mxu3 %v1102_v1  ;;  %v1426_v57 = vld [vmem:[#allocation5 + $0xe48] sm:$0xff]  ;;  %v1228_v26 = vld [vmem:[#allocation5 + $0x818] sm:$0xff] }
 0x242   :  { %3172 = vmatpush.msra.mxu0 %v1383_v19  ;;  %3192 = vmatpush.msra.mxu1 %v1479_v46  ;;  %v1522_v34 = vld [vmem:[#allocation5 + $0x1148] sm:$0xff]  ;;  %v1324_v1 = vld [vmem:[#allocation5 + $0xb18] sm:$0xff] }
 0x243   :  { %3212 = vmatpush.msra.mxu2 %v1000_v11  ;;  %v2721_v18 = vpop.f32.mrf.mxu0  ;;  %3232 = vmatpush.msra.mxu3 %v1096_v28  ;;  %v2741_v42 = vpop.f32.mrf.mxu1  ;;  %v1420_v19 = vld [vmem:[#allocation5 + $0xe18] sm:$0xff]  ;;  %v1222_v11 = vld [vmem:[#allocation5 + $0x7e8] sm:$0xff] }
 0x244   :  { %3173 = vmatpush.msra.mxu0 %v1377_v5  ;;  %3193 = vmatpush.msra.mxu1 %v1473_v27  ;;  %v2742_v59 = vadd.f32 %v2741_v42, %v2721_v18  ;;  %v1516_v46 = vld [vmem:[#allocation5 + $0x1118] sm:$0xff]  ;;  %v1318_v28 = vld [vmem:[#allocation5 + $0xae8] sm:$0xff] }
 0x245   :  { %3213 = vmatpush.msra.mxu2 %v994_v41  ;;  %3233 = vmatpush.msra.mxu3 %v1090_v56  ;;  %v1414_v5 = vld [vmem:[#allocation5 + $0xde8] sm:$0xff]  ;;  %v1216_v41 = vld [vmem:[#allocation5 + $0x7b8] sm:$0xff] }
 0x246   :  { %3174 = vmatpush.msra.mxu0 %v1371_v3  ;;  %3194 = vmatpush.msra.mxu1 %v1467_v0  ;;  %v1510_v27 = vld [vmem:[#allocation5 + $0x10e8] sm:$0xff]  ;;  %v1312_v56 = vld [vmem:[#allocation5 + $0xab8] sm:$0xff] }
 0x247   :  { %3214 = vmatpush.msra.mxu2 %v988_v17  ;;  %3234 = vmatpush.msra.mxu3 %v1084_v51  ;;  %v1408_v3 = vld [vmem:[#allocation5 + $0xdb8] sm:$0xff]  ;;  %v1210_v0 = vld [vmem:[#allocation5 + $0x788] sm:$0xff] }
 0x248   :  { %3175 = vmatpush.msra.mxu0 %v1365_v30  ;;  %3195 = vmatpush.msra.mxu1 %v1461_v62  ;;  %v1504_v18 = vld [vmem:[#allocation5 + $0x10b8] sm:$0xff]  ;;  %v1306_v17 = vld [vmem:[#allocation5 + $0xa88] sm:$0xff] }
 0x249   :  { %3215 = vmatpush.msra.mxu2 %v982_v14  ;;  %3235 = vmatpush.msra.mxu3 %v1078_v61  ;;  %v1402_v42 = vld [vmem:[#allocation5 + $0xd88] sm:$0xff]  ;;  %v1204_v30 = vld [vmem:[#allocation5 + $0x758] sm:$0xff] }
 0x24a   :  { %3176 = vmatpush.msra.mxu0 %v1359_v24  ;;  %v2761_v32 = vpop.f32.mrf.mxu2  ;;  %3196 = vmatpush.msra.mxu1 %v1455_v33  ;;  %v2781_v52 = vpop.f32.mrf.mxu3  ;;  %v1498_v51 = vld [vmem:[#allocation5 + $0x1088] sm:$0xff]  ;;  %v1396_v62 = vld [vmem:[#allocation5 + $0xd58] sm:$0xff] }
 0x24b   :  { %3216 = vmatpush.msra.mxu2 %v976_v37  ;;  %v2762_v60 = vadd.f32 %v2761_v32, %v2742_v59  ;;  %3236 = vmatpush.msra.mxu3 %v1072_v4  ;;  %v1300_v59 = vld [vmem:[#allocation5 + $0xa58] sm:$0xff]  ;;  %v1198_v61 = vld [vmem:[#allocation5 + $0x728] sm:$0xff] }
 0x24c   :  { %3177 = vmatpush.msra.mxu0 %v1353_v39  ;;  %3197 = vmatpush.msra.mxu1 %v1449_v2  ;;  %v1492_v14 = vld [vmem:[#allocation5 + $0x1058] sm:$0xff]  ;;  %v1294_v24 = vld [vmem:[#allocation5 + $0xa28] sm:$0xff] }
 0x24d   :  { %3217 = vmatpush.msra.mxu2 %v970_v54  ;;  %v4912_v10 = vadd.f32 %v2781_v52, %v2762_v60  ;;  %3237 = vmatpush.msra.mxu3 %v1066_v31  ;;  %v1390_v33 = vld [vmem:[#allocation5 + $0xd28] sm:$0xff]  ;;  %v1192_v4 = vld [vmem:[#allocation5 + $0x6f8] sm:$0xff] }
 0x24e   :  { %3178 = vmatmul.f32.vlgmr.msra.gmra.mxu0 %v4846_v20  ;;  %3198 = vmatmul.f32.vlgmr.msra.gmra.mxu1 %v4855_v35  ;;  %v1486_v37 = vld [vmem:[#allocation5 + $0x1028] sm:$0xff]  ;;  %v1288_v39 = vld [vmem:[#allocation5 + $0x9f8] sm:$0xff] }
 0x24f   :  { %3218 = vmatmul.f32.vlgmr.msra.gmra.mxu2 %v4740_v12  ;;  %3238 = vmatmul.f32.vlgmr.msra.gmra.mxu3 %v4763_v25  ;;  %v1384_v2 = vld [vmem:[#allocation5 + $0xcf8] sm:$0xff]  ;;  %v1186_v32 = vld [vmem:[#allocation5 + $0x6c8] sm:$0xff] }
 0x250   :  { %3242 = vmatpush.msrb.mxu0 %v1252_v36  ;;  %3262 = vmatpush.msrb.mxu1 %v1348_v9  ;;  %v1480_v54 = vld [vmem:[#allocation5 + $0xff8] sm:$0xff]  ;;  %v1282_v31 = vld [vmem:[#allocation5 + $0x9c8] sm:$0xff] }
 0x251   :  { %3282 = vmatpush.msrb.mxu2 %v1444_v22  ;;  %3302 = vmatpush.msrb.mxu3 %v1540_v23  ;;  %v1378_v60 = vld [vmem:[#allocation5 + $0xcc8] sm:$0xff]  ;;  %v1180_v36 = vld [vmem:[#allocation5 + $0x698] sm:$0xff] }
 0x252   :  { %3243 = vmatpush.msrb.mxu0 %v1246_v6  ;;  %3263 = vmatpush.msrb.mxu1 %v1342_v44  ;;  %v1474_v52 = vld [vmem:[#allocation5 + $0xfc8] sm:$0xff]  ;;  %v1276_v22 = vld [vmem:[#allocation5 + $0x998] sm:$0xff] }
 0x253   :  { %3283 = vmatpush.msrb.mxu2 %v1438_v53  ;;  %3303 = vmatpush.msrb.mxu3 %v1534_v63  ;;  %v1372_v23 = vld [vmem:[#allocation5 + $0xc98] sm:$0xff]  ;;  %v1174_v53 = vld [vmem:[#allocation5 + $0x668] sm:$0xff] }
 0x254   :  { %3244 = vmatpush.msrb.mxu0 %v1240_v21  ;;  %3264 = vmatpush.msrb.mxu1 %v1336_v43  ;;  %v1468_v44 = vld [vmem:[#allocation5 + $0xf98] sm:$0xff]  ;;  %v1270_v21 = vld [vmem:[#allocation5 + $0x968] sm:$0xff] }
 0x255   :  { %3284 = vmatpush.msrb.mxu2 %v1432_v50  ;;  %3304 = vmatpush.msrb.mxu3 %v1528_v49  ;;  %v1366_v43 = vld [vmem:[#allocation5 + $0xc68] sm:$0xff] }
 0x256   :  { %3245 = vmatpush.msrb.mxu0 %v1234_v58  ;;  %3265 = vmatpush.msrb.mxu1 %v1330_v29  ;;  %v1462_v49 = vld [vmem:[#allocation5 + $0xf68] sm:$0xff]  ;;  %v1168_v58 = vld [vmem:[#allocation5 + $0x638] sm:$0xff] }
 0x257   :  { %3285 = vmatpush.msrb.mxu2 %v1426_v57  ;;  %3305 = vmatpush.msrb.mxu3 %v1522_v34  ;;  %v1264_v29 = vld [vmem:[#allocation5 + $0x938] sm:$0xff]  ;;  %v1162_v34 = vld [vmem:[#allocation5 + $0x608] sm:$0xff] }
 0x258   :  { %3246 = vmatpush.msrb.mxu0 %v1228_v26  ;;  %3266 = vmatpush.msrb.mxu1 %v1324_v1  ;;  %v1360_v57 = vld [vmem:[#allocation5 + $0xc38] sm:$0xff]  ;;  %v1258_v26 = vld [vmem:[#allocation5 + $0x908] sm:$0xff] }
 0x259   :  { %3286 = vmatpush.msrb.mxu2 %v1420_v19  ;;  %3306 = vmatpush.msrb.mxu3 %v1516_v46  ;;  %v1354_v1 = vld [vmem:[#allocation5 + $0xc08] sm:$0xff] }
 0x25a   :  { %3247 = vmatpush.msrb.mxu0 %v1222_v11  ;;  %3267 = vmatpush.msrb.mxu1 %v1318_v28  ;;  %v1450_v46 = vld [vmem:[#allocation5 + $0xf08] sm:$0xff] }
 0x25b   :  { %3287 = vmatpush.msrb.mxu2 %v1414_v5  ;;  %3307 = vmatpush.msrb.mxu3 %v1510_v27  ;;  %v1061_v5 = vld [vmem:[#allocation5 + $0x2e0] sm:$0xff] }
 0x25c   :  { %3248 = vmatpush.msrb.mxu0 %v1216_v41  ;;  %3268 = vmatpush.msrb.mxu1 %v1312_v56  ;;  %v1157_v27 = vld [vmem:[#allocation5 + $0x5e0] sm:$0xff] }
 0x25d   :  { %3288 = vmatpush.msrb.mxu2 %v1408_v3  ;;  %3308 = vmatpush.msrb.mxu3 %v1504_v18  ;;  %v1253_v41 = vld [vmem:[#allocation5 + $0x8e0] sm:$0xff]  ;;  %v1055_v3 = vld [vmem:[#allocation5 + $0x2b0] sm:$0xff] }
 0x25e   :  { %3249 = vmatpush.msrb.mxu0 %v1210_v0  ;;  %3269 = vmatpush.msrb.mxu1 %v1306_v17  ;;  %v1349_v56 = vld [vmem:[#allocation5 + $0xbe0] sm:$0xff]  ;;  %v1151_v18 = vld [vmem:[#allocation5 + $0x5b0] sm:$0xff] }
 0x25f   :  { %3289 = vmatpush.msrb.mxu2 %v1402_v42  ;;  %3309 = vmatpush.msrb.mxu3 %v1498_v51  ;;  %v1247_v0 = vld [vmem:[#allocation5 + $0x8b0] sm:$0xff]  ;;  %v1049_v42 = vld [vmem:[#allocation5 + $0x280] sm:$0xff] }
 0x260   :  { %3250 = vmatpush.msrb.mxu0 %v1204_v30  ;;  %3270 = vmatpush.msrb.mxu1 %v1300_v59  ;;  %v1343_v17 = vld [vmem:[#allocation5 + $0xbb0] sm:$0xff]  ;;  %v1145_v51 = vld [vmem:[#allocation5 + $0x580] sm:$0xff] }
 0x261   :  { %3290 = vmatpush.msrb.mxu2 %v1396_v62  ;;  %3310 = vmatpush.msrb.mxu3 %v1492_v14  ;;  %v1241_v30 = vld [vmem:[#allocation5 + $0x880] sm:$0xff]  ;;  %v1043_v62 = vld [vmem:[#allocation5 + $0x250] sm:$0xff] }
 0x262   :  { %3251 = vmatpush.msrb.mxu0 %v1198_v61  ;;  %3271 = vmatpush.msrb.mxu1 %v1294_v24  ;;  %v1337_v59 = vld [vmem:[#allocation5 + $0xb80] sm:$0xff]  ;;  %v1139_v14 = vld [vmem:[#allocation5 + $0x550] sm:$0xff] }
 0x263   :  { %3291 = vmatpush.msrb.mxu2 %v1390_v33  ;;  %3311 = vmatpush.msrb.mxu3 %v1486_v37  ;;  %v1235_v61 = vld [vmem:[#allocation5 + $0x850] sm:$0xff]  ;;  %v1037_v33 = vld [vmem:[#allocation5 + $0x220] sm:$0xff] }
 0x264   :  { %3252 = vmatpush.msrb.mxu0 %v1192_v4  ;;  %3272 = vmatpush.msrb.mxu1 %v1288_v39  ;;  %v1331_v24 = vld [vmem:[#allocation5 + $0xb50] sm:$0xff]  ;;  %v1133_v37 = vld [vmem:[#allocation5 + $0x520] sm:$0xff] }
 0x265   :  { %3292 = vmatpush.msrb.mxu2 %v1384_v2  ;;  %v2801_v9 = vpop.f32.mrf.mxu0  ;;  %3312 = vmatpush.msrb.mxu3 %v1480_v54  ;;  %v2821_v63 = vpop.f32.mrf.mxu1  ;;  %v1229_v4 = vld [vmem:[#allocation5 + $0x820] sm:$0xff]  ;;  %v1031_v2 = vld [vmem:[#allocation5 + $0x1f0] sm:$0xff] }
 0x266   :  { %3253 = vmatpush.msrb.mxu0 %v1186_v32  ;;  %v2802_v6 = vadd.f32 %v2801_v9, %v4912_v10  ;;  %3273 = vmatpush.msrb.mxu1 %v1282_v31  ;;  %v1456_v10 = vld [vmem:[#allocation5 + $0xf38] sm:$0xff]  ;;  %v1325_v39 = vld [vmem:[#allocation5 + $0xb20] sm:$0xff]  ;;  %v1127_v54 = vld [vmem:[#allocation5 + $0x4f0] sm:$0xff] }
 0x267   :  { %3293 = vmatpush.msrb.mxu2 %v1378_v60  ;;  %3313 = vmatpush.msrb.mxu3 %v1474_v52  ;;  %v1223_v32 = vld [vmem:[#allocation5 + $0x7f0] sm:$0xff]  ;;  %v1025_v60 = vld [vmem:[#allocation5 + $0x1c0] sm:$0xff] }
 0x268   :  { %3254 = vmatpush.msrb.mxu0 %v1180_v36  ;;  %v4919_v50 = vadd.f32 %v2821_v63, %v2802_v6  ;;  %3274 = vmatpush.msrb.mxu1 %v1276_v22  ;;  %v1319_v31 = vld [vmem:[#allocation5 + $0xaf0] sm:$0xff]  ;;  %v1121_v52 = vld [vmem:[#allocation5 + $0x4c0] sm:$0xff] }
 0x269   :  { %3294 = vmatpush.msrb.mxu2 %v1372_v23  ;;  %3314 = vmatpush.msrb.mxu3 %v1468_v44  ;;  %v1217_v36 = vld [vmem:[#allocation5 + $0x7c0] sm:$0xff]  ;;  %v1019_v22 = vld [vmem:[#allocation5 + $0x190] sm:$0xff] }
 0x26a   :  { %3255 = vmatpush.msrb.mxu0 %v1174_v53  ;;  %3275 = vmatpush.msrb.mxu1 %v1270_v21  ;;  %v1313_v9 = vld [vmem:[#allocation5 + $0xac0] sm:$0xff]  ;;  %v1115_v23 = vld [vmem:[#allocation5 + $0x490] sm:$0xff] }
 0x26b   :  { %3295 = vmatpush.msrb.mxu2 %v1366_v43  ;;  %3315 = vmatpush.msrb.mxu3 %v1462_v49  ;;  %v1211_v6 = vld [vmem:[#allocation5 + $0x790] sm:$0xff]  ;;  %v1013_v53 = vld [vmem:[#allocation5 + $0x160] sm:$0xff] }
 0x26c   :  { %3256 = vmatpush.msrb.mxu0 %v1168_v58  ;;  %v2841_v19 = vpop.f32.mrf.mxu2  ;;  %3276 = vmatpush.msrb.mxu1 %v1264_v29  ;;  %v2861_v11 = vpop.f32.mrf.mxu3  ;;  %v1307_v44 = vld [vmem:[#allocation5 + $0xa90] sm:$0xff]  ;;  %v1109_v63 = vld [vmem:[#allocation5 + $0x460] sm:$0xff] }
 0x26d   :  { %3296 = vmatpush.msrb.mxu2 %v1360_v57  ;;  %3316 = vmatpush.msrb.mxu3 %v1456_v10  ;;  %v4921_v28 = vadd.f32 %v2861_v11, %v2841_v19  ;;  %v1205_v21 = vld [vmem:[#allocation5 + $0x760] sm:$0xff]  ;;  %v1007_v49 = vld [vmem:[#allocation5 + $0x130] sm:$0xff] }
 0x26e   :  { %3257 = vmatpush.msrb.mxu0 %v1162_v34  ;;  %3277 = vmatpush.msrb.mxu1 %v1258_v26  ;;  %v1301_v43 = vld [vmem:[#allocation5 + $0xa60] sm:$0xff]  ;;  %v1103_v58 = vld [vmem:[#allocation5 + $0x430] sm:$0xff] }
 0x26f   :  { %3297 = vmatpush.msrb.mxu2 %v1354_v1  ;;  %3317 = vmatpush.msrb.mxu3 %v1450_v46  ;;  %v1199_v29 = vld [vmem:[#allocation5 + $0x730] sm:$0xff]  ;;  %v1001_v10 = vld [vmem:[#allocation5 + $0x100] sm:$0xff] }
 0x270   :  { %3258 = vmatmul.f32.vlgmr.msrb.gmra.mxu0 %v4793_v7  ;;  %3278 = vmatmul.f32.vlgmr.msrb.gmra.mxu1 %v4819_v13  ;;  %v1295_v57 = vld [vmem:[#allocation5 + $0xa30] sm:$0xff]  ;;  %v1097_v34 = vld [vmem:[#allocation5 + $0x400] sm:$0xff] }
 0x271   :  { %3298 = vmatmul.f32.vlgmr.msrb.gmra.mxu2 %v4846_v20  ;;  %3318 = vmatmul.f32.vlgmr.msrb.gmra.mxu3 %v4855_v35  ;;  %v1193_v26 = vld [vmem:[#allocation5 + $0x700] sm:$0xff]  ;;  %v995_v19 = vld [vmem:[#allocation5 + $0xd0] sm:$0xff] }
 0x272   :  { %3322 = vmatpush.msra.mxu0 %v1061_v5  ;;  %3342 = vmatpush.msra.mxu1 %v1157_v27  ;;  %v1289_v1 = vld [vmem:[#allocation5 + $0xa00] sm:$0xff]  ;;  %v1091_v46 = vld [vmem:[#allocation5 + $0x3d0] sm:$0xff] }
 0x273   :  { %3362 = vmatpush.msra.mxu2 %v1253_v41  ;;  %3382 = vmatpush.msra.mxu3 %v1349_v56  ;;  %v1187_v11 = vld [vmem:[#allocation5 + $0x6d0] sm:$0xff]  ;;  %v989_v27 = vld [vmem:[#allocation5 + $0xa0] sm:$0xff] }
 0x274   :  { %3323 = vmatpush.msra.mxu0 %v1055_v3  ;;  %3343 = vmatpush.msra.mxu1 %v1151_v18  ;;  %v1283_v5 = vld [vmem:[#allocation5 + $0x9d0] sm:$0xff]  ;;  %v1085_v56 = vld [vmem:[#allocation5 + $0x3a0] sm:$0xff] }
 0x275   :  { %3363 = vmatpush.msra.mxu2 %v1247_v0  ;;  %3383 = vmatpush.msra.mxu3 %v1343_v17  ;;  %v1181_v3 = vld [vmem:[#allocation5 + $0x6a0] sm:$0xff]  ;;  %v983_v17 = vld [vmem:[#allocation5 + $0x70] sm:$0xff] }
 0x276   :  { %3324 = vmatpush.msra.mxu0 %v1049_v42  ;;  %3344 = vmatpush.msra.mxu1 %v1145_v51  ;;  %v1277_v0 = vld [vmem:[#allocation5 + $0x9a0] sm:$0xff]  ;;  %v1079_v51 = vld [vmem:[#allocation5 + $0x370] sm:$0xff] }
 0x277   :  { %3364 = vmatpush.msra.mxu2 %v1241_v30  ;;  %3384 = vmatpush.msra.mxu3 %v1337_v59  ;;  %v1175_v30 = vld [vmem:[#allocation5 + $0x670] sm:$0xff] }
 0x278   :  { %3325 = vmatpush.msra.mxu0 %v1043_v62  ;;  %3345 = vmatpush.msra.mxu1 %v1139_v14  ;;  %v1271_v62 = vld [vmem:[#allocation5 + $0x970] sm:$0xff]  ;;  %v977_v14 = vld [vmem:[#allocation5 + $0x40] sm:$0xff] }
 0x279   :  { %3365 = vmatpush.msra.mxu2 %v1235_v61  ;;  %3385 = vmatpush.msra.mxu3 %v1331_v24  ;;  %v1073_v61 = vld [vmem:[#allocation5 + $0x340] sm:$0xff] }
 0x27a   :  { %3326 = vmatpush.msra.mxu0 %v1037_v33  ;;  %3346 = vmatpush.msra.mxu1 %v1133_v37  ;;  %v1169_v24 = vld [vmem:[#allocation5 + $0x640] sm:$0xff]  ;;  %v971_v33 = vld [vmem:[#allocation5 + $0x10] sm:$0xff] }
 0x27b   :  { %3366 = vmatpush.msra.mxu2 %v1229_v4  ;;  %3386 = vmatpush.msra.mxu3 %v1325_v39  ;;  %v1067_v37 = vld [vmem:[#allocation5 + $0x310] sm:$0xff] }
 0x27c   :  { %3327 = vmatpush.msra.mxu0 %v1031_v2  ;;  %3347 = vmatpush.msra.mxu1 %v1127_v54  ;;  %v1163_v4 = vld [vmem:[#allocation5 + $0x610] sm:$0xff] }
 0x27d   :  { %3367 = vmatpush.msra.mxu2 %v1223_v32  ;;  %3387 = vmatpush.msra.mxu3 %v1319_v31  ;;  %v1259_v2 = vld [vmem:[#allocation5 + $0x910] sm:$0xff]  ;;  %v1445_v31 = vld [vmem:[#allocation5 + $0xee0] sm:$0xff] }
 0x27e   :  { %3328 = vmatpush.msra.mxu0 %v1025_v60  ;;  %3348 = vmatpush.msra.mxu1 %v1121_v52  ;;  %v1541_v52 = vld [vmem:[#allocation5 + $0x11e0] sm:$0xff] }
 0x27f   :  { %3368 = vmatpush.msra.mxu2 %v1217_v36  ;;  %3388 = vmatpush.msra.mxu3 %v1313_v9  ;;  %v1062_v36 = vld [vmem:[#allocation5 + $0x2e8] sm:$0xff] }
 0x280   :  { %3329 = vmatpush.msra.mxu0 %v1019_v22  ;;  %3349 = vmatpush.msra.mxu1 %v1115_v23  ;;  %v1158_v9 = vld [vmem:[#allocation5 + $0x5e8] sm:$0xff]  ;;  %v1439_v22 = vld [vmem:[#allocation5 + $0xeb0] sm:$0xff] }
 0x281   :  { %3369 = vmatpush.msra.mxu2 %v1211_v6  ;;  %3389 = vmatpush.msra.mxu3 %v1307_v44  ;;  %v1535_v23 = vld [vmem:[#allocation5 + $0x11b0] sm:$0xff]  ;;  %v1056_v6 = vld [vmem:[#allocation5 + $0x2b8] sm:$0xff] }
 0x282   :  { %3330 = vmatpush.msra.mxu0 %v1013_v53  ;;  %3350 = vmatpush.msra.mxu1 %v1109_v63  ;;  %v1152_v44 = vld [vmem:[#allocation5 + $0x5b8] sm:$0xff]  ;;  %v1433_v53 = vld [vmem:[#allocation5 + $0xe80] sm:$0xff] }
 0x283   :  { %3370 = vmatpush.msra.mxu2 %v1205_v21  ;;  %3390 = vmatpush.msra.mxu3 %v1301_v43  ;;  %v1529_v63 = vld [vmem:[#allocation5 + $0x1180] sm:$0xff]  ;;  %v1050_v21 = vld [vmem:[#allocation5 + $0x288] sm:$0xff] }
 0x284   :  { %3331 = vmatpush.msra.mxu0 %v1007_v49  ;;  %3351 = vmatpush.msra.mxu1 %v1103_v58  ;;  %v1146_v43 = vld [vmem:[#allocation5 + $0x588] sm:$0xff]  ;;  %v1427_v49 = vld [vmem:[#allocation5 + $0xe50] sm:$0xff] }
 0x285   :  { %3371 = vmatpush.msra.mxu2 %v1199_v29  ;;  %3391 = vmatpush.msra.mxu3 %v1295_v57  ;;  %v1523_v58 = vld [vmem:[#allocation5 + $0x1150] sm:$0xff]  ;;  %v1044_v29 = vld [vmem:[#allocation5 + $0x258] sm:$0xff] }
 0x286   :  { %3332 = vmatpush.msra.mxu0 %v1001_v10  ;;  %3352 = vmatpush.msra.mxu1 %v1097_v34  ;;  %v1140_v57 = vld [vmem:[#allocation5 + $0x558] sm:$0xff]  ;;  %v1421_v10 = vld [vmem:[#allocation5 + $0xe20] sm:$0xff] }
 0x287   :  { %3372 = vmatpush.msra.mxu2 %v1193_v26  ;;  %v2881_v41 = vpop.f32.mrf.mxu0  ;;  %3392 = vmatpush.msra.mxu3 %v1289_v1  ;;  %v2901_v42 = vpop.f32.mrf.mxu1  ;;  %v1517_v34 = vld [vmem:[#allocation5 + $0x1120] sm:$0xff]  ;;  %v1038_v26 = vld [vmem:[#allocation5 + $0x228] sm:$0xff] }
 0x288   :  { %3333 = vmatpush.msra.mxu0 %v995_v19  ;;  %v2882_v18 = vadd.f32 %v2881_v41, %v4921_v28  ;;  %3353 = vmatpush.msra.mxu1 %v1091_v46  ;;  %v1265_v28 = vld [vmem:[#allocation5 + $0x940] sm:$0xff]  ;;  %v1134_v1 = vld [vmem:[#allocation5 + $0x528] sm:$0xff]  ;;  %v1415_v19 = vld [vmem:[#allocation5 + $0xdf0] sm:$0xff] }
 0x289   :  { %3373 = vmatpush.msra.mxu2 %v1187_v11  ;;  %3393 = vmatpush.msra.mxu3 %v1283_v5  ;;  %v1511_v46 = vld [vmem:[#allocation5 + $0x10f0] sm:$0xff]  ;;  %v1032_v11 = vld [vmem:[#allocation5 + $0x1f8] sm:$0xff]  ;;  %v1505_v41 = vld [vmem:[#allocation5 + $0x10c0] sm:$0xff] }
 0x28a   :  { %3334 = vmatpush.msra.mxu0 %v989_v27  ;;  %v2902_v59 = vadd.f32 %v2901_v42, %v2882_v18  ;;  %3354 = vmatpush.msra.mxu1 %v1085_v56  ;;  %v1128_v5 = vld [vmem:[#allocation5 + $0x4f8] sm:$0xff]  ;;  %v1409_v27 = vld [vmem:[#allocation5 + $0xdc0] sm:$0xff]  ;;  %v1026_v56 = vld [vmem:[#allocation5 + $0x1c8] sm:$0xff] }
 0x28b   :  { %3374 = vmatpush.msra.mxu2 %v1181_v3  ;;  %3394 = vmatpush.msra.mxu3 %v1277_v0  ;;  %v1122_v3 = vld [vmem:[#allocation5 + $0x4c8] sm:$0xff]  ;;  %v1403_v18 = vld [vmem:[#allocation5 + $0xd90] sm:$0xff]  ;;  %v1116_v42 = vld [vmem:[#allocation5 + $0x498] sm:$0xff] }
 0x28c   :  { %3335 = vmatpush.msra.mxu0 %v983_v17  ;;  %3355 = vmatpush.msra.mxu1 %v1079_v51  ;;  %v1499_v0 = vld [vmem:[#allocation5 + $0x1090] sm:$0xff]  ;;  %v1020_v17 = vld [vmem:[#allocation5 + $0x198] sm:$0xff]  ;;  %v1397_v51 = vld [vmem:[#allocation5 + $0xd60] sm:$0xff] }
 0x28d   :  { %3375 = vmatpush.msra.mxu2 %v1175_v30  ;;  %3395 = vmatpush.msra.mxu3 %v1271_v62  ;;  %v1493_v30 = vld [vmem:[#allocation5 + $0x1060] sm:$0xff]  ;;  %v1110_v62 = vld [vmem:[#allocation5 + $0x468] sm:$0xff] }
 0x28e   :  { %3336 = vmatpush.msra.mxu0 %v977_v14  ;;  %v2921_v39 = vpop.f32.mrf.mxu2  ;;  %3356 = vmatpush.msra.mxu1 %v1073_v61  ;;  %v2941_v32 = vpop.f32.mrf.mxu3  ;;  %v1391_v14 = vld [vmem:[#allocation5 + $0xd30] sm:$0xff] }
 0x28f   :  { %3376 = vmatpush.msra.mxu2 %v1169_v24  ;;  %v2922_v54 = vadd.f32 %v2921_v39, %v2902_v59  ;;  %3396 = vmatpush.msra.mxu3 %v1265_v28  ;;  %v1014_v59 = vld [vmem:[#allocation5 + $0x168] sm:$0xff]  ;;  %v1487_v61 = vld [vmem:[#allocation5 + $0x1030] sm:$0xff]  ;;  %v1008_v24 = vld [vmem:[#allocation5 + $0x138] sm:$0xff] }
 0x290   :  { %3337 = vmatpush.msra.mxu0 %v971_v33  ;;  %3357 = vmatpush.msra.mxu1 %v1067_v37  ;;  %v1104_v28 = vld [vmem:[#allocation5 + $0x438] sm:$0xff]  ;;  %v1385_v33 = vld [vmem:[#allocation5 + $0xd00] sm:$0xff]  ;;  %v1098_v39 = vld [vmem:[#allocation5 + $0x408] sm:$0xff] }
 0x291   :  { %3377 = vmatpush.msra.mxu2 %v1163_v4  ;;  %v4928_v60 = vadd.f32 %v2941_v32, %v2922_v54  ;;  %3397 = vmatpush.msra.mxu3 %v1259_v2  ;;  %v1481_v37 = vld [vmem:[#allocation5 + $0x1000] sm:$0xff]  ;;  %v1002_v4 = vld [vmem:[#allocation5 + $0x108] sm:$0xff]  ;;  %v1379_v2 = vld [vmem:[#allocation5 + $0xcd0] sm:$0xff] }
 0x292   :  { %3338 = vmatmul.f32.vlgmr.msra.gmra.mxu0 %v4740_v12  ;;  %3358 = vmatmul.f32.vlgmr.msra.gmra.mxu1 %v4763_v25  ;;  %v1475_v54 = vld [vmem:[#allocation5 + $0xfd0] sm:$0xff]  ;;  %v996_v32 = vld [vmem:[#allocation5 + $0xd8] sm:$0xff] }
 0x293   :  { %3378 = vmatmul.f32.vlgmr.msra.gmra.mxu2 %v4793_v7  ;;  %3398 = vmatmul.f32.vlgmr.msra.gmra.mxu3 %v4819_v13 }
 0x294   :  { %3402 = vmatpush.msrb.mxu0 %v1445_v31  ;;  %3422 = vmatpush.msrb.mxu1 %v1541_v52  ;;  %v1092_v31 = vld [vmem:[#allocation5 + $0x3d8] sm:$0xff]  ;;  %v1373_v52 = vld [vmem:[#allocation5 + $0xca0] sm:$0xff] }
 0x295   :  { %3442 = vmatpush.msrb.mxu2 %v1062_v36  ;;  %3462 = vmatpush.msrb.mxu3 %v1158_v9  ;;  %v1469_v36 = vld [vmem:[#allocation5 + $0xfa0] sm:$0xff]  ;;  %v990_v9 = vld [vmem:[#allocation5 + $0xa8] sm:$0xff] }
 0x296   :  { %3403 = vmatpush.msrb.mxu0 %v1439_v22  ;;  %3423 = vmatpush.msrb.mxu1 %v1535_v23  ;;  %v1086_v22 = vld [vmem:[#allocation5 + $0x3a8] sm:$0xff]  ;;  %v1367_v23 = vld [vmem:[#allocation5 + $0xc70] sm:$0xff] }
 0x297   :  { %3443 = vmatpush.msrb.mxu2 %v1056_v6  ;;  %3463 = vmatpush.msrb.mxu3 %v1152_v44  ;;  %v1463_v6 = vld [vmem:[#allocation5 + $0xf70] sm:$0xff]  ;;  %v984_v44 = vld [vmem:[#allocation5 + $0x78] sm:$0xff] }
 0x298   :  { %3404 = vmatpush.msrb.mxu0 %v1433_v53  ;;  %3424 = vmatpush.msrb.mxu1 %v1529_v63  ;;  %v1080_v53 = vld [vmem:[#allocation5 + $0x378] sm:$0xff]  ;;  %v1361_v63 = vld [vmem:[#allocation5 + $0xc40] sm:$0xff] }
 0x299   :  { %3444 = vmatpush.msrb.mxu2 %v1050_v21  ;;  %3464 = vmatpush.msrb.mxu3 %v1146_v43  ;;  %v1457_v21 = vld [vmem:[#allocation5 + $0xf40] sm:$0xff]  ;;  %v978_v43 = vld [vmem:[#allocation5 + $0x48] sm:$0xff] }
 0x29a   :  { %3405 = vmatpush.msrb.mxu0 %v1427_v49  ;;  %3425 = vmatpush.msrb.mxu1 %v1523_v58  ;;  %v1074_v49 = vld [vmem:[#allocation5 + $0x348] sm:$0xff]  ;;  %v1355_v58 = vld [vmem:[#allocation5 + $0xc10] sm:$0xff] }
 0x29b   :  { %3445 = vmatpush.msrb.mxu2 %v1044_v29  ;;  %3465 = vmatpush.msrb.mxu3 %v1140_v57  ;;  %v2262_v29 = vadd.f32 %v4875_v55, %v4873_v16  ;;  %v1451_v57 = vld [vmem:[#allocation5 + $0xf10] sm:$0xff]  ;;  %v1542_v16 = vld [vmem:[#allocation5 + $0x11e8] sm:$0xff]  ;;  %v1248_v55 = vld [vmem:[#allocation5 + $0x8b8] sm:$0xff] }
 0x29c   :  { %3406 = vmatpush.msrb.mxu0 %v1421_v10  ;;  %3426 = vmatpush.msrb.mxu1 %v1517_v34  ;;  %v972_v10 = vld [vmem:[#allocation5 + $0x18] sm:$0xff] }
 0x29d   :  { %3446 = vmatpush.msrb.mxu2 %v1038_v26  ;;  %3466 = vmatpush.msrb.mxu3 %v1134_v1  ;;  %v1068_v34 = vld [vmem:[#allocation5 + $0x318] sm:$0xff]  ;;  %v2282_v26 = vadd.f32 %v4865_v38, %v2262_v29  ;;  %v1254_v1 = vld [vmem:[#allocation5 + $0x8e8] sm:$0xff] }
 0x29e   :  { %3407 = vmatpush.msrb.mxu0 %v1415_v19  ;;  %3427 = vmatpush.msrb.mxu1 %v1511_v46  ;;  %v1350_v19 = vld [vmem:[#allocation5 + $0xbe8] sm:$0xff]  ;;  %v1344_v38 = vld [vmem:[#allocation5 + $0xbb8] sm:$0xff] }
 0x29f   :  { %3447 = vmatpush.msrb.mxu2 %v1032_v11  ;;  %3467 = vmatpush.msrb.mxu3 %v1128_v5  ;;  %v1446_v46 = vld [vmem:[#allocation5 + $0xee8] sm:$0xff]  ;;  %v2302_v11 = vadd.f32 %v4867_v15, %v2282_v26  ;;  %v1440_v5 = vld [vmem:[#allocation5 + $0xeb8] sm:$0xff] }
 0x2a0   :  { %3408 = vmatpush.msrb.mxu0 %v1409_v27  ;;  %3428 = vmatpush.msrb.mxu1 %v1505_v41  ;;  %v1536_v27 = vld [vmem:[#allocation5 + $0x11b8] sm:$0xff]  ;;  %v1242_v41 = vld [vmem:[#allocation5 + $0x888] sm:$0xff] }
 0x2a1   :  { %3448 = vmatpush.msrb.mxu2 %v1026_v56  ;;  %3468 = vmatpush.msrb.mxu3 %v1122_v3  ;;  %v1338_v56 = vld [vmem:[#allocation5 + $0xb88] sm:$0xff]  ;;  %v1332_v15 = vld [vmem:[#allocation5 + $0xb58] sm:$0xff] }
 0x2a2   :  { %3409 = vmatpush.msrb.mxu0 %v1403_v18  ;;  %3429 = vmatpush.msrb.mxu1 %v1499_v0  ;;  %v1434_v3 = vld [vmem:[#allocation5 + $0xe88] sm:$0xff]  ;;  %v1236_v0 = vld [vmem:[#allocation5 + $0x858] sm:$0xff] }
 0x2a3   :  { %3449 = vmatpush.msrb.mxu2 %v1020_v17  ;;  %3469 = vmatpush.msrb.mxu3 %v1116_v42  ;;  %v1530_v18 = vld [vmem:[#allocation5 + $0x1188] sm:$0xff]  ;;  %v2322_v17 = vadd.f32 %v4879_v45, %v2302_v11  ;;  %v1428_v42 = vld [vmem:[#allocation5 + $0xe58] sm:$0xff] }
 0x2a4   :  { %3410 = vmatpush.msrb.mxu0 %v1397_v51  ;;  %3430 = vmatpush.msrb.mxu1 %v1493_v30  ;;  %v1524_v51 = vld [vmem:[#allocation5 + $0x1158] sm:$0xff]  ;;  %v1230_v30 = vld [vmem:[#allocation5 + $0x828] sm:$0xff] }
 0x2a5   :  { %3450 = vmatpush.msrb.mxu2 %v1014_v59  ;;  %3470 = vmatpush.msrb.mxu3 %v1110_v62  ;;  %v1326_v59 = vld [vmem:[#allocation5 + $0xb28] sm:$0xff]  ;;  %v1320_v45 = vld [vmem:[#allocation5 + $0xaf8] sm:$0xff] }
 0x2a6   :  { %3411 = vmatpush.msrb.mxu0 %v1391_v14  ;;  %3431 = vmatpush.msrb.mxu1 %v1487_v61  ;;  %v1422_v62 = vld [vmem:[#allocation5 + $0xe28] sm:$0xff]  ;;  %v1488_v29 = vld [vmem:[#allocation5 + $0x1038] sm:$0xff] }
 0x2a7   :  { %3451 = vmatpush.msrb.mxu2 %v1008_v24  ;;  %3471 = vmatpush.msrb.mxu3 %v1104_v28  ;;  %v1518_v61 = vld [vmem:[#allocation5 + $0x1128] sm:$0xff]  ;;  %v1224_v24 = vld [vmem:[#allocation5 + $0x7f8] sm:$0xff]  ;;  %v2342_v28 = vadd.f32 %v4881_v47, %v2322_v17 }
 0x2a8   :  { %3412 = vmatpush.msrb.mxu0 %v1385_v33  ;;  %3432 = vmatpush.msrb.mxu1 %v1481_v37  ;;  %v1416_v33 = vld [vmem:[#allocation5 + $0xdf8] sm:$0xff] }
 0x2a9   :  { %3452 = vmatpush.msrb.mxu2 %v1002_v4  ;;  %3472 = vmatpush.msrb.mxu3 %v1098_v39  ;;  %v3099_v14 = vpop.f32.mrf.mxu0  ;;  %v1512_v37 = vld [vmem:[#allocation5 + $0x10f8] sm:$0xff]  ;;  %v1218_v4 = vld [vmem:[#allocation5 + $0x7c8] sm:$0xff] }
 0x2aa   :  { %3413 = vmatpush.msrb.mxu0 %v1379_v2  ;;  %3433 = vmatpush.msrb.mxu1 %v1475_v54  ;;  %v3100_v39 = vadd.f32 %v3099_v14, %v2342_v28  ;;  %v1314_v2 = vld [vmem:[#allocation5 + $0xac8] sm:$0xff]  ;;  %v1308_v47 = vld [vmem:[#allocation5 + $0xa98] sm:$0xff] }
 0x2ab   :  { %3453 = vmatpush.msrb.mxu2 %v996_v32  ;;  %3473 = vmatpush.msrb.mxu3 %v1092_v31  ;;  %v1410_v54 = vld [vmem:[#allocation5 + $0xdc8] sm:$0xff]  ;;  %v1212_v31 = vld [vmem:[#allocation5 + $0x798] sm:$0xff] }
 0x2ac   :  { %3414 = vmatpush.msrb.mxu0 %v1373_v52  ;;  %3434 = vmatpush.msrb.mxu1 %v1469_v36  ;;  %v1506_v32 = vld [vmem:[#allocation5 + $0x10c8] sm:$0xff]  ;;  %v1404_v52 = vld [vmem:[#allocation5 + $0xd98] sm:$0xff]  ;;  %v3119_v36 = vpop.f32.mrf.mxu1 }
 0x2ad   :  { %3454 = vmatpush.msrb.mxu2 %v990_v9  ;;  %3474 = vmatpush.msrb.mxu3 %v1086_v22  ;;  %v1500_v22 = vld [vmem:[#allocation5 + $0x1098] sm:$0xff]  ;;  %v1266_v14 = vld [vmem:[#allocation5 + $0x948] sm:$0xff] }
 0x2ae   :  { %3415 = vmatpush.msrb.mxu0 %v1367_v23  ;;  %3435 = vmatpush.msrb.mxu1 %v1463_v6  ;;  %v1206_v23 = vld [vmem:[#allocation5 + $0x768] sm:$0xff]  ;;  %v3120_v6 = vadd.f32 %v3119_v36, %v3100_v39  ;;  %v1380_v11 = vld [vmem:[#allocation5 + $0xcd8] sm:$0xff]  ;;  %v1063_v39 = vld [vmem:[#allocation5 + $0x2f0] sm:$0xff] }
 0x2af   :  { %3455 = vmatpush.msrb.mxu2 %v984_v44  ;;  %3475 = vmatpush.msrb.mxu3 %v1080_v53  ;;  %v1302_v44 = vld [vmem:[#allocation5 + $0xa68] sm:$0xff]  ;;  %v1176_v17 = vld [vmem:[#allocation5 + $0x678] sm:$0xff]  ;;  %v1345_v36 = vld [vmem:[#allocation5 + $0xbc0] sm:$0xff] }
 0x2b0   :  { %3416 = vmatpush.msrb.mxu0 %v1361_v63  ;;  %3436 = vmatpush.msrb.mxu1 %v1457_v21  ;;  %v3139_v9 = vpop.f32.mrf.mxu2  ;;  %v1398_v53 = vld [vmem:[#allocation5 + $0xd68] sm:$0xff]  ;;  %v1200_v21 = vld [vmem:[#allocation5 + $0x738] sm:$0xff]  ;;  %v3159_v26 = vpop.f32.mrf.mxu3 }
 0x2b1   :  { %3456 = vmatpush.msrb.mxu2 %v978_v43  ;;  %3476 = vmatpush.msrb.mxu3 %v1074_v49  ;;  %v1494_v63 = vld [vmem:[#allocation5 + $0x1068] sm:$0xff]  ;;  %v3140_v43 = vadd.f32 %v3139_v9, %v3120_v6  ;;  %v1296_v49 = vld [vmem:[#allocation5 + $0xa38] sm:$0xff]  ;;  %v1051_v9 = vld [vmem:[#allocation5 + $0x290] sm:$0xff] }
 0x2b2   :  { %3417 = vmatpush.msrb.mxu0 %v1355_v58  ;;  %3437 = vmatpush.msrb.mxu1 %v1451_v57  ;;  %v1392_v58 = vld [vmem:[#allocation5 + $0xd38] sm:$0xff]  ;;  %v1194_v57 = vld [vmem:[#allocation5 + $0x708] sm:$0xff]  ;;  %v1339_v6 = vld [vmem:[#allocation5 + $0xb90] sm:$0xff] }
 0x2b3   :  { %3457 = vmatpush.msrb.mxu2 %v972_v10  ;;  %3477 = vmatpush.msrb.mxu3 %v1068_v34  ;;  %v1290_v10 = vld [vmem:[#allocation5 + $0xa08] sm:$0xff] }
 0x2b4   :  { %3418 = vmatmul.f32.vlgmr.msrb.gmra.mxu0 %v4846_v20  ;;  %3438 = vmatmul.f32.vlgmr.msrb.gmra.mxu1 %v4855_v35  ;;  %v1386_v34 = vld [vmem:[#allocation5 + $0xd08] sm:$0xff] }
 0x2b5   :  { %3458 = vmatmul.f32.vlgmr.msrb.gmra.mxu2 %v4740_v12  ;;  %3478 = vmatmul.f32.vlgmr.msrb.gmra.mxu3 %v4763_v25  ;;  %v1458_v28 = vld [vmem:[#allocation5 + $0xf48] sm:$0xff] }
 0x2b6   :  { %3482 = vmatpush.msra.mxu0 %v1254_v1  ;;  %3502 = vmatpush.msra.mxu1 %v1350_v19  ;;  %v1482_v1 = vld [vmem:[#allocation5 + $0x1008] sm:$0xff]  ;;  %v1188_v19 = vld [vmem:[#allocation5 + $0x6d8] sm:$0xff] }
 0x2b7   :  { %3522 = vmatpush.msra.mxu2 %v1446_v46  ;;  %3542 = vmatpush.msra.mxu3 %v1542_v16  ;;  %v4944_v46 = vld [vmem:[#allocation8] sm:$0x3f]  ;;  %v3160_v16 = vadd.f32 %v3159_v26, %v3140_v43  ;;  %v1039_v43 = vld [vmem:[#allocation5 + $0x230] sm:$0xff] }
 0x2b8   :  { %3483 = vmatpush.msra.mxu0 %v1248_v55  ;;  %3503 = vmatpush.msra.mxu1 %v1344_v38  ;;  %v1284_v55 = vld [vmem:[#allocation5 + $0x9d8] sm:$0xff]  ;;  %v1321_v26 = vld [vmem:[#allocation5 + $0xb00] sm:$0xff] }
 0x2b9   :  { %3523 = vmatpush.msra.mxu2 %v1440_v5  ;;  %3543 = vmatpush.msra.mxu3 %v1536_v27  ;;  %v1476_v38 = vld [vmem:[#allocation5 + $0xfd8] sm:$0xff]  ;;  %v1182_v5 = vld [vmem:[#allocation5 + $0x6a8] sm:$0xff] }
 0x2ba   :  { %3484 = vmatpush.msra.mxu0 %v1242_v41  ;;  %3504 = vmatpush.msra.mxu1 %v1338_v56  ;;  %v1278_v41 = vld [vmem:[#allocation5 + $0x9a8] sm:$0xff] }
 0x2bb   :  { %3524 = vmatpush.msra.mxu2 %v1434_v3  ;;  %3544 = vmatpush.msra.mxu3 %v1530_v18  ;;  %v1374_v56 = vld [vmem:[#allocation5 + $0xca8] sm:$0xff]  ;;  %v3804_v18 = vperm.slane %v4944_v46, 0 }
 0x2bc   :  { %3485 = vmatpush.msra.mxu0 %v1236_v0  ;;  %3505 = vmatpush.msra.mxu1 %v1332_v15  ;;  %v1470_v0 = vld [vmem:[#allocation5 + $0xfa8] sm:$0xff] }
 0x2bd   :  { %3525 = vmatpush.msra.mxu2 %v1428_v42  ;;  %3545 = vmatpush.msra.mxu3 %v1524_v51  ;;  %v1272_v42 = vld [vmem:[#allocation5 + $0x978] sm:$0xff] }
 0x2be   :  { %3486 = vmatpush.msra.mxu0 %v1230_v30  ;;  %3506 = vmatpush.msra.mxu1 %v1326_v59  ;;  %v1368_v51 = vld [vmem:[#allocation5 + $0xc78] sm:$0xff] }
 0x2bf   :  { %3526 = vmatpush.msra.mxu2 %v1422_v62  ;;  %3546 = vmatpush.msra.mxu3 %v1518_v61  ;;  %v1464_v59 = vld [vmem:[#allocation5 + $0xf78] sm:$0xff]  ;;  %v1170_v62 = vld [vmem:[#allocation5 + $0x648] sm:$0xff] }
 0x2c0   :  { %3487 = vmatpush.msra.mxu0 %v1224_v24  ;;  %3507 = vmatpush.msra.mxu1 %v1320_v45  ;;  %v1362_v61 = vld [vmem:[#allocation5 + $0xc48] sm:$0xff]  ;;  %v1164_v45 = vld [vmem:[#allocation5 + $0x618] sm:$0xff] }
 0x2c1   :  { %3527 = vmatpush.msra.mxu2 %v1416_v33  ;;  %3547 = vmatpush.msra.mxu3 %v1512_v37  ;;  %v1260_v33 = vld [vmem:[#allocation5 + $0x918] sm:$0xff] }
 0x2c2   :  { %3488 = vmatpush.msra.mxu0 %v1218_v4  ;;  %3508 = vmatpush.msra.mxu1 %v1314_v2  ;;  %v1356_v37 = vld [vmem:[#allocation5 + $0xc18] sm:$0xff]  ;;  %v1159_v2 = vld [vmem:[#allocation5 + $0x5f0] sm:$0xff] }
 0x2c3   :  { %3528 = vmatpush.msra.mxu2 %v1410_v54  ;;  %3548 = vmatpush.msra.mxu3 %v1506_v32  ;;  %v1452_v4 = vld [vmem:[#allocation5 + $0xf18] sm:$0xff]  ;;  %v1255_v54 = vld [vmem:[#allocation5 + $0x8f0] sm:$0xff] }
 0x2c4   :  { %3489 = vmatpush.msra.mxu0 %v1212_v31  ;;  %3509 = vmatpush.msra.mxu1 %v1308_v47  ;;  %v1351_v32 = vld [vmem:[#allocation5 + $0xbf0] sm:$0xff]  ;;  %v1057_v31 = vld [vmem:[#allocation5 + $0x2c0] sm:$0xff] }
 0x2c5   :  { %3529 = vmatpush.msra.mxu2 %v1404_v52  ;;  %3549 = vmatpush.msra.mxu3 %v1500_v22  ;;  %v1153_v47 = vld [vmem:[#allocation5 + $0x5c0] sm:$0xff]  ;;  %v1147_v22 = vld [vmem:[#allocation5 + $0x590] sm:$0xff] }
 0x2c6   :  { %3490 = vmatpush.msra.mxu0 %v1206_v23  ;;  %3510 = vmatpush.msra.mxu1 %v1302_v44  ;;  %v1249_v52 = vld [vmem:[#allocation5 + $0x8c0] sm:$0xff]  ;;  %v1243_v23 = vld [vmem:[#allocation5 + $0x890] sm:$0xff] }
 0x2c7   :  { %3530 = vmatpush.msra.mxu2 %v1398_v53  ;;  %3550 = vmatpush.msra.mxu3 %v1494_v63  ;;  %v1045_v44 = vld [vmem:[#allocation5 + $0x260] sm:$0xff] }
 0x2c8   :  { %3491 = vmatpush.msra.mxu0 %v1200_v21  ;;  %3511 = vmatpush.msra.mxu1 %v1296_v49  ;;  %v1141_v53 = vld [vmem:[#allocation5 + $0x560] sm:$0xff]  ;;  %v1135_v49 = vld [vmem:[#allocation5 + $0x530] sm:$0xff] }
 0x2c9   :  { %3531 = vmatpush.msra.mxu2 %v1392_v58  ;;  %3551 = vmatpush.msra.mxu3 %v1488_v29  ;;  %v1237_v63 = vld [vmem:[#allocation5 + $0x860] sm:$0xff]  ;;  %v1231_v58 = vld [vmem:[#allocation5 + $0x830] sm:$0xff] }
 0x2ca   :  { %3492 = vmatpush.msra.mxu0 %v1194_v57  ;;  %3512 = vmatpush.msra.mxu1 %v1290_v10  ;;  %v1333_v21 = vld [vmem:[#allocation5 + $0xb60] sm:$0xff]  ;;  %v1327_v29 = vld [vmem:[#allocation5 + $0xb30] sm:$0xff] }
 0x2cb   :  { %3532 = vmatpush.msra.mxu2 %v1386_v34  ;;  %v3179_v27 = vpop.f32.mrf.mxu0  ;;  %3552 = vmatpush.msra.mxu3 %v1482_v1  ;;  %v3199_v15 = vpop.f32.mrf.mxu1  ;;  %v1033_v57 = vld [vmem:[#allocation5 + $0x200] sm:$0xff]  ;;  %v1027_v1 = vld [vmem:[#allocation5 + $0x1d0] sm:$0xff] }
 0x2cc   :  { %3493 = vmatpush.msra.mxu0 %v1188_v19  ;;  %v3180_v3 = vadd.f32 %v3179_v27, %v3160_v16  ;;  %3513 = vmatpush.msra.mxu1 %v1284_v55  ;;  %v1129_v10 = vld [vmem:[#allocation5 + $0x500] sm:$0xff]  ;;  %v1123_v19 = vld [vmem:[#allocation5 + $0x4d0] sm:$0xff] }
 0x2cd   :  { %3533 = vmatpush.msra.mxu2 %v1380_v11  ;;  %3553 = vmatpush.msra.mxu3 %v1476_v38  ;;  %v1225_v34 = vld [vmem:[#allocation5 + $0x800] sm:$0xff]  ;;  %v1219_v16 = vld [vmem:[#allocation5 + $0x7d0] sm:$0xff] }
 0x2ce   :  { %3494 = vmatpush.msra.mxu0 %v1182_v5  ;;  %v3200_v30 = vadd.f32 %v3199_v15, %v3180_v3  ;;  %3514 = vmatpush.msra.mxu1 %v1278_v41  ;;  %v1315_v55 = vld [vmem:[#allocation5 + $0xad0] sm:$0xff]  ;;  %v1021_v11 = vld [vmem:[#allocation5 + $0x1a0] sm:$0xff] }
 0x2cf   :  { %3534 = vmatpush.msra.mxu2 %v1374_v56  ;;  %3554 = vmatpush.msra.mxu3 %v1470_v0  ;;  %v1117_v38 = vld [vmem:[#allocation5 + $0x4a0] sm:$0xff]  ;;  %v1015_v41 = vld [vmem:[#allocation5 + $0x170] sm:$0xff] }
 0x2d0   :  { %3495 = vmatpush.msra.mxu0 %v1176_v17  ;;  %v3816_v24 = vadd.f32 %v3804_v18, %v3200_v30  ;;  %3515 = vmatpush.msra.mxu1 %v1272_v42  ;;  %v1213_v5 = vld [vmem:[#allocation5 + $0x7a0] sm:$0xff]  ;;  %v1111_v3 = vld [vmem:[#allocation5 + $0x470] sm:$0xff] }
 0x2d1   :  { %3535 = vmatpush.msra.mxu2 %v1368_v51  ;;  %3555 = vmatpush.msra.mxu3 %v1464_v59  ;;  %v1309_v27 = vld [vmem:[#allocation5 + $0xaa0] sm:$0xff]  ;;  %v1207_v18 = vld [vmem:[#allocation5 + $0x770] sm:$0xff] }
 0x2d2   :  { %3496 = vmatpush.msra.mxu0 %v1170_v62  ;;  %3822 = vst [vmem:[#allocation10] sm:$0xff] %v3816_v24  ;;  %3516 = vmatpush.msra.mxu1 %v1266_v14  ;;  %v3219_v56 = vpop.f32.mrf.mxu2  ;;  %v1303_v0 = vld [vmem:[#allocation5 + $0xa70] sm:$0xff]  ;;  %v1009_v17 = vld [vmem:[#allocation5 + $0x140] sm:$0xff] }
 0x2d3   :  { %3536 = vmatpush.msra.mxu2 %v1362_v61  ;;  %3556 = vmatpush.msra.mxu3 %v1458_v28  ;;  %v1105_v15 = vld [vmem:[#allocation5 + $0x440] sm:$0xff]  ;;  %v3220_v51 = vadd.f32 %v3219_v56, %v4884_v8  ;;  %v1003_v59 = vld [vmem:[#allocation5 + $0x110] sm:$0xff]  ;;  %v3239_v28 = vpop.f32.mrf.mxu3 }
 0x2d4   :  { %3497 = vmatpush.msra.mxu0 %v1164_v45  ;;  %3517 = vmatpush.msra.mxu1 %v1260_v33  ;;  %v1201_v42 = vld [vmem:[#allocation5 + $0x740] sm:$0xff]  ;;  %v1099_v62 = vld [vmem:[#allocation5 + $0x410] sm:$0xff] }
 0x2d5   :  { %3537 = vmatpush.msra.mxu2 %v1356_v37  ;;  %3557 = vmatpush.msra.mxu3 %v1452_v4  ;;  %v1297_v30 = vld [vmem:[#allocation5 + $0xa40] sm:$0xff]  ;;  %v1195_v14 = vld [vmem:[#allocation5 + $0x710] sm:$0xff]  ;;  %v3240_v37 = vadd.f32 %v3239_v28, %v3220_v51  ;;  %v1142_v51 = vld [vmem:[#allocation5 + $0x568] sm:$0xff] }
 0x2d6   :  { %3498 = vmatmul.f32.vlgmr.msra.gmra.mxu0 %v4793_v7  ;;  %3518 = vmatmul.f32.vlgmr.msra.gmra.mxu1 %v4819_v13  ;;  %v1291_v61 = vld [vmem:[#allocation5 + $0xa10] sm:$0xff]  ;;  %v997_v24 = vld [vmem:[#allocation5 + $0xe0] sm:$0xff]  ;;  %v1034_v28 = vld [vmem:[#allocation5 + $0x208] sm:$0xff] }
 0x2d7   :  { %3538 = vmatmul.f32.vlgmr.msra.gmra.mxu2 %v4846_v20  ;;  %3558 = vmatmul.f32.vlgmr.msra.gmra.mxu3 %v4855_v35  ;;  %v1093_v45 = vld [vmem:[#allocation5 + $0x3e0] sm:$0xff]  ;;  %v991_v4 = vld [vmem:[#allocation5 + $0xb0] sm:$0xff] }
 0x2d8   :  { %3562 = vmatpush.msrb.mxu0 %v1063_v39  ;;  %3582 = vmatpush.msrb.mxu1 %v1159_v2  ;;  %v1189_v33 = vld [vmem:[#allocation5 + $0x6e0] sm:$0xff]  ;;  %v1087_v2 = vld [vmem:[#allocation5 + $0x3b0] sm:$0xff] }
 0x2d9   :  { %3602 = vmatpush.msrb.mxu2 %v1255_v54  ;;  %3622 = vmatpush.msrb.mxu3 %v1351_v32  ;;  %v1285_v8 = vld [vmem:[#allocation5 + $0x9e0] sm:$0xff]  ;;  %v1183_v54 = vld [vmem:[#allocation5 + $0x6b0] sm:$0xff] }
 0x2da   :  { %3563 = vmatpush.msrb.mxu0 %v1057_v31  ;;  %3583 = vmatpush.msrb.mxu1 %v1153_v47  ;;  %v1279_v32 = vld [vmem:[#allocation5 + $0x9b0] sm:$0xff]  ;;  %v985_v31 = vld [vmem:[#allocation5 + $0x80] sm:$0xff] }
 0x2db   :  { %3603 = vmatpush.msrb.mxu2 %v1249_v52  ;;  %3623 = vmatpush.msrb.mxu3 %v1345_v36  ;;  %v1081_v52 = vld [vmem:[#allocation5 + $0x380] sm:$0xff]  ;;  %v1435_v56 = vld [vmem:[#allocation5 + $0xe90] sm:$0xff] }
 0x2dc   :  { %3564 = vmatpush.msrb.mxu0 %v1051_v9  ;;  %3584 = vmatpush.msrb.mxu1 %v1147_v22  ;;  %v1177_v36 = vld [vmem:[#allocation5 + $0x680] sm:$0xff]  ;;  %v979_v22 = vld [vmem:[#allocation5 + $0x50] sm:$0xff] }
 0x2dd   :  { %3604 = vmatpush.msrb.mxu2 %v1243_v23  ;;  %3624 = vmatpush.msrb.mxu3 %v1339_v6  ;;  %v1273_v9 = vld [vmem:[#allocation5 + $0x980] sm:$0xff]  ;;  %v1075_v23 = vld [vmem:[#allocation5 + $0x350] sm:$0xff] }
 0x2de   :  { %3565 = vmatpush.msrb.mxu0 %v1045_v44  ;;  %3585 = vmatpush.msrb.mxu1 %v1141_v53  ;;  %v1171_v6 = vld [vmem:[#allocation5 + $0x650] sm:$0xff] }
 0x2df   :  { %3605 = vmatpush.msrb.mxu2 %v1237_v63  ;;  %3625 = vmatpush.msrb.mxu3 %v1333_v21  ;;  %v1267_v53 = vld [vmem:[#allocation5 + $0x950] sm:$0xff]  ;;  %v973_v63 = vld [vmem:[#allocation5 + $0x20] sm:$0xff] }
 0x2e0   :  { %3566 = vmatpush.msrb.mxu0 %v1039_v43  ;;  %3586 = vmatpush.msrb.mxu1 %v1135_v49  ;;  %v1069_v43 = vld [vmem:[#allocation5 + $0x320] sm:$0xff] }
 0x2e1   :  { %3606 = vmatpush.msrb.mxu2 %v1231_v58  ;;  %3626 = vmatpush.msrb.mxu3 %v1327_v29  ;;  %v1165_v49 = vld [vmem:[#allocation5 + $0x620] sm:$0xff] }
 0x2e2   :  { %3567 = vmatpush.msrb.mxu0 %v1033_v57  ;;  %3587 = vmatpush.msrb.mxu1 %v1129_v10  ;;  %v1261_v29 = vld [vmem:[#allocation5 + $0x920] sm:$0xff]  ;;  %v3805_v10 = vperm.slane %v4944_v46, 1 }
 0x2e3   :  { %3607 = vmatpush.msrb.mxu2 %v1225_v34  ;;  %3627 = vmatpush.msrb.mxu3 %v1321_v26  ;;  %v1447_v26 = vld [vmem:[#allocation5 + $0xef0] sm:$0xff] }
 0x2e4   :  { %3568 = vmatpush.msrb.mxu0 %v1027_v1  ;;  %3588 = vmatpush.msrb.mxu1 %v1123_v19  ;;  %v1543_v19 = vld [vmem:[#allocation5 + $0x11f0] sm:$0xff] }
 0x2e5   :  { %3608 = vmatpush.msrb.mxu2 %v1219_v16  ;;  %3628 = vmatpush.msrb.mxu3 %v1315_v55  ;;  %v1064_v16 = vld [vmem:[#allocation5 + $0x2f8] sm:$0xff] }
 0x2e6   :  { %3569 = vmatpush.msrb.mxu0 %v1021_v11  ;;  %3589 = vmatpush.msrb.mxu1 %v1117_v38  ;;  %v1160_v55 = vld [vmem:[#allocation5 + $0x5f8] sm:$0xff]  ;;  %v1441_v11 = vld [vmem:[#allocation5 + $0xec0] sm:$0xff] }
 0x2e7   :  { %3609 = vmatpush.msrb.mxu2 %v1213_v5  ;;  %3629 = vmatpush.msrb.mxu3 %v1309_v27  ;;  %v1537_v5 = vld [vmem:[#allocation5 + $0x11c0] sm:$0xff]  ;;  %v1058_v27 = vld [vmem:[#allocation5 + $0x2c8] sm:$0xff] }
 0x2e8   :  { %3570 = vmatpush.msrb.mxu0 %v1015_v41  ;;  %3590 = vmatpush.msrb.mxu1 %v1111_v3  ;;  %v1154_v41 = vld [vmem:[#allocation5 + $0x5c8] sm:$0xff]  ;;  %v1531_v3 = vld [vmem:[#allocation5 + $0x1190] sm:$0xff] }
 0x2e9   :  { %3610 = vmatpush.msrb.mxu2 %v1207_v18  ;;  %3630 = vmatpush.msrb.mxu3 %v1303_v0  ;;  %v1052_v18 = vld [vmem:[#allocation5 + $0x298] sm:$0xff] }
 0x2ea   :  { %3571 = vmatpush.msrb.mxu0 %v1009_v17  ;;  %3591 = vmatpush.msrb.mxu1 %v1105_v15  ;;  %v1148_v0 = vld [vmem:[#allocation5 + $0x598] sm:$0xff]  ;;  %v1429_v17 = vld [vmem:[#allocation5 + $0xe60] sm:$0xff] }
 0x2eb   :  { %3611 = vmatpush.msrb.mxu2 %v1201_v42  ;;  %3631 = vmatpush.msrb.mxu3 %v1297_v30  ;;  %v1525_v15 = vld [vmem:[#allocation5 + $0x1160] sm:$0xff]  ;;  %v1046_v42 = vld [vmem:[#allocation5 + $0x268] sm:$0xff]  ;;  %v1423_v30 = vld [vmem:[#allocation5 + $0xe30] sm:$0xff] }
 0x2ec   :  { %3572 = vmatpush.msrb.mxu0 %v1003_v59  ;;  %3592 = vmatpush.msrb.mxu1 %v1099_v62  ;;  %v1519_v59 = vld [vmem:[#allocation5 + $0x1130] sm:$0xff]  ;;  %v1040_v62 = vld [vmem:[#allocation5 + $0x238] sm:$0xff] }
 0x2ed   :  { %3612 = vmatpush.msrb.mxu2 %v1195_v14  ;;  %v3259_v39 = vpop.f32.mrf.mxu0  ;;  %3632 = vmatpush.msrb.mxu3 %v1291_v61  ;;  %v3279_v44 = vpop.f32.mrf.mxu1  ;;  %v1136_v14 = vld [vmem:[#allocation5 + $0x538] sm:$0xff]  ;;  %v1417_v61 = vld [vmem:[#allocation5 + $0xe00] sm:$0xff] }
 0x2ee   :  { %3573 = vmatpush.msrb.mxu0 %v997_v24  ;;  %3593 = vmatpush.msrb.mxu1 %v1093_v45  ;;  %v3260_v47 = vadd.f32 %v3259_v39, %v3240_v37  ;;  %v1513_v24 = vld [vmem:[#allocation5 + $0x1100] sm:$0xff]  ;;  %v1130_v45 = vld [vmem:[#allocation5 + $0x508] sm:$0xff]  ;;  %v1507_v37 = vld [vmem:[#allocation5 + $0x10d0] sm:$0xff] }
 0x2ef   :  { %3613 = vmatpush.msrb.mxu2 %v1189_v33  ;;  %3633 = vmatpush.msrb.mxu3 %v1285_v8  ;;  %v1411_v33 = vld [vmem:[#allocation5 + $0xdd0] sm:$0xff]  ;;  %v1028_v8 = vld [vmem:[#allocation5 + $0x1d8] sm:$0xff]  ;;  %v1405_v39 = vld [vmem:[#allocation5 + $0xda0] sm:$0xff] }
 0x2f0   :  { %3574 = vmatpush.msrb.mxu0 %v991_v4  ;;  %3594 = vmatpush.msrb.mxu1 %v1087_v2  ;;  %v3280_v21 = vadd.f32 %v3279_v44, %v3260_v47  ;;  %v1124_v4 = vld [vmem:[#allocation5 + $0x4d8] sm:$0xff]  ;;  %v1501_v2 = vld [vmem:[#allocation5 + $0x10a0] sm:$0xff]  ;;  %v1495_v47 = vld [vmem:[#allocation5 + $0x1070] sm:$0xff] }
 0x2f1   :  { %3614 = vmatpush.msrb.mxu2 %v1183_v54  ;;  %3634 = vmatpush.msrb.mxu3 %v1279_v32  ;;  %v1022_v54 = vld [vmem:[#allocation5 + $0x1a8] sm:$0xff]  ;;  %v1387_v44 = vld [vmem:[#allocation5 + $0xd10] sm:$0xff] }
 0x2f2   :  { %3575 = vmatpush.msrb.mxu0 %v985_v31  ;;  %3595 = vmatpush.msrb.mxu1 %v1081_v52  ;;  %v1118_v32 = vld [vmem:[#allocation5 + $0x4a8] sm:$0xff]  ;;  %v1399_v31 = vld [vmem:[#allocation5 + $0xd70] sm:$0xff]  ;;  %v1016_v52 = vld [vmem:[#allocation5 + $0x178] sm:$0xff] }
 0x2f3   :  { %3615 = vmatpush.msrb.mxu2 %v1177_v36  ;;  %3635 = vmatpush.msrb.mxu3 %v1273_v9  ;;  %v1112_v36 = vld [vmem:[#allocation5 + $0x478] sm:$0xff]  ;;  %v1393_v9 = vld [vmem:[#allocation5 + $0xd40] sm:$0xff] }
 0x2f4   :  { %3576 = vmatpush.msrb.mxu0 %v979_v22  ;;  %v3299_v58 = vpop.f32.mrf.mxu2  ;;  %3596 = vmatpush.msrb.mxu1 %v1075_v23  ;;  %v3319_v34 = vpop.f32.mrf.mxu3  ;;  %v1489_v22 = vld [vmem:[#allocation5 + $0x1040] sm:$0xff]  ;;  %v1010_v23 = vld [vmem:[#allocation5 + $0x148] sm:$0xff] }
 0x2f5   :  { %3616 = vmatpush.msrb.mxu2 %v1171_v6  ;;  %v3300_v57 = vadd.f32 %v3299_v58, %v3280_v21  ;;  %3636 = vmatpush.msrb.mxu3 %v1267_v53  ;;  %v1106_v6 = vld [vmem:[#allocation5 + $0x448] sm:$0xff]  ;;  %v1483_v53 = vld [vmem:[#allocation5 + $0x1010] sm:$0xff]  ;;  %v1100_v21 = vld [vmem:[#allocation5 + $0x418] sm:$0xff] }
 0x2f6   :  { %3577 = vmatpush.msrb.mxu0 %v973_v63  ;;  %3597 = vmatpush.msrb.mxu1 %v1069_v43  ;;  %v1004_v63 = vld [vmem:[#allocation5 + $0x118] sm:$0xff]  ;;  %v1381_v43 = vld [vmem:[#allocation5 + $0xce0] sm:$0xff]  ;;  %v998_v58 = vld [vmem:[#allocation5 + $0xe8] sm:$0xff] }
 0x2f7   :  { %3617 = vmatpush.msrb.mxu2 %v1165_v49  ;;  %v3320_v1 = vadd.f32 %v3319_v34, %v3300_v57  ;;  %3637 = vmatpush.msrb.mxu3 %v1261_v29  ;;  %v1477_v49 = vld [vmem:[#allocation5 + $0xfe0] sm:$0xff]  ;;  %v1094_v29 = vld [vmem:[#allocation5 + $0x3e8] sm:$0xff]  ;;  %v1375_v57 = vld [vmem:[#allocation5 + $0xcb0] sm:$0xff] }
 0x2f8   :  { %3578 = vmatmul.f32.vlgmr.msrb.gmra.mxu0 %v4740_v12  ;;  %3598 = vmatmul.f32.vlgmr.msrb.gmra.mxu1 %v4763_v25  ;;  %v992_v34 = vld [vmem:[#allocation5 + $0xb8] sm:$0xff] }
 0x2f9   :  { %3618 = vmatmul.f32.vlgmr.msrb.gmra.mxu2 %v4793_v7  ;;  %v3817_v38 = vadd.f32 %v3805_v10, %v3320_v1  ;;  %3638 = vmatmul.f32.vlgmr.msrb.gmra.mxu3 %v4819_v13  ;;  %v1471_v10 = vld [vmem:[#allocation5 + $0xfb0] sm:$0xff]  ;;  %v1369_v1 = vld [vmem:[#allocation5 + $0xc80] sm:$0xff] }
 0x2fa   :  { %3642 = vmatpush.msra.mxu0 %v1447_v26  ;;  %3662 = vmatpush.msra.mxu1 %v1543_v19  ;;  %v1088_v26 = vld [vmem:[#allocation5 + $0x3b8] sm:$0xff]  ;;  %v1465_v19 = vld [vmem:[#allocation5 + $0xf80] sm:$0xff] }
 0x2fb   :  { %3682 = vmatpush.msra.mxu2 %v1064_v16  ;;  %3823 = vst [vmem:[#allocation10 + $0x8] sm:$0xff] %v3817_v38  ;;  %3702 = vmatpush.msra.mxu3 %v1160_v55  ;;  %v986_v16 = vld [vmem:[#allocation5 + $0x88] sm:$0xff]  ;;  %v1459_v38 = vld [vmem:[#allocation5 + $0xf50] sm:$0xff] }
 0x2fc   :  { %3643 = vmatpush.msra.mxu0 %v1441_v11  ;;  %3663 = vmatpush.msra.mxu1 %v1537_v5  ;;  %v1082_v55 = vld [vmem:[#allocation5 + $0x388] sm:$0xff]  ;;  %v1363_v11 = vld [vmem:[#allocation5 + $0xc50] sm:$0xff]  ;;  %v980_v5 = vld [vmem:[#allocation5 + $0x58] sm:$0xff] }
 0x2fd   :  { %3683 = vmatpush.msra.mxu2 %v1058_v27  ;;  %3703 = vmatpush.msra.mxu3 %v1154_v41  ;;  %v1076_v27 = vld [vmem:[#allocation5 + $0x358] sm:$0xff]  ;;  %v1357_v41 = vld [vmem:[#allocation5 + $0xc20] sm:$0xff] }
 0x2fe   :  { %3644 = vmatpush.msra.mxu0 %v1435_v56  ;;  %3664 = vmatpush.msra.mxu1 %v1531_v3  ;;  %v1453_v56 = vld [vmem:[#allocation5 + $0xf20] sm:$0xff]  ;;  %v974_v3 = vld [vmem:[#allocation5 + $0x28] sm:$0xff] }
 0x2ff   :  { %3684 = vmatpush.msra.mxu2 %v1052_v18  ;;  %3704 = vmatpush.msra.mxu3 %v1148_v0  ;;  %v1070_v18 = vld [vmem:[#allocation5 + $0x328] sm:$0xff]  ;;  %v1256_v0 = vld [vmem:[#allocation5 + $0x8f8] sm:$0xff] }
 0x300   :  { %3645 = vmatpush.msra.mxu0 %v1429_v17  ;;  %3665 = vmatpush.msra.mxu1 %v1525_v15  ;;  %v1352_v17 = vld [vmem:[#allocation5 + $0xbf8] sm:$0xff] }
 0x301   :  { %3685 = vmatpush.msra.mxu2 %v1046_v42  ;;  %3705 = vmatpush.msra.mxu3 %v1142_v51  ;;  %v1448_v15 = vld [vmem:[#allocation5 + $0xef8] sm:$0xff]  ;;  %v1250_v51 = vld [vmem:[#allocation5 + $0x8c8] sm:$0xff] }
 0x302   :  { %3646 = vmatpush.msra.mxu0 %v1423_v30  ;;  %3666 = vmatpush.msra.mxu1 %v1519_v59  ;;  %v1544_v42 = vld [vmem:[#allocation5 + $0x11f8] sm:$0xff]  ;;  %v1346_v30 = vld [vmem:[#allocation5 + $0xbc8] sm:$0xff] }
 0x303   :  { %3686 = vmatpush.msra.mxu2 %v1040_v62  ;;  %3706 = vmatpush.msra.mxu3 %v1136_v14  ;;  %v1442_v59 = vld [vmem:[#allocation5 + $0xec8] sm:$0xff]  ;;  %v1244_v14 = vld [vmem:[#allocation5 + $0x898] sm:$0xff] }
 0x304   :  { %3647 = vmatpush.msra.mxu0 %v1417_v61  ;;  %3667 = vmatpush.msra.mxu1 %v1513_v24  ;;  %v1538_v62 = vld [vmem:[#allocation5 + $0x11c8] sm:$0xff]  ;;  %v1340_v61 = vld [vmem:[#allocation5 + $0xb98] sm:$0xff] }
 0x305   :  { %3687 = vmatpush.msra.mxu2 %v1034_v28  ;;  %3707 = vmatpush.msra.mxu3 %v1130_v45  ;;  %v1436_v24 = vld [vmem:[#allocation5 + $0xe98] sm:$0xff]  ;;  %v1238_v45 = vld [vmem:[#allocation5 + $0x868] sm:$0xff] }
 0x306   :  { %3648 = vmatpush.msra.mxu0 %v1411_v33  ;;  %3668 = vmatpush.msra.mxu1 %v1507_v37  ;;  %v1532_v28 = vld [vmem:[#allocation5 + $0x1198] sm:$0xff]  ;;  %v1430_v33 = vld [vmem:[#allocation5 + $0xe68] sm:$0xff] }
 0x307   :  { %3688 = vmatpush.msra.mxu2 %v1028_v8  ;;  %3708 = vmatpush.msra.mxu3 %v1124_v4  ;;  %v1232_v37 = vld [vmem:[#allocation5 + $0x838] sm:$0xff] }
 0x308   :  { %3649 = vmatpush.msra.mxu0 %v1405_v39  ;;  %3669 = vmatpush.msra.mxu1 %v1501_v2  ;;  %v1328_v8 = vld [vmem:[#allocation5 + $0xb38] sm:$0xff] }
 0x309   :  { %3689 = vmatpush.msra.mxu2 %v1022_v54  ;;  %3709 = vmatpush.msra.mxu3 %v1118_v32  ;;  %v1424_v4 = vld [vmem:[#allocation5 + $0xe38] sm:$0xff]  ;;  %v1226_v54 = vld [vmem:[#allocation5 + $0x808] sm:$0xff] }
 0x30a   :  { %3650 = vmatpush.msra.mxu0 %v1399_v31  ;;  %3670 = vmatpush.msra.mxu1 %v1495_v47  ;;  %v1520_v2 = vld [vmem:[#allocation5 + $0x1138] sm:$0xff]  ;;  %v1322_v32 = vld [vmem:[#allocation5 + $0xb08] sm:$0xff] }
 0x30b   :  { %3690 = vmatpush.msra.mxu2 %v1016_v52  ;;  %3710 = vmatpush.msra.mxu3 %v1112_v36  ;;  %v1418_v31 = vld [vmem:[#allocation5 + $0xe08] sm:$0xff]  ;;  %v1220_v52 = vld [vmem:[#allocation5 + $0x7d8] sm:$0xff] }
 0x30c   :  { %3651 = vmatpush.msra.mxu0 %v1393_v9  ;;  %3671 = vmatpush.msra.mxu1 %v1489_v22  ;;  %v1514_v47 = vld [vmem:[#allocation5 + $0x1108] sm:$0xff]  ;;  %v1316_v9 = vld [vmem:[#allocation5 + $0xad8] sm:$0xff] }
 0x30d   :  { %3691 = vmatpush.msra.mxu2 %v1010_v23  ;;  %3711 = vmatpush.msra.mxu3 %v1106_v6  ;;  %v1412_v22 = vld [vmem:[#allocation5 + $0xdd8] sm:$0xff]  ;;  %v1214_v6 = vld [vmem:[#allocation5 + $0x7a8] sm:$0xff] }
 0x30e   :  { %3652 = vmatpush.msra.mxu0 %v1387_v44  ;;  %3672 = vmatpush.msra.mxu1 %v1483_v53  ;;  %v1508_v23 = vld [vmem:[#allocation5 + $0x10d8] sm:$0xff]  ;;  %v1310_v44 = vld [vmem:[#allocation5 + $0xaa8] sm:$0xff] }
 0x30f   :  { %3692 = vmatpush.msra.mxu2 %v1004_v63  ;;  %3712 = vmatpush.msra.mxu3 %v1100_v21  ;;  %v3339_v39 = vpop.f32.mrf.mxu0  ;;  %v1406_v53 = vld [vmem:[#allocation5 + $0xda8] sm:$0xff]  ;;  %v3359_v63 = vpop.f32.mrf.mxu1 }
 0x310   :  { %3653 = vmatpush.msra.mxu0 %v1381_v43  ;;  %3673 = vmatpush.msra.mxu1 %v1477_v49  ;;  %v3340_v36 = vadd.f32 %v3339_v39, %v4897_v40  ;;  %v1502_v43 = vld [vmem:[#allocation5 + $0x10a8] sm:$0xff]  ;;  %v1208_v49 = vld [vmem:[#allocation5 + $0x778] sm:$0xff] }
 0x311   :  { %3693 = vmatpush.msra.mxu2 %v998_v58  ;;  %3713 = vmatpush.msra.mxu3 %v1094_v29  ;;  %v1304_v40 = vld [vmem:[#allocation5 + $0xa78] sm:$0xff]  ;;  %v1262_v39 = vld [vmem:[#allocation5 + $0x928] sm:$0xff] }
 0x312   :  { %3654 = vmatpush.msra.mxu0 %v1375_v57  ;;  %3674 = vmatpush.msra.mxu1 %v1471_v10  ;;  %v3360_v58 = vadd.f32 %v3359_v63, %v3340_v36  ;;  %v1400_v29 = vld [vmem:[#allocation5 + $0xd78] sm:$0xff]  ;;  %v1202_v10 = vld [vmem:[#allocation5 + $0x748] sm:$0xff] }
 0x313   :  { %3694 = vmatpush.msra.mxu2 %v992_v34  ;;  %3714 = vmatpush.msra.mxu3 %v1088_v26  ;;  %v1496_v57 = vld [vmem:[#allocation5 + $0x1078] sm:$0xff]  ;;  %v1298_v26 = vld [vmem:[#allocation5 + $0xa48] sm:$0xff] }
 0x314   :  { %3655 = vmatpush.msra.mxu0 %v1369_v1  ;;  %3675 = vmatpush.msra.mxu1 %v1465_v19  ;;  %v1394_v1 = vld [vmem:[#allocation5 + $0xd48] sm:$0xff] }
 0x315   :  { %3695 = vmatpush.msra.mxu2 %v986_v16  ;;  %3715 = vmatpush.msra.mxu3 %v1082_v55  ;;  %v1490_v19 = vld [vmem:[#allocation5 + $0x1048] sm:$0xff]  ;;  %v1196_v16 = vld [vmem:[#allocation5 + $0x718] sm:$0xff] }
 0x316   :  { %3656 = vmatpush.msra.mxu0 %v1363_v11  ;;  %3676 = vmatpush.msra.mxu1 %v1459_v38  ;;  %v3379_v21 = vpop.f32.mrf.mxu2  ;;  %v1292_v55 = vld [vmem:[#allocation5 + $0xa18] sm:$0xff]  ;;  %v3399_v38 = vpop.f32.mrf.mxu3 }
 0x317   :  { %3696 = vmatpush.msra.mxu2 %v980_v5  ;;  %3716 = vmatpush.msra.mxu3 %v1076_v27  ;;  %v3380_v34 = vadd.f32 %v3379_v21, %v3360_v58  ;;  %v1388_v11 = vld [vmem:[#allocation5 + $0xd18] sm:$0xff]  ;;  %v1190_v27 = vld [vmem:[#allocation5 + $0x6e8] sm:$0xff] }
 0x318   :  { %3657 = vmatpush.msra.mxu0 %v1357_v41  ;;  %3677 = vmatpush.msra.mxu1 %v1453_v56  ;;  %v1484_v5 = vld [vmem:[#allocation5 + $0x1018] sm:$0xff]  ;;  %v1286_v56 = vld [vmem:[#allocation5 + $0x9e8] sm:$0xff] }
 0x319   :  { %3697 = vmatpush.msra.mxu2 %v974_v3  ;;  %3717 = vmatpush.msra.mxu3 %v1070_v18  ;;  %v3400_v41 = vadd.f32 %v3399_v38, %v3380_v34  ;;  %v1382_v3 = vld [vmem:[#allocation5 + $0xce8] sm:$0xff] }
 0x31a   :  { %3658 = vmatmul.f32.vlgmr.msra.gmra.mxu0 %v4846_v20  ;;  %3678 = vmatmul.f32.vlgmr.msra.gmra.mxu1 %v4855_v35  ;;  %v1478_v18 = vld [vmem:[#allocation5 + $0xfe8] sm:$0xff] }
 0x31b   :  { %3698 = vmatmul.f32.vlgmr.msra.gmra.mxu2 %v4740_v12  ;;  %3718 = vmatmul.f32.vlgmr.msra.gmra.mxu3 %v4763_v25  ;;  %v1334_v12 = vld [vmem:[#allocation5 + $0xb68] sm:$0xff] }
 0x31c   :  { %3722 = vmatpush.msrb.mxu0 %v1256_v0  ;;  %3742 = vmatpush.msrb.mxu1 %v1352_v17  ;;  %v1526_v25 = vld [vmem:[#allocation5 + $0x1168] sm:$0xff]  ;;  %v1184_v0 = vld [vmem:[#allocation5 + $0x6b8] sm:$0xff] }
 0x31d   :  { %3762 = vmatpush.msrb.mxu2 %v1448_v15  ;;  %3782 = vmatpush.msrb.mxu3 %v1544_v42  ;;  %v1280_v15 = vld [vmem:[#allocation5 + $0x9b8] sm:$0xff] }
 0x31e   :  { %3723 = vmatpush.msrb.mxu0 %v1250_v51  ;;  %3743 = vmatpush.msrb.mxu1 %v1346_v30  ;;  %v1376_v42 = vld [vmem:[#allocation5 + $0xcb8] sm:$0xff]  ;;  %v3806_v30 = vperm.slane %v4944_v46, 2 }
 0x31f   :  { %3763 = vmatpush.msrb.mxu2 %v1442_v59  ;;  %3783 = vmatpush.msrb.mxu3 %v1538_v62  ;;  %v1472_v59 = vld [vmem:[#allocation5 + $0xfb8] sm:$0xff]  ;;  %v1178_v62 = vld [vmem:[#allocation5 + $0x688] sm:$0xff] }
 0x320   :  { %3724 = vmatpush.msrb.mxu0 %v1244_v14  ;;  %3744 = vmatpush.msrb.mxu1 %v1340_v61  ;;  %v1274_v61 = vld [vmem:[#allocation5 + $0x988] sm:$0xff] }
 0x321   :  { %3764 = vmatpush.msrb.mxu2 %v1436_v24  ;;  %3784 = vmatpush.msrb.mxu3 %v1532_v28  ;;  %v1370_v24 = vld [vmem:[#allocation5 + $0xc88] sm:$0xff] }
 0x322   :  { %3725 = vmatpush.msrb.mxu0 %v1238_v45  ;;  %3745 = vmatpush.msrb.mxu1 %v1334_v12  ;;  %v1466_v45 = vld [vmem:[#allocation5 + $0xf88] sm:$0xff]  ;;  %v1172_v12 = vld [vmem:[#allocation5 + $0x658] sm:$0xff] }
 0x323   :  { %3765 = vmatpush.msrb.mxu2 %v1430_v33  ;;  %3785 = vmatpush.msrb.mxu3 %v1526_v25  ;;  %v1268_v33 = vld [vmem:[#allocation5 + $0x958] sm:$0xff] }
 0x324   :  { %3726 = vmatpush.msrb.mxu0 %v1232_v37  ;;  %3746 = vmatpush.msrb.mxu1 %v1328_v8  ;;  %v1364_v25 = vld [vmem:[#allocation5 + $0xc58] sm:$0xff] }
 0x325   :  { %3766 = vmatpush.msrb.mxu2 %v1424_v4  ;;  %3786 = vmatpush.msrb.mxu3 %v1520_v2  ;;  %v1460_v8 = vld [vmem:[#allocation5 + $0xf58] sm:$0xff]  ;;  %v1166_v4 = vld [vmem:[#allocation5 + $0x628] sm:$0xff] }
 0x326   :  { %3727 = vmatpush.msrb.mxu0 %v1226_v54  ;;  %3747 = vmatpush.msrb.mxu1 %v1322_v32  ;;  %v1358_v2 = vld [vmem:[#allocation5 + $0xc28] sm:$0xff] }
 0x327   :  { %3767 = vmatpush.msrb.mxu2 %v1418_v31  ;;  %3787 = vmatpush.msrb.mxu3 %v1514_v47  ;;  %v1454_v54 = vld [vmem:[#allocation5 + $0xf28] sm:$0xff] }
 0x328   :  { %3728 = vmatpush.msrb.mxu0 %v1220_v52  ;;  %3748 = vmatpush.msrb.mxu1 %v1316_v9 }
 0x329   :  { %3768 = vmatpush.msrb.mxu2 %v1412_v22  ;;  %3788 = vmatpush.msrb.mxu3 %v1508_v23 }
 0x32a   :  { %3729 = vmatpush.msrb.mxu0 %v1214_v6  ;;  %3749 = vmatpush.msrb.mxu1 %v1310_v44 }
 0x32b   :  { %3769 = vmatpush.msrb.mxu2 %v1406_v53  ;;  %3789 = vmatpush.msrb.mxu3 %v1502_v43  ;;  %v3807_v53 = vperm.slane %v4944_v46, 3 }
 0x32c   :  { %3730 = vmatpush.msrb.mxu0 %v1208_v49  ;;  %3750 = vmatpush.msrb.mxu1 %v1304_v40 }
 0x32d   :  { %3770 = vmatpush.msrb.mxu2 %v1400_v29  ;;  %3790 = vmatpush.msrb.mxu3 %v1496_v57 }
 0x32e   :  { %3731 = vmatpush.msrb.mxu0 %v1202_v10  ;;  %3751 = vmatpush.msrb.mxu1 %v1298_v26  ;;  %v3808_v10 = vperm.slane %v4944_v46, 4 }
 0x32f   :  { %3771 = vmatpush.msrb.mxu2 %v1394_v1  ;;  %3791 = vmatpush.msrb.mxu3 %v1490_v19 }
 0x330   :  { %3732 = vmatpush.msrb.mxu0 %v1196_v16  ;;  %3752 = vmatpush.msrb.mxu1 %v1292_v55 }
 0x331   :  { %3772 = vmatpush.msrb.mxu2 %v1388_v11  ;;  %v3419_v17 = vpop.f32.mrf.mxu0  ;;  %3792 = vmatpush.msrb.mxu3 %v1484_v5  ;;  %v3439_v14 = vpop.f32.mrf.mxu1 }
 0x332   :  { %3733 = vmatpush.msrb.mxu0 %v1190_v27  ;;  %v3420_v51 = vadd.f32 %v3419_v17, %v3400_v41  ;;  %3753 = vmatpush.msrb.mxu1 %v1286_v56 }
 0x333   :  { %3773 = vmatpush.msrb.mxu2 %v1382_v3  ;;  %3793 = vmatpush.msrb.mxu3 %v1478_v18  ;;  %v3876_v3 = vld [vmem:[#allocation8] sm:$0x3f] }
 0x334   :  { %3734 = vmatpush.msrb.mxu0 %v1184_v0  ;;  %v3440_v28 = vadd.f32 %v3439_v14, %v3420_v51  ;;  %3754 = vmatpush.msrb.mxu1 %v1280_v15  ;;  %v3809_v18 = vperm.slane %v3876_v3, 5 }
 0x335   :  { %3774 = vmatpush.msrb.mxu2 %v1376_v42  ;;  %3794 = vmatpush.msrb.mxu3 %v1472_v59 }
 0x336   :  { %3735 = vmatpush.msrb.mxu0 %v1178_v62  ;;  %v3818_v37 = vadd.f32 %v3806_v30, %v3440_v28  ;;  %3755 = vmatpush.msrb.mxu1 %v1274_v61 }
 0x337   :  { %3775 = vmatpush.msrb.mxu2 %v1370_v24  ;;  %3795 = vmatpush.msrb.mxu3 %v1466_v45 }
 0x338   :  { %3736 = vmatpush.msrb.mxu0 %v1172_v12  ;;  %3824 = vst [vmem:[#allocation10 + $0x10] sm:$0xff] %v3818_v37  ;;  %3756 = vmatpush.msrb.mxu1 %v1268_v33  ;;  %v3459_v32 = vpop.f32.mrf.mxu2  ;;  %v3479_v47 = vpop.f32.mrf.mxu3 }
 0x339   :  { %3776 = vmatpush.msrb.mxu2 %v1364_v25  ;;  %3796 = vmatpush.msrb.mxu3 %v1460_v8  ;;  %v3460_v31 = vadd.f32 %v3459_v32, %v4906_v48 }
 0x33a   :  { %3737 = vmatpush.msrb.mxu0 %v1166_v4  ;;  %3757 = vmatpush.msrb.mxu1 %v1262_v39 }
 0x33b   :  { %3777 = vmatpush.msrb.mxu2 %v1358_v2  ;;  %3797 = vmatpush.msrb.mxu3 %v1454_v54  ;;  %v3480_v52 = vadd.f32 %v3479_v47, %v3460_v31 }
 0x33c   :  { %3738 = vmatmul.f32.vlgmr.msrb.gmra.mxu0 %v4793_v7  ;;  %3758 = vmatmul.f32.vlgmr.msrb.gmra.mxu1 %v4819_v13 }
 0x33d   :  { %3778 = vmatmul.f32.vlgmr.msrb.gmra.mxu2 %v4846_v20  ;;  %3798 = vmatmul.f32.vlgmr.msrb.gmra.mxu3 %v4855_v35 }
 0x353   :  { %v3499_v36 = vpop.f32.mrf.mxu0  ;;  %v3519_v22 = vpop.f32.mrf.mxu1 }
 0x354   :  { %v3500_v9 = vadd.f32 %v3499_v36, %v3480_v52 }
 0x356   :  { %v3520_v23 = vadd.f32 %v3519_v22, %v3500_v9 }
 0x35a   :  { %v3539_v6 = vpop.f32.mrf.mxu2  ;;  %v3559_v7 = vpop.f32.mrf.mxu3 }
 0x35b   :  { %v3540_v44 = vadd.f32 %v3539_v6, %v3520_v23 }
 0x35d   :  { %v3560_v63 = vadd.f32 %v3559_v7, %v3540_v44 }
 0x35f   :  { %v3819_v13 = vadd.f32 %v3807_v53, %v3560_v63 }
 0x361   :  { %3825 = vst [vmem:[#allocation10 + $0x18] sm:$0xff] %v3819_v13 }
 0x375   :  { %v3579_v20 = vpop.f32.mrf.mxu0  ;;  %v3599_v21 = vpop.f32.mrf.mxu1 }
 0x376   :  { %v3580_v35 = vadd.f32 %v3579_v20, %v4919_v50 }
 0x378   :  { %v3600_v48 = vadd.f32 %v3599_v21, %v3580_v35 }
 0x37c   :  { %v3619_v43 = vpop.f32.mrf.mxu2  ;;  %v3639_v58 = vpop.f32.mrf.mxu3 }
 0x37d   :  { %v3620_v49 = vadd.f32 %v3619_v43, %v3600_v48 }
 0x37f   :  { %v3640_v40 = vadd.f32 %v3639_v58, %v3620_v49 }
 0x397   :  { %v3659_v29 = vpop.f32.mrf.mxu0  ;;  %v3679_v34 = vpop.f32.mrf.mxu1 }
 0x398   :  { %v3660_v57 = vadd.f32 %v3659_v29, %v3640_v40 }
 0x39a   :  { %v3680_v26 = vadd.f32 %v3679_v34, %v3660_v57 }
 0x39c   :  { %v3820_v1 = vadd.f32 %v3808_v10, %v3680_v26 }
 0x39e   :  { %3826 = vst [vmem:[#allocation10 + $0x20] sm:$0xff] %v3820_v1  ;;  %v3699_v19 = vpop.f32.mrf.mxu2  ;;  %v3719_v55 = vpop.f32.mrf.mxu3 }
 0x39f   :  { %v3700_v16 = vadd.f32 %v3699_v19, %v4928_v60 }
 0x3a1   :  { %v3720_v11 = vadd.f32 %v3719_v55, %v3700_v16 }
 0x3b9   :  { %v3739_v50 = vpop.f32.mrf.mxu0  ;;  %v3759_v5 = vpop.f32.mrf.mxu1 }
 0x3ba   :  { %v3740_v38 = vadd.f32 %v3739_v50, %v3720_v11 }
 0x3bc   :  { %v3760_v27 = vadd.f32 %v3759_v5, %v3740_v38 }
 0x3c0   :  { %v3779_v41 = vpop.f32.mrf.mxu2  ;;  %v3799_v0 = vpop.f32.mrf.mxu3 }
 0x3c1   :  { %v3780_v56 = vadd.f32 %v3779_v41, %v3760_v27 }
 0x3c3   :  { %v3800_v46 = vadd.f32 %v3799_v0, %v3780_v56 }
 0x3c5   :  { %v3821_v17 = vadd.f32 %v3809_v18, %v3800_v46 }
 0x3c7   :  { %3827 = vst [vmem:[#allocation10 + $0x28] sm:$0xff] %v3821_v17 }
 0x3c8   :  { %3838 = dma.vmem_to_hbm [thread:$0]  %s3834_s8, 768, %s3836_s11, [#allocation4]  }
 0x3c9   :  { %4003 = dma.done.wait [#allocation4], 768  }
 0x3ca   :  { %4004 = vsyncadd [#allocation4], 4294966528 }
 0x3cb   :  { %3843 = vsyncpa [#allocation3], 1 }
 0x3cc   :  { %3844 = vsyncpa [#allocation6], 1 }
 0x3cd   :  { %3845 = vsyncpa [#allocation9], 1 }
 0x3ce   :  { %3846 = vsyncpa [#allocation4], 1 }

</bundles_post_ra>
